<compile_context>
chip_gen: v6e
topology: v6e:2x2x1
jax: 0.10.0
libtpu: 0.0.40
codegen_flags: <defaults>
</compile_context>

<pallas_src>
import functools

import jax
import jax.numpy as jnp
from jax.experimental import pallas as pl
from jax.experimental.pallas import tpu as pltpu

BN_EPS = 1e-5   # PyTorch BatchNorm1d default
LANE = 128      # TPU lane width
HALO = 16       # input halo per side: >= repeat * (K // 2) = 15, sublane aligned


def _mxu_is_256wide():
    """True on TPU generations with 256-wide MXUs (v6e / v7x)."""
    try:
        kind = jax.devices()[0].device_kind.lower()
    except Exception:
        return False
    return any(tag in kind for tag in ("v6", "v7", "7x"))


# ---------------------------------------------------------------------------
# Fused Pallas kernel: the whole QuartzNet block for one (batch, time-tile)
# ---------------------------------------------------------------------------
def _quartznet_block_kernel(xa_ref, xb_ref, w1_ref, w2_ref, w3_ref, wr_ref,
                            scale_ref, shift_ref, o_ref,
                            xwin_ref, h1_ref, h2_ref,
                            *, K, tT, T, cin_p, cout_p, pair_taps,
                            right_mask_tile, row_chunk):
    pad = K // 2
    E1 = tT + 4 * pad          # layer-1 activation extent needed by layer 2
    E2 = tT + 2 * pad          # layer-2 activation extent needed by layer 3
    t_idx = pl.program_id(1)
    s = t_idx * tT             # global start time of this output tile
    # Boundary tiles: part of the h1/h2 window falls outside [0, T) and must
    # be zeroed (reproduces PyTorch's stacked "same" zero padding).  Interior
    # tiles skip the masking work entirely (pl.when-gated below).
    needs_mask = (t_idx == 0) | (t_idx >= right_mask_tile)

    # Assemble the contiguous halo'd input window covering global
    # [s - HALO, s + tT + HALO), kept in compute dtype (no cast).
    xwin_ref[0:tT, :] = xa_ref[...]
    xwin_ref[tT:tT + 2 * HALO, :] = xb_ref[...]

    def conv_chunk(src_ref, w_ref, src_c, row0, r0, rc):
        """K-tap conv for output rows [r0, r0+rc); f32 MXU accumulation."""
        acc = jnp.zeros((rc, cout_p), jnp.float32)
        base = row0 + r0
        if pair_taps and K > 1:
            # 256-deep contraction: taps (2j, 2j+1) fused into one dot.
            for j in range(K // 2):
                a0 = src_ref[base + 2 * j:base + 2 * j + rc, :]
                a1 = src_ref[base + 2 * j + 1:base + 2 * j + 1 + rc, :]
                a = jnp.concatenate([a0, a1], axis=-1)          # (rc, 2*src_c)
                acc = acc + jnp.dot(a, w_ref[j],
                                    preferred_element_type=jnp.float32)
            if K % 2:   # last odd tap: plain 128-deep dot (no zero padding push)
                a = src_ref[base + K - 1:base + K - 1 + rc, :]
                acc = acc + jnp.dot(a, w_ref[K // 2, 0:src_c, :],
                                    preferred_element_type=jnp.float32)
        else:
            for k in range(K):  # static unroll, per-tap load straight from VMEM
                a = src_ref[base + k:base + k + rc, :]
                acc = acc + jnp.dot(a, w_ref[k],
                                    preferred_element_type=jnp.float32)
        return acc

    def layer(src_ref, w_ref, src_c, n_rows, row0, bn_idx, epilogue):
        scale = scale_ref[bn_idx]
        shift = shift_ref[bn_idx]
        for r0 in range(0, n_rows, row_chunk):
            rc = min(row_chunk, n_rows - r0)
            acc = conv_chunk(src_ref, w_ref, src_c, row0, r0, rc)
            epilogue(r0, rc, acc * scale + shift)

    def store_hidden(dst_ref, first_global):
        """ReLU + (boundary-only) zero mask + store in compute dtype."""
        def ep(r0, rc, y):
            y = jnp.maximum(y, 0.0)
            dst_ref[r0:r0 + rc, :] = y.astype(dst_ref.dtype)

            @pl.when(needs_mask)
            def _():
                g = (first_global + r0
                     + jax.lax.broadcasted_iota(jnp.int32, (rc, 1), 0))
                dst_ref[r0:r0 + rc, :] = jnp.where(
                    (g >= 0) & (g < T), y, 0.0).astype(dst_ref.dtype)
        return ep

    def store_out(r0, rc, y3):
        # residual 1x1 conv + BN on the original input rows, then final ReLU.
        xr = xwin_ref[HALO + r0:HALO + r0 + rc, :]
        res = jnp.dot(xr, wr_ref[...], preferred_element_type=jnp.float32)
        res = res * scale_ref[3] + shift_ref[3]
        o_ref[r0:r0 + rc, :] = jnp.maximum(y3 + res, 0.0).astype(o_ref.dtype)
        # TODO(synk): final Dropout(p=0.2) treated as eval-mode identity.

    # conv1 + BN + ReLU   (Dropout(p=0.2): eval-mode identity)
    layer(xwin_ref, w1_ref, cin_p, E1, HALO - 3 * pad, 0,
          store_hidden(h1_ref, s - 2 * pad))
    # conv2 + BN + ReLU   (Dropout(p=0.2): eval-mode identity)
    layer(h1_ref, w2_ref, cout_p, E2, 0, 1, store_hidden(h2_ref, s - pad))
    # conv3 + BN + residual(1x1 conv + BN) + final ReLU
    layer(h2_ref, w3_ref, cout_p, tT, 0, 2, store_out)


# ---------------------------------------------------------------------------
# Wrapper
# ---------------------------------------------------------------------------
def _round_up(x, m):
    return (x + m - 1) // m * m


def fold_bn(conv_bias, gamma, beta, mean, var):
    """Fold conv bias + eval-mode BN into per-channel (scale, shift)."""
    scale = gamma / jnp.sqrt(var + BN_EPS)
    shift = beta - mean * scale + conv_bias * scale
    return scale, shift


def _pad_weight(w_oik, cin_p, cout_p, dtype, pair):
    """(Cout, Cin, K) PyTorch OIH -> (K, Cin_p, Cout_p), lane padded.
    If pair: tap-paired layout (ceil(K/2), 2*Cin_p, Cout_p), last pair's
    second half zeroed (its operand is handled as a 128-deep dot in-kernel)."""
    w = jnp.transpose(w_oik, (2, 1, 0))
    Kw = w.shape[0]
    w = jnp.pad(w, ((0, 0), (0, cin_p - w.shape[1]), (0, cout_p - w.shape[2])))
    if pair and Kw > 1:
        npair = Kw // 2
        w_pairs = jnp.concatenate([w[0:2 * npair:2], w[1:2 * npair:2]], axis=1)
        if Kw % 2:
            last = jnp.concatenate([w[Kw - 1:Kw], jnp.zeros_like(w[Kw - 1:Kw])],
                                   axis=1)
            w_pairs = jnp.concatenate([w_pairs, last], axis=0)
        w = w_pairs
    return w.astype(dtype)


@functools.partial(jax.jit, static_argnames=("K", "time_tile", "compute_dtype",
                                             "pair_taps", "row_chunk"))
def quartznet_block_forward(x_nct, params, *, K=11, time_tile=512,
                            compute_dtype=jnp.bfloat16, pair_taps=None,
                            row_chunk=128):
    """x_nct: (N, feat_in, T) PyTorch NCT layout. Returns (N, filters, T)."""
    if pair_taps is None:
        pair_taps = _mxu_is_256wide()   # 256-deep contraction on v6e/v7x only
    pair_taps = bool(pair_taps)

    N, feat_in, T = x_nct.shape
    filters = params["conv"][0][0].shape[0]
    pad = K // 2
    # TODO(synk): kernel is specialized to the module defaults
    # (repeat=3, stride=1, dilation=1, separable=False, residual=True).
    assert K % 2 == 1
    assert len(params["conv"]) == 3 and HALO >= 3 * pad

    cin_p = _round_up(feat_in, LANE)
    cout_p = _round_up(filters, LANE)
    # TODO(synk): for configs with feat_in/filters << 128 the lane padding
    # wastes most of the MXU/VPU/HBM work; a lane-filling layout (im2col lanes
    # = K*cin or channel-group packing) would be needed to recover it.

    # time tile: multiple of 2*HALO so the halo block lands on a block boundary
    tT = min(_round_up(time_tile, 2 * HALO), _round_up(T, 2 * HALO))
    n_t = pl.cdiv(T, tT)
    t_pad = n_t * tT
    halo_blk = tT // (2 * HALO)
    E1, E2 = tT + 4 * pad, tT + 2 * pad

    # first tile index whose layer-1 window reaches past T (needs right mask)
    right_mask_tile = n_t
    for t in range(n_t):
        if (t + 1) * tT + 2 * pad > T:
            right_mask_tile = t
            break

    out_dtype = compute_dtype   # bf16 output on the perf path (half writeback)

    # channels-last; pad once with the halo (the zero halo rows double as the
    # conv "same" zero padding for the first layer)
    x_ntc = jnp.transpose(x_nct, (0, 2, 1)).astype(compute_dtype)
    x_p = jnp.pad(x_ntc, ((0, 0), (HALO, t_pad - T + HALO), (0, cin_p - feat_in)))

    # weights in MXU dtype; BN folded into f32 scale/shift
    w1_p = _pad_weight(params["conv"][0][0], cin_p, cout_p, compute_dtype, pair_taps)
    w2_p = _pad_weight(params["conv"][1][0], cout_p, cout_p, compute_dtype, pair_taps)
    w3_p = _pad_weight(params["conv"][2][0], cout_p, cout_p, compute_dtype, pair_taps)
    wr_p = _pad_weight(params["res"][0], cin_p, cout_p, compute_dtype, False)

    scales, shifts = [], []
    for (_, b, g, be, m, v) in list(params["conv"]) + [params["res"]]:
        sc, sh = fold_bn(b, g, be, m, v)
        scales.append(jnp.pad(sc, (0, cout_p - filters)))
        shifts.append(jnp.pad(sh, (0, cout_p - filters)))
    scales = jnp.stack(scales).astype(jnp.float32)   # (4, Cout_p)
    shifts = jnp.stack(shifts).astype(jnp.float32)   # (4, Cout_p)

    kernel = functools.partial(
        _quartznet_block_kernel, K=K, tT=tT, T=T, cin_p=cin_p, cout_p=cout_p,
        pair_taps=pair_taps, right_mask_tile=right_mask_tile,
        row_chunk=row_chunk)

    # VMEM budget from the actual per-step footprint (double-buffered in/out
    # tiles + resident weights/BN params + scratch) instead of a hard-coded cap.
    itc = jnp.finfo(compute_dtype).bits // 8
    w_bytes = (w1_p.size + w2_p.size + w3_p.size + wr_p.size) * itc
    bn_bytes = (scales.size + shifts.size) * 4
    io_bytes = (tT + 2 * HALO) * cin_p * itc + tT * cout_p * itc
    scratch_bytes = ((tT + 2 * HALO) * cin_p + (E1 + E2) * cout_p) * itc
    footprint = 2 * (io_bytes + w_bytes + bn_bytes) + scratch_bytes
    vmem_limit = int(min(max(1.25 * footprint + (8 << 20), 24 << 20), 96 << 20))
    # TODO(synk): on v7x (64 MiB VMEM) at production widths, single-buffer the
    # resident weight specs (pipeline_mode=pl.Buffered(1)) before raising tT.

    flops = 2 * N * t_pad * cout_p * (K * (cin_p + 2 * cout_p) + cin_p)
    bytes_accessed = (2 * x_p.size * itc + w_bytes
                      + N * t_pad * cout_p * itc)

    out = pl.pallas_call(
        kernel,
        out_shape=jax.ShapeDtypeStruct((N, t_pad, cout_p), out_dtype),
        grid=(N, n_t),
        in_specs=[
            # main input tile and its trailing 2*HALO halo block (overlapping
            # window assembled in-kernel; both auto-pipelined)
            pl.BlockSpec((None, tT, cin_p), lambda n, t: (n, t, 0)),
            pl.BlockSpec((None, 2 * HALO, cin_p),
                         lambda n, t: (n, (t + 1) * halo_blk, 0)),
            # weights / folded BN params: resident (constant index maps)
            pl.BlockSpec(w1_p.shape, lambda n, t: (0, 0, 0)),
            pl.BlockSpec(w2_p.shape, lambda n, t: (0, 0, 0)),
            pl.BlockSpec(w3_p.shape, lambda n, t: (0, 0, 0)),
            pl.BlockSpec((None, cin_p, cout_p), lambda n, t: (0, 0, 0)),
            pl.BlockSpec((4, cout_p), lambda n, t: (0, 0)),
            pl.BlockSpec((4, cout_p), lambda n, t: (0, 0)),
        ],
        out_specs=pl.BlockSpec((None, tT, cout_p), lambda n, t: (n, t, 0)),
        scratch_shapes=[
            pltpu.VMEM((tT + 2 * HALO, cin_p), compute_dtype),  # halo'd x window
            pltpu.VMEM((E1, cout_p), compute_dtype),            # layer-1 act
            pltpu.VMEM((E2, cout_p), compute_dtype),            # layer-2 act
        ],
        compiler_params=pltpu.CompilerParams(
            dimension_semantics=("parallel", "parallel"),
            vmem_limit_bytes=vmem_limit),
        cost_estimate=pl.CostEstimate(flops=int(flops), transcendentals=0,
                                      bytes_accessed=int(bytes_accessed)),
    )(x_p, x_p, w1_p, w2_p, w3_p, wr_p, scales, shifts)

    # crop time / channel padding, return PyTorch NCT layout
    return jnp.transpose(out[:, :T, :filters], (0, 2, 1))


# ---------------------------------------------------------------------------
# Pure-JAX reference (correctness check)
# ---------------------------------------------------------------------------
def ref_conv1d(x_nct, w_oik, b, pad):
    y = jax.lax.conv_general_dilated(
        x_nct, w_oik, window_strides=(1,), padding=[(pad, pad)],
        dimension_numbers=("NCH", "OIH", "NCH"))
    return y + b[None, :, None]


def ref_bn(x_nct, gamma, beta, mean, var):
    return ((x_nct - mean[None, :, None]) / jnp.sqrt(var[None, :, None] + BN_EPS)
            ) * gamma[None, :, None] + beta[None, :, None]


def ref_forward(x_nct, params, *, K=11):
    pad = K // 2
    h = x_nct
    n_repeat = len(params["conv"])
    for idx, (w, b, g, be, m, v) in enumerate(params["conv"]):
        h = ref_bn(ref_conv1d(h, w, b, pad), g, be, m, v)
        if idx != n_repeat - 1:
            h = jnp.maximum(h, 0.0)
    w_r, b_r, g_r, be_r, m_r, v_r = params["res"]
    r = ref_bn(ref_conv1d(x_nct, w_r, b_r, 0), g_r, be_r, m_r, v_r)
    return jnp.maximum(h + r, 0.0)


# ---------------------------------------------------------------------------
# Deterministic parameters + main
# ---------------------------------------------------------------------------
def make_params(key, feat_in, filters, K, repeat):
    def conv_bn_params(key, cin, cout, k):
        ks = jax.random.split(key, 6)
        w = 0.1 * jax.random.normal(ks[0], (cout, cin, k), jnp.float32)
        b = 0.1 * jax.random.normal(ks[1], (cout,), jnp.float32)
        gamma = 1.0 + 0.1 * jax.random.normal(ks[2], (cout,), jnp.float32)
        beta = 0.1 * jax.random.normal(ks[3], (cout,), jnp.float32)
        mean = 0.1 * jax.random.normal(ks[4], (cout,), jnp.float32)
        var = jax.random.uniform(ks[5], (cout,), jnp.float32, 0.5, 1.5)
        return (w, b, gamma, beta, mean, var)

    keys = jax.random.split(key, repeat + 1)
    conv_params = []
    cin = feat_in
    for i in range(repeat):
        conv_params.append(conv_bn_params(keys[i], cin, filters, K))
        cin = filters
    res_params = conv_bn_params(keys[repeat], feat_in, filters, 1)
    return {"conv": conv_params, "res": res_params}


if __name__ == "__main__":
    N, feat_in, filters, T, K, repeat = 2, 4, 8, 16, 11, 3

    key = jax.random.PRNGKey(0)
    k_x, k_p = jax.random.split(key)
    x = jax.random.normal(k_x, (N, feat_in, T), jnp.float32)   # PyTorch NCT
    params = make_params(k_p, feat_in, filters, K, repeat)

    ref = jax.block_until_ready(ref_forward(x, params, K=K))

    # exactness check: f32 compute path, both contraction layouts
    for pair in (False, True):
        out_f32 = jax.block_until_ready(
            quartznet_block_forward(x, params, K=K, compute_dtype=jnp.float32,
                                    pair_taps=pair))
        assert out_f32.shape == (N, filters, T), out_f32.shape
        assert jnp.allclose(out_f32, ref, atol=1e-4, rtol=1e-4), (
            pair, float(jnp.max(jnp.abs(out_f32 - ref))))

    # performance path: bf16 operands/activations/output, f32 accumulation,
    # tap layout auto-selected from the MXU width of the local device.
    out_bf16 = jax.block_until_ready(
        quartznet_block_forward(x, params, K=K, compute_dtype=jnp.bfloat16))
    assert out_bf16.shape == (N, filters, T), out_bf16.shape
    err = jnp.max(jnp.abs(out_bf16.astype(jnp.float32) - ref))
    assert jnp.allclose(out_bf16.astype(jnp.float32), ref,
                        atol=5e-2, rtol=5e-2), float(err)

    print("KERNEL_OK")
</pallas_src>

<mosaic_0001>
module attributes {stable_mosaic.version = 11 : i64} {
  func.func @_quartznet_block_kernel(%arg0: i32, %arg1: i32, %arg2: memref<1x32x128xf32, #tpu.memory_space<vmem>>, %arg3: memref<1x32x128xf32, #tpu.memory_space<vmem>>, %arg4: memref<11x128x128xf32, #tpu.memory_space<vmem>>, %arg5: memref<11x128x128xf32, #tpu.memory_space<vmem>>, %arg6: memref<11x128x128xf32, #tpu.memory_space<vmem>>, %arg7: memref<1x128x128xf32, #tpu.memory_space<vmem>>, %arg8: memref<4x128xf32, #tpu.memory_space<vmem>>, %arg9: memref<4x128xf32, #tpu.memory_space<vmem>>, %arg10: memref<1x32x128xf32, #tpu.memory_space<vmem>>, %arg11: memref<64x128xf32, #tpu.memory_space<vmem>>, %arg12: memref<52x128xf32, #tpu.memory_space<vmem>>, %arg13: memref<42x128xf32, #tpu.memory_space<vmem>>) attributes {dimension_semantics = [#tpu.dimension_semantics<parallel>, #tpu.dimension_semantics<parallel>], iteration_bounds = array<i64: 2, 1>, scalar_prefetch = 0 : i64, scratch_operands = 3 : i64, tpu.core_type = #tpu.core_type<tc>, window_params = [{transform_indices = @transform_0, window_bounds = array<i64: 1, 32, 128>}, {transform_indices = @transform_1, window_bounds = array<i64: 1, 32, 128>}, {pipeline_mode = #tpu.pipeline_mode<synchronous>, transform_indices = @transform_2, window_bounds = array<i64: 11, 128, 128>}, {pipeline_mode = #tpu.pipeline_mode<synchronous>, transform_indices = @transform_3, window_bounds = array<i64: 11, 128, 128>}, {pipeline_mode = #tpu.pipeline_mode<synchronous>, transform_indices = @transform_4, window_bounds = array<i64: 11, 128, 128>}, {pipeline_mode = #tpu.pipeline_mode<synchronous>, transform_indices = @transform_5, window_bounds = array<i64: 1, 128, 128>}, {pipeline_mode = #tpu.pipeline_mode<synchronous>, transform_indices = @transform_6, window_bounds = array<i64: 4, 128>}, {pipeline_mode = #tpu.pipeline_mode<synchronous>, transform_indices = @transform_7, window_bounds = array<i64: 4, 128>}, {transform_indices = @transform_8, window_bounds = array<i64: 1, 32, 128>}]} {
    %c32_i32 = arith.constant 32 : i32
    %0 = arith.muli %arg1, %c32_i32 : i32
    %c0_i32 = arith.constant 0 : i32
    %1 = arith.cmpi eq, %arg1, %c0_i32 : i32
    %c0_i32_0 = arith.constant 0 : i32
    %2 = arith.cmpi sge, %arg1, %c0_i32_0 : i32
    %3 = arith.ori %1, %2 : i1
    %c0 = arith.constant 0 : index
    %c0_1 = arith.constant 0 : index
    %c0_2 = arith.constant 0 : index
    %4 = vector.load %arg2[%c0, %c0_1, %c0_2] : memref<1x32x128xf32, #tpu.memory_space<vmem>>, vector<1x32x128xf32>
    %5 = vector.shape_cast %4 : vector<1x32x128xf32> to vector<32x128xf32>
    %c0_3 = arith.constant 0 : index
    %c0_4 = arith.constant 0 : index
    %6 = vector.load %arg11[%c0_3, %c0_4] : memref<64x128xf32, #tpu.memory_space<vmem>>, vector<32x128xf32>
    tpu.vector_store %arg11[%c0_3, %c0_4], %5 {strides = array<i32>} : memref<64x128xf32, #tpu.memory_space<vmem>>, vector<32x128xf32>,
    %c0_5 = arith.constant 0 : index
    %c0_6 = arith.constant 0 : index
    %c0_7 = arith.constant 0 : index
    %7 = vector.load %arg3[%c0_5, %c0_6, %c0_7] : memref<1x32x128xf32, #tpu.memory_space<vmem>>, vector<1x32x128xf32>
    %8 = vector.shape_cast %7 : vector<1x32x128xf32> to vector<32x128xf32>
    %c32 = arith.constant 32 : index
    %c0_8 = arith.constant 0 : index
    %9 = vector.load %arg11[%c32, %c0_8] : memref<64x128xf32, #tpu.memory_space<vmem>>, vector<32x128xf32>
    tpu.vector_store %arg11[%c32, %c0_8], %8 {strides = array<i32>} : memref<64x128xf32, #tpu.memory_space<vmem>>, vector<32x128xf32>,
    %c10_i32 = arith.constant 10 : i32
    %10 = arith.subi %0, %c10_i32 : i32
    %c0_9 = arith.constant 0 : index
    %c0_10 = arith.constant 0 : index
    %11 = vector.load %arg8[%c0_9, %c0_10] : memref<4x128xf32, #tpu.memory_space<vmem>>, vector<1x128xf32>
    %12 = vector.shape_cast %11 : vector<1x128xf32> to vector<128xf32>
    %c0_11 = arith.constant 0 : index
    %c0_12 = arith.constant 0 : index
    %13 = vector.load %arg9[%c0_11, %c0_12] : memref<4x128xf32, #tpu.memory_space<vmem>>, vector<1x128xf32>
    %14 = vector.shape_cast %13 : vector<1x128xf32> to vector<128xf32>
    %cst = arith.constant 0.000000e+00 : f32
    %15 = vector.broadcast %cst : f32 to vector<52x128xf32>
    %c1 = arith.constant 1 : index
    %c0_13 = arith.constant 0 : index
    %16 = vector.load %arg11[%c1, %c0_13] : memref<64x128xf32, #tpu.memory_space<vmem>>, vector<52x128xf32>
    %c0_14 = arith.constant 0 : index
    %c0_15 = arith.constant 0 : index
    %c0_16 = arith.constant 0 : index
    %17 = vector.load %arg4[%c0_14, %c0_15, %c0_16] : memref<11x128x128xf32, #tpu.memory_space<vmem>>, vector<1x128x128xf32>
    %18 = vector.shape_cast %17 : vector<1x128x128xf32> to vector<128x128xf32>
    %cst_17 = arith.constant dense<0.000000e+00> : vector<52x128xf32>
    %19 = tpu.matmul %16, %18, %cst_17 {dimension_numbers = #tpu.dot_dimension_numbers<[1], [0], [0], [1], [0, 0, 1, 1], [], []>} : vector<52x128xf32>, vector<128x128xf32>, vector<52x128xf32> -> vector<52x128xf32>
    %20 = arith.addf %15, %19 : vector<52x128xf32>
    %c2 = arith.constant 2 : index
    %c0_18 = arith.constant 0 : index
    %21 = vector.load %arg11[%c2, %c0_18] : memref<64x128xf32, #tpu.memory_space<vmem>>, vector<52x128xf32>
    %c1_19 = arith.constant 1 : index
    %c0_20 = arith.constant 0 : index
    %c0_21 = arith.constant 0 : index
    %22 = vector.load %arg4[%c1_19, %c0_20, %c0_21] : memref<11x128x128xf32, #tpu.memory_space<vmem>>, vector<1x128x128xf32>
    %23 = vector.shape_cast %22 : vector<1x128x128xf32> to vector<128x128xf32>
    %cst_22 = arith.constant dense<0.000000e+00> : vector<52x128xf32>
    %24 = tpu.matmul %21, %23, %cst_22 {dimension_numbers = #tpu.dot_dimension_numbers<[1], [0], [0], [1], [0, 0, 1, 1], [], []>} : vector<52x128xf32>, vector<128x128xf32>, vector<52x128xf32> -> vector<52x128xf32>
    %25 = arith.addf %20, %24 : vector<52x128xf32>
    %c3 = arith.constant 3 : index
    %c0_23 = arith.constant 0 : index
    %26 = vector.load %arg11[%c3, %c0_23] : memref<64x128xf32, #tpu.memory_space<vmem>>, vector<52x128xf32>
    %c2_24 = arith.constant 2 : index
    %c0_25 = arith.constant 0 : index
    %c0_26 = arith.constant 0 : index
    %27 = vector.load %arg4[%c2_24, %c0_25, %c0_26] : memref<11x128x128xf32, #tpu.memory_space<vmem>>, vector<1x128x128xf32>
    %28 = vector.shape_cast %27 : vector<1x128x128xf32> to vector<128x128xf32>
    %cst_27 = arith.constant dense<0.000000e+00> : vector<52x128xf32>
    %29 = tpu.matmul %26, %28, %cst_27 {dimension_numbers = #tpu.dot_dimension_numbers<[1], [0], [0], [1], [0, 0, 1, 1], [], []>} : vector<52x128xf32>, vector<128x128xf32>, vector<52x128xf32> -> vector<52x128xf32>
    %30 = arith.addf %25, %29 : vector<52x128xf32>
    %c4 = arith.constant 4 : index
    %c0_28 = arith.constant 0 : index
    %31 = vector.load %arg11[%c4, %c0_28] : memref<64x128xf32, #tpu.memory_space<vmem>>, vector<52x128xf32>
    %c3_29 = arith.constant 3 : index
    %c0_30 = arith.constant 0 : index
    %c0_31 = arith.constant 0 : index
    %32 = vector.load %arg4[%c3_29, %c0_30, %c0_31] : memref<11x128x128xf32, #tpu.memory_space<vmem>>, vector<1x128x128xf32>
    %33 = vector.shape_cast %32 : vector<1x128x128xf32> to vector<128x128xf32>
    %cst_32 = arith.constant dense<0.000000e+00> : vector<52x128xf32>
    %34 = tpu.matmul %31, %33, %cst_32 {dimension_numbers = #tpu.dot_dimension_numbers<[1], [0], [0], [1], [0, 0, 1, 1], [], []>} : vector<52x128xf32>, vector<128x128xf32>, vector<52x128xf32> -> vector<52x128xf32>
    %35 = arith.addf %30, %34 : vector<52x128xf32>
    %c5 = arith.constant 5 : index
    %c0_33 = arith.constant 0 : index
    %36 = vector.load %arg11[%c5, %c0_33] : memref<64x128xf32, #tpu.memory_space<vmem>>, vector<52x128xf32>
    %c4_34 = arith.constant 4 : index
    %c0_35 = arith.constant 0 : index
    %c0_36 = arith.constant 0 : index
    %37 = vector.load %arg4[%c4_34, %c0_35, %c0_36] : memref<11x128x128xf32, #tpu.memory_space<vmem>>, vector<1x128x128xf32>
    %38 = vector.shape_cast %37 : vector<1x128x128xf32> to vector<128x128xf32>
    %cst_37 = arith.constant dense<0.000000e+00> : vector<52x128xf32>
    %39 = tpu.matmul %36, %38, %cst_37 {dimension_numbers = #tpu.dot_dimension_numbers<[1], [0], [0], [1], [0, 0, 1, 1], [], []>} : vector<52x128xf32>, vector<128x128xf32>, vector<52x128xf32> -> vector<52x128xf32>
    %40 = arith.addf %35, %39 : vector<52x128xf32>
    %c6 = arith.constant 6 : index
    %c0_38 = arith.constant 0 : index
    %41 = vector.load %arg11[%c6, %c0_38] : memref<64x128xf32, #tpu.memory_space<vmem>>, vector<52x128xf32>
    %c5_39 = arith.constant 5 : index
    %c0_40 = arith.constant 0 : index
    %c0_41 = arith.constant 0 : index
    %42 = vector.load %arg4[%c5_39, %c0_40, %c0_41] : memref<11x128x128xf32, #tpu.memory_space<vmem>>, vector<1x128x128xf32>
    %43 = vector.shape_cast %42 : vector<1x128x128xf32> to vector<128x128xf32>
    %cst_42 = arith.constant dense<0.000000e+00> : vector<52x128xf32>
    %44 = tpu.matmul %41, %43, %cst_42 {dimension_numbers = #tpu.dot_dimension_numbers<[1], [0], [0], [1], [0, 0, 1, 1], [], []>} : vector<52x128xf32>, vector<128x128xf32>, vector<52x128xf32> -> vector<52x128xf32>
    %45 = arith.addf %40, %44 : vector<52x128xf32>
    %c7 = arith.constant 7 : index
    %c0_43 = arith.constant 0 : index
    %46 = vector.load %arg11[%c7, %c0_43] : memref<64x128xf32, #tpu.memory_space<vmem>>, vector<52x128xf32>
    %c6_44 = arith.constant 6 : index
    %c0_45 = arith.constant 0 : index
    %c0_46 = arith.constant 0 : index
    %47 = vector.load %arg4[%c6_44, %c0_45, %c0_46] : memref<11x128x128xf32, #tpu.memory_space<vmem>>, vector<1x128x128xf32>
    %48 = vector.shape_cast %47 : vector<1x128x128xf32> to vector<128x128xf32>
    %cst_47 = arith.constant dense<0.000000e+00> : vector<52x128xf32>
    %49 = tpu.matmul %46, %48, %cst_47 {dimension_numbers = #tpu.dot_dimension_numbers<[1], [0], [0], [1], [0, 0, 1, 1], [], []>} : vector<52x128xf32>, vector<128x128xf32>, vector<52x128xf32> -> vector<52x128xf32>
    %50 = arith.addf %45, %49 : vector<52x128xf32>
    %c8 = arith.constant 8 : index
    %c0_48 = arith.constant 0 : index
    %51 = vector.load %arg11[%c8, %c0_48] : memref<64x128xf32, #tpu.memory_space<vmem>>, vector<52x128xf32>
    %c7_49 = arith.constant 7 : index
    %c0_50 = arith.constant 0 : index
    %c0_51 = arith.constant 0 : index
    %52 = vector.load %arg4[%c7_49, %c0_50, %c0_51] : memref<11x128x128xf32, #tpu.memory_space<vmem>>, vector<1x128x128xf32>
    %53 = vector.shape_cast %52 : vector<1x128x128xf32> to vector<128x128xf32>
    %cst_52 = arith.constant dense<0.000000e+00> : vector<52x128xf32>
    %54 = tpu.matmul %51, %53, %cst_52 {dimension_numbers = #tpu.dot_dimension_numbers<[1], [0], [0], [1], [0, 0, 1, 1], [], []>} : vector<52x128xf32>, vector<128x128xf32>, vector<52x128xf32> -> vector<52x128xf32>
    %55 = arith.addf %50, %54 : vector<52x128xf32>
    %c9 = arith.constant 9 : index
    %c0_53 = arith.constant 0 : index
    %56 = vector.load %arg11[%c9, %c0_53] : memref<64x128xf32, #tpu.memory_space<vmem>>, vector<52x128xf32>
    %c8_54 = arith.constant 8 : index
    %c0_55 = arith.constant 0 : index
    %c0_56 = arith.constant 0 : index
    %57 = vector.load %arg4[%c8_54, %c0_55, %c0_56] : memref<11x128x128xf32, #tpu.memory_space<vmem>>, vector<1x128x128xf32>
    %58 = vector.shape_cast %57 : vector<1x128x128xf32> to vector<128x128xf32>
    %cst_57 = arith.constant dense<0.000000e+00> : vector<52x128xf32>
    %59 = tpu.matmul %56, %58, %cst_57 {dimension_numbers = #tpu.dot_dimension_numbers<[1], [0], [0], [1], [0, 0, 1, 1], [], []>} : vector<52x128xf32>, vector<128x128xf32>, vector<52x128xf32> -> vector<52x128xf32>
    %60 = arith.addf %55, %59 : vector<52x128xf32>
    %c10 = arith.constant 10 : index
    %c0_58 = arith.constant 0 : index
    %61 = vector.load %arg11[%c10, %c0_58] : memref<64x128xf32, #tpu.memory_space<vmem>>, vector<52x128xf32>
    %c9_59 = arith.constant 9 : index
    %c0_60 = arith.constant 0 : index
    %c0_61 = arith.constant 0 : index
    %62 = vector.load %arg4[%c9_59, %c0_60, %c0_61] : memref<11x128x128xf32, #tpu.memory_space<vmem>>, vector<1x128x128xf32>
    %63 = vector.shape_cast %62 : vector<1x128x128xf32> to vector<128x128xf32>
    %cst_62 = arith.constant dense<0.000000e+00> : vector<52x128xf32>
    %64 = tpu.matmul %61, %63, %cst_62 {dimension_numbers = #tpu.dot_dimension_numbers<[1], [0], [0], [1], [0, 0, 1, 1], [], []>} : vector<52x128xf32>, vector<128x128xf32>, vector<52x128xf32> -> vector<52x128xf32>
    %65 = arith.addf %60, %64 : vector<52x128xf32>
    %c11 = arith.constant 11 : index
    %c0_63 = arith.constant 0 : index
    %66 = vector.load %arg11[%c11, %c0_63] : memref<64x128xf32, #tpu.memory_space<vmem>>, vector<52x128xf32>
    %c10_64 = arith.constant 10 : index
    %c0_65 = arith.constant 0 : index
    %c0_66 = arith.constant 0 : index
    %67 = vector.load %arg4[%c10_64, %c0_65, %c0_66] : memref<11x128x128xf32, #tpu.memory_space<vmem>>, vector<1x128x128xf32>
    %68 = vector.shape_cast %67 : vector<1x128x128xf32> to vector<128x128xf32>
    %cst_67 = arith.constant dense<0.000000e+00> : vector<52x128xf32>
    %69 = tpu.matmul %66, %68, %cst_67 {dimension_numbers = #tpu.dot_dimension_numbers<[1], [0], [0], [1], [0, 0, 1, 1], [], []>} : vector<52x128xf32>, vector<128x128xf32>, vector<52x128xf32> -> vector<52x128xf32>
    %70 = arith.addf %65, %69 : vector<52x128xf32>
    %71 = vector.shape_cast %12 : vector<128xf32> to vector<1x128xf32>
    %72 = vector.broadcast %71 : vector<1x128xf32> to vector<52x128xf32>
    %73 = arith.mulf %70, %72 : vector<52x128xf32>
    %74 = vector.shape_cast %14 : vector<128xf32> to vector<1x128xf32>
    %75 = vector.broadcast %74 : vector<1x128xf32> to vector<52x128xf32>
    %76 = arith.addf %73, %75 : vector<52x128xf32>
    %cst_68 = arith.constant 0.000000e+00 : f32
    %77 = vector.broadcast %cst_68 : f32 to vector<52x128xf32>
    %78 = arith.maximumf %76, %77 : vector<52x128xf32>
    %c0_69 = arith.constant 0 : index
    %c0_70 = arith.constant 0 : index
    %79 = vector.load %arg12[%c0_69, %c0_70] : memref<52x128xf32, #tpu.memory_space<vmem>>, vector<52x128xf32>
    tpu.vector_store %arg12[%c0_69, %c0_70], %78 {strides = array<i32>} : memref<52x128xf32, #tpu.memory_space<vmem>>, vector<52x128xf32>,
    %80 = arith.extui %3 : i1 to i32
    %c0_i32_71 = arith.constant 0 : i32
    %81 = arith.cmpi ne, %80, %c0_i32_71 : i32
    scf.if %81 {
      %c0_i32_231 = arith.constant 0 : i32
      %240 = arith.addi %10, %c0_i32_231 : i32
      %241 = tpu.iota {dimensions = array<i32: 0>} : vector<52x1xi32>
      %242 = vector.broadcast %240 : i32 to vector<52x1xi32>
      %243 = arith.addi %242, %241 : vector<52x1xi32>
      %c0_i32_232 = arith.constant 0 : i32
      %244 = vector.broadcast %c0_i32_232 : i32 to vector<52x1xi32>
      %245 = arith.cmpi sge, %243, %244 : vector<52x1xi32>
      %c16_i32 = arith.constant 16 : i32
      %246 = vector.broadcast %c16_i32 : i32 to vector<52x1xi32>
      %247 = arith.cmpi slt, %243, %246 : vector<52x1xi32>
      %248 = arith.andi %245, %247 : vector<52x1xi1>
      %cst_233 = arith.constant 0.000000e+00 : f32
      %249 = vector.shape_cast %248 : vector<52x1xi1> to vector<52x1xi1>
      %250 = vector.broadcast %249 : vector<52x1xi1> to vector<52x128xi1>
      %251 = vector.broadcast %cst_233 : f32 to vector<52x128xf32>
      %252 = arith.select %250, %78, %251 : vector<52x128xi1>, vector<52x128xf32>
      %c0_234 = arith.constant 0 : index
      %c0_235 = arith.constant 0 : index
      %253 = vector.load %arg12[%c0_234, %c0_235] : memref<52x128xf32, #tpu.memory_space<vmem>>, vector<52x128xf32>
      tpu.vector_store %arg12[%c0_234, %c0_235], %252 {strides = array<i32>} : memref<52x128xf32, #tpu.memory_space<vmem>>, vector<52x128xf32>,
    } else {
    }
    %c5_i32 = arith.constant 5 : i32
    %82 = arith.subi %0, %c5_i32 : i32
    %c1_72 = arith.constant 1 : index
    %c0_73 = arith.constant 0 : index
    %83 = vector.load %arg8[%c1_72, %c0_73] : memref<4x128xf32, #tpu.memory_space<vmem>>, vector<1x128xf32>
    %84 = vector.shape_cast %83 : vector<1x128xf32> to vector<128xf32>
    %c1_74 = arith.constant 1 : index
    %c0_75 = arith.constant 0 : index
    %85 = vector.load %arg9[%c1_74, %c0_75] : memref<4x128xf32, #tpu.memory_space<vmem>>, vector<1x128xf32>
    %86 = vector.shape_cast %85 : vector<1x128xf32> to vector<128xf32>
    %cst_76 = arith.constant 0.000000e+00 : f32
    %87 = vector.broadcast %cst_76 : f32 to vector<42x128xf32>
    %c0_77 = arith.constant 0 : index
    %c0_78 = arith.constant 0 : index
    %88 = vector.load %arg12[%c0_77, %c0_78] : memref<52x128xf32, #tpu.memory_space<vmem>>, vector<42x128xf32>
    %c0_79 = arith.constant 0 : index
    %c0_80 = arith.constant 0 : index
    %c0_81 = arith.constant 0 : index
    %89 = vector.load %arg5[%c0_79, %c0_80, %c0_81] : memref<11x128x128xf32, #tpu.memory_space<vmem>>, vector<1x128x128xf32>
    %90 = vector.shape_cast %89 : vector<1x128x128xf32> to vector<128x128xf32>
    %cst_82 = arith.constant dense<0.000000e+00> : vector<42x128xf32>
    %91 = tpu.matmul %88, %90, %cst_82 {dimension_numbers = #tpu.dot_dimension_numbers<[1], [0], [0], [1], [0, 0, 1, 1], [], []>} : vector<42x128xf32>, vector<128x128xf32>, vector<42x128xf32> -> vector<42x128xf32>
    %92 = arith.addf %87, %91 : vector<42x128xf32>
    %c1_83 = arith.constant 1 : index
    %c0_84 = arith.constant 0 : index
    %93 = vector.load %arg12[%c1_83, %c0_84] : memref<52x128xf32, #tpu.memory_space<vmem>>, vector<42x128xf32>
    %c1_85 = arith.constant 1 : index
    %c0_86 = arith.constant 0 : index
    %c0_87 = arith.constant 0 : index
    %94 = vector.load %arg5[%c1_85, %c0_86, %c0_87] : memref<11x128x128xf32, #tpu.memory_space<vmem>>, vector<1x128x128xf32>
    %95 = vector.shape_cast %94 : vector<1x128x128xf32> to vector<128x128xf32>
    %cst_88 = arith.constant dense<0.000000e+00> : vector<42x128xf32>
    %96 = tpu.matmul %93, %95, %cst_88 {dimension_numbers = #tpu.dot_dimension_numbers<[1], [0], [0], [1], [0, 0, 1, 1], [], []>} : vector<42x128xf32>, vector<128x128xf32>, vector<42x128xf32> -> vector<42x128xf32>
    %97 = arith.addf %92, %96 : vector<42x128xf32>
    %c2_89 = arith.constant 2 : index
    %c0_90 = arith.constant 0 : index
    %98 = vector.load %arg12[%c2_89, %c0_90] : memref<52x128xf32, #tpu.memory_space<vmem>>, vector<42x128xf32>
    %c2_91 = arith.constant 2 : index
    %c0_92 = arith.constant 0 : index
    %c0_93 = arith.constant 0 : index
    %99 = vector.load %arg5[%c2_91, %c0_92, %c0_93] : memref<11x128x128xf32, #tpu.memory_space<vmem>>, vector<1x128x128xf32>
    %100 = vector.shape_cast %99 : vector<1x128x128xf32> to vector<128x128xf32>
    %cst_94 = arith.constant dense<0.000000e+00> : vector<42x128xf32>
    %101 = tpu.matmul %98, %100, %cst_94 {dimension_numbers = #tpu.dot_dimension_numbers<[1], [0], [0], [1], [0, 0, 1, 1], [], []>} : vector<42x128xf32>, vector<128x128xf32>, vector<42x128xf32> -> vector<42x128xf32>
    %102 = arith.addf %97, %101 : vector<42x128xf32>
    %c3_95 = arith.constant 3 : index
    %c0_96 = arith.constant 0 : index
    %103 = vector.load %arg12[%c3_95, %c0_96] : memref<52x128xf32, #tpu.memory_space<vmem>>, vector<42x128xf32>
    %c3_97 = arith.constant 3 : index
    %c0_98 = arith.constant 0 : index
    %c0_99 = arith.constant 0 : index
    %104 = vector.load %arg5[%c3_97, %c0_98, %c0_99] : memref<11x128x128xf32, #tpu.memory_space<vmem>>, vector<1x128x128xf32>
    %105 = vector.shape_cast %104 : vector<1x128x128xf32> to vector<128x128xf32>
    %cst_100 = arith.constant dense<0.000000e+00> : vector<42x128xf32>
    %106 = tpu.matmul %103, %105, %cst_100 {dimension_numbers = #tpu.dot_dimension_numbers<[1], [0], [0], [1], [0, 0, 1, 1], [], []>} : vector<42x128xf32>, vector<128x128xf32>, vector<42x128xf32> -> vector<42x128xf32>
    %107 = arith.addf %102, %106 : vector<42x128xf32>
    %c4_101 = arith.constant 4 : index
    %c0_102 = arith.constant 0 : index
    %108 = vector.load %arg12[%c4_101, %c0_102] : memref<52x128xf32, #tpu.memory_space<vmem>>, vector<42x128xf32>
    %c4_103 = arith.constant 4 : index
    %c0_104 = arith.constant 0 : index
    %c0_105 = arith.constant 0 : index
    %109 = vector.load %arg5[%c4_103, %c0_104, %c0_105] : memref<11x128x128xf32, #tpu.memory_space<vmem>>, vector<1x128x128xf32>
    %110 = vector.shape_cast %109 : vector<1x128x128xf32> to vector<128x128xf32>
    %cst_106 = arith.constant dense<0.000000e+00> : vector<42x128xf32>
    %111 = tpu.matmul %108, %110, %cst_106 {dimension_numbers = #tpu.dot_dimension_numbers<[1], [0], [0], [1], [0, 0, 1, 1], [], []>} : vector<42x128xf32>, vector<128x128xf32>, vector<42x128xf32> -> vector<42x128xf32>
    %112 = arith.addf %107, %111 : vector<42x128xf32>
    %c5_107 = arith.constant 5 : index
    %c0_108 = arith.constant 0 : index
    %113 = vector.load %arg12[%c5_107, %c0_108] : memref<52x128xf32, #tpu.memory_space<vmem>>, vector<42x128xf32>
    %c5_109 = arith.constant 5 : index
    %c0_110 = arith.constant 0 : index
    %c0_111 = arith.constant 0 : index
    %114 = vector.load %arg5[%c5_109, %c0_110, %c0_111] : memref<11x128x128xf32, #tpu.memory_space<vmem>>, vector<1x128x128xf32>
    %115 = vector.shape_cast %114 : vector<1x128x128xf32> to vector<128x128xf32>
    %cst_112 = arith.constant dense<0.000000e+00> : vector<42x128xf32>
    %116 = tpu.matmul %113, %115, %cst_112 {dimension_numbers = #tpu.dot_dimension_numbers<[1], [0], [0], [1], [0, 0, 1, 1], [], []>} : vector<42x128xf32>, vector<128x128xf32>, vector<42x128xf32> -> vector<42x128xf32>
    %117 = arith.addf %112, %116 : vector<42x128xf32>
    %c6_113 = arith.constant 6 : index
    %c0_114 = arith.constant 0 : index
    %118 = vector.load %arg12[%c6_113, %c0_114] : memref<52x128xf32, #tpu.memory_space<vmem>>, vector<42x128xf32>
    %c6_115 = arith.constant 6 : index
    %c0_116 = arith.constant 0 : index
    %c0_117 = arith.constant 0 : index
    %119 = vector.load %arg5[%c6_115, %c0_116, %c0_117] : memref<11x128x128xf32, #tpu.memory_space<vmem>>, vector<1x128x128xf32>
    %120 = vector.shape_cast %119 : vector<1x128x128xf32> to vector<128x128xf32>
    %cst_118 = arith.constant dense<0.000000e+00> : vector<42x128xf32>
    %121 = tpu.matmul %118, %120, %cst_118 {dimension_numbers = #tpu.dot_dimension_numbers<[1], [0], [0], [1], [0, 0, 1, 1], [], []>} : vector<42x128xf32>, vector<128x128xf32>, vector<42x128xf32> -> vector<42x128xf32>
    %122 = arith.addf %117, %121 : vector<42x128xf32>
    %c7_119 = arith.constant 7 : index
    %c0_120 = arith.constant 0 : index
    %123 = vector.load %arg12[%c7_119, %c0_120] : memref<52x128xf32, #tpu.memory_space<vmem>>, vector<42x128xf32>
    %c7_121 = arith.constant 7 : index
    %c0_122 = arith.constant 0 : index
    %c0_123 = arith.constant 0 : index
    %124 = vector.load %arg5[%c7_121, %c0_122, %c0_123] : memref<11x128x128xf32, #tpu.memory_space<vmem>>, vector<1x128x128xf32>
    %125 = vector.shape_cast %124 : vector<1x128x128xf32> to vector<128x128xf32>
    %cst_124 = arith.constant dense<0.000000e+00> : vector<42x128xf32>
    %126 = tpu.matmul %123, %125, %cst_124 {dimension_numbers = #tpu.dot_dimension_numbers<[1], [0], [0], [1], [0, 0, 1, 1], [], []>} : vector<42x128xf32>, vector<128x128xf32>, vector<42x128xf32> -> vector<42x128xf32>
    %127 = arith.addf %122, %126 : vector<42x128xf32>
    %c8_125 = arith.constant 8 : index
    %c0_126 = arith.constant 0 : index
    %128 = vector.load %arg12[%c8_125, %c0_126] : memref<52x128xf32, #tpu.memory_space<vmem>>, vector<42x128xf32>
    %c8_127 = arith.constant 8 : index
    %c0_128 = arith.constant 0 : index
    %c0_129 = arith.constant 0 : index
    %129 = vector.load %arg5[%c8_127, %c0_128, %c0_129] : memref<11x128x128xf32, #tpu.memory_space<vmem>>, vector<1x128x128xf32>
    %130 = vector.shape_cast %129 : vector<1x128x128xf32> to vector<128x128xf32>
    %cst_130 = arith.constant dense<0.000000e+00> : vector<42x128xf32>
    %131 = tpu.matmul %128, %130, %cst_130 {dimension_numbers = #tpu.dot_dimension_numbers<[1], [0], [0], [1], [0, 0, 1, 1], [], []>} : vector<42x128xf32>, vector<128x128xf32>, vector<42x128xf32> -> vector<42x128xf32>
    %132 = arith.addf %127, %131 : vector<42x128xf32>
    %c9_131 = arith.constant 9 : index
    %c0_132 = arith.constant 0 : index
    %133 = vector.load %arg12[%c9_131, %c0_132] : memref<52x128xf32, #tpu.memory_space<vmem>>, vector<42x128xf32>
    %c9_133 = arith.constant 9 : index
    %c0_134 = arith.constant 0 : index
    %c0_135 = arith.constant 0 : index
    %134 = vector.load %arg5[%c9_133, %c0_134, %c0_135] : memref<11x128x128xf32, #tpu.memory_space<vmem>>, vector<1x128x128xf32>
    %135 = vector.shape_cast %134 : vector<1x128x128xf32> to vector<128x128xf32>
    %cst_136 = arith.constant dense<0.000000e+00> : vector<42x128xf32>
    %136 = tpu.matmul %133, %135, %cst_136 {dimension_numbers = #tpu.dot_dimension_numbers<[1], [0], [0], [1], [0, 0, 1, 1], [], []>} : vector<42x128xf32>, vector<128x128xf32>, vector<42x128xf32> -> vector<42x128xf32>
    %137 = arith.addf %132, %136 : vector<42x128xf32>
    %c10_137 = arith.constant 10 : index
    %c0_138 = arith.constant 0 : index
    %138 = vector.load %arg12[%c10_137, %c0_138] : memref<52x128xf32, #tpu.memory_space<vmem>>, vector<42x128xf32>
    %c10_139 = arith.constant 10 : index
    %c0_140 = arith.constant 0 : index
    %c0_141 = arith.constant 0 : index
    %139 = vector.load %arg5[%c10_139, %c0_140, %c0_141] : memref<11x128x128xf32, #tpu.memory_space<vmem>>, vector<1x128x128xf32>
    %140 = vector.shape_cast %139 : vector<1x128x128xf32> to vector<128x128xf32>
    %cst_142 = arith.constant dense<0.000000e+00> : vector<42x128xf32>
    %141 = tpu.matmul %138, %140, %cst_142 {dimension_numbers = #tpu.dot_dimension_numbers<[1], [0], [0], [1], [0, 0, 1, 1], [], []>} : vector<42x128xf32>, vector<128x128xf32>, vector<42x128xf32> -> vector<42x128xf32>
    %142 = arith.addf %137, %141 : vector<42x128xf32>
    %143 = vector.shape_cast %84 : vector<128xf32> to vector<1x128xf32>
    %144 = vector.broadcast %143 : vector<1x128xf32> to vector<42x128xf32>
    %145 = arith.mulf %142, %144 : vector<42x128xf32>
    %146 = vector.shape_cast %86 : vector<128xf32> to vector<1x128xf32>
    %147 = vector.broadcast %146 : vector<1x128xf32> to vector<42x128xf32>
    %148 = arith.addf %145, %147 : vector<42x128xf32>
    %cst_143 = arith.constant 0.000000e+00 : f32
    %149 = vector.broadcast %cst_143 : f32 to vector<42x128xf32>
    %150 = arith.maximumf %148, %149 : vector<42x128xf32>
    %c0_144 = arith.constant 0 : index
    %c0_145 = arith.constant 0 : index
    %151 = vector.load %arg13[%c0_144, %c0_145] : memref<42x128xf32, #tpu.memory_space<vmem>>, vector<42x128xf32>
    tpu.vector_store %arg13[%c0_144, %c0_145], %150 {strides = array<i32>} : memref<42x128xf32, #tpu.memory_space<vmem>>, vector<42x128xf32>,
    %152 = arith.extui %3 : i1 to i32
    %c0_i32_146 = arith.constant 0 : i32
    %153 = arith.cmpi ne, %152, %c0_i32_146 : i32
    scf.if %153 {
      %c0_i32_231 = arith.constant 0 : i32
      %240 = arith.addi %82, %c0_i32_231 : i32
      %241 = tpu.iota {dimensions = array<i32: 0>} : vector<42x1xi32>
      %242 = vector.broadcast %240 : i32 to vector<42x1xi32>
      %243 = arith.addi %242, %241 : vector<42x1xi32>
      %c0_i32_232 = arith.constant 0 : i32
      %244 = vector.broadcast %c0_i32_232 : i32 to vector<42x1xi32>
      %245 = arith.cmpi sge, %243, %244 : vector<42x1xi32>
      %c16_i32 = arith.constant 16 : i32
      %246 = vector.broadcast %c16_i32 : i32 to vector<42x1xi32>
      %247 = arith.cmpi slt, %243, %246 : vector<42x1xi32>
      %248 = arith.andi %245, %247 : vector<42x1xi1>
      %cst_233 = arith.constant 0.000000e+00 : f32
      %249 = vector.shape_cast %248 : vector<42x1xi1> to vector<42x1xi1>
      %250 = vector.broadcast %249 : vector<42x1xi1> to vector<42x128xi1>
      %251 = vector.broadcast %cst_233 : f32 to vector<42x128xf32>
      %252 = arith.select %250, %150, %251 : vector<42x128xi1>, vector<42x128xf32>
      %c0_234 = arith.constant 0 : index
      %c0_235 = arith.constant 0 : index
      %253 = vector.load %arg13[%c0_234, %c0_235] : memref<42x128xf32, #tpu.memory_space<vmem>>, vector<42x128xf32>
      tpu.vector_store %arg13[%c0_234, %c0_235], %252 {strides = array<i32>} : memref<42x128xf32, #tpu.memory_space<vmem>>, vector<42x128xf32>,
    } else {
    }
    %c2_147 = arith.constant 2 : index
    %c0_148 = arith.constant 0 : index
    %154 = vector.load %arg8[%c2_147, %c0_148] : memref<4x128xf32, #tpu.memory_space<vmem>>, vector<1x128xf32>
    %155 = vector.shape_cast %154 : vector<1x128xf32> to vector<128xf32>
    %c2_149 = arith.constant 2 : index
    %c0_150 = arith.constant 0 : index
    %156 = vector.load %arg9[%c2_149, %c0_150] : memref<4x128xf32, #tpu.memory_space<vmem>>, vector<1x128xf32>
    %157 = vector.shape_cast %156 : vector<1x128xf32> to vector<128xf32>
    %cst_151 = arith.constant 0.000000e+00 : f32
    %158 = vector.broadcast %cst_151 : f32 to vector<32x128xf32>
    %c0_152 = arith.constant 0 : index
    %c0_153 = arith.constant 0 : index
    %159 = vector.load %arg13[%c0_152, %c0_153] : memref<42x128xf32, #tpu.memory_space<vmem>>, vector<32x128xf32>
    %c0_154 = arith.constant 0 : index
    %c0_155 = arith.constant 0 : index
    %c0_156 = arith.constant 0 : index
    %160 = vector.load %arg6[%c0_154, %c0_155, %c0_156] : memref<11x128x128xf32, #tpu.memory_space<vmem>>, vector<1x128x128xf32>
    %161 = vector.shape_cast %160 : vector<1x128x128xf32> to vector<128x128xf32>
    %cst_157 = arith.constant dense<0.000000e+00> : vector<32x128xf32>
    %162 = tpu.matmul %159, %161, %cst_157 {dimension_numbers = #tpu.dot_dimension_numbers<[1], [0], [0], [1], [0, 0, 1, 1], [], []>} : vector<32x128xf32>, vector<128x128xf32>, vector<32x128xf32> -> vector<32x128xf32>
    %163 = arith.addf %158, %162 : vector<32x128xf32>
    %c1_158 = arith.constant 1 : index
    %c0_159 = arith.constant 0 : index
    %164 = vector.load %arg13[%c1_158, %c0_159] : memref<42x128xf32, #tpu.memory_space<vmem>>, vector<32x128xf32>
    %c1_160 = arith.constant 1 : index
    %c0_161 = arith.constant 0 : index
    %c0_162 = arith.constant 0 : index
    %165 = vector.load %arg6[%c1_160, %c0_161, %c0_162] : memref<11x128x128xf32, #tpu.memory_space<vmem>>, vector<1x128x128xf32>
    %166 = vector.shape_cast %165 : vector<1x128x128xf32> to vector<128x128xf32>
    %cst_163 = arith.constant dense<0.000000e+00> : vector<32x128xf32>
    %167 = tpu.matmul %164, %166, %cst_163 {dimension_numbers = #tpu.dot_dimension_numbers<[1], [0], [0], [1], [0, 0, 1, 1], [], []>} : vector<32x128xf32>, vector<128x128xf32>, vector<32x128xf32> -> vector<32x128xf32>
    %168 = arith.addf %163, %167 : vector<32x128xf32>
    %c2_164 = arith.constant 2 : index
    %c0_165 = arith.constant 0 : index
    %169 = vector.load %arg13[%c2_164, %c0_165] : memref<42x128xf32, #tpu.memory_space<vmem>>, vector<32x128xf32>
    %c2_166 = arith.constant 2 : index
    %c0_167 = arith.constant 0 : index
    %c0_168 = arith.constant 0 : index
    %170 = vector.load %arg6[%c2_166, %c0_167, %c0_168] : memref<11x128x128xf32, #tpu.memory_space<vmem>>, vector<1x128x128xf32>
    %171 = vector.shape_cast %170 : vector<1x128x128xf32> to vector<128x128xf32>
    %cst_169 = arith.constant dense<0.000000e+00> : vector<32x128xf32>
    %172 = tpu.matmul %169, %171, %cst_169 {dimension_numbers = #tpu.dot_dimension_numbers<[1], [0], [0], [1], [0, 0, 1, 1], [], []>} : vector<32x128xf32>, vector<128x128xf32>, vector<32x128xf32> -> vector<32x128xf32>
    %173 = arith.addf %168, %172 : vector<32x128xf32>
    %c3_170 = arith.constant 3 : index
    %c0_171 = arith.constant 0 : index
    %174 = vector.load %arg13[%c3_170, %c0_171] : memref<42x128xf32, #tpu.memory_space<vmem>>, vector<32x128xf32>
    %c3_172 = arith.constant 3 : index
    %c0_173 = arith.constant 0 : index
    %c0_174 = arith.constant 0 : index
    %175 = vector.load %arg6[%c3_172, %c0_173, %c0_174] : memref<11x128x128xf32, #tpu.memory_space<vmem>>, vector<1x128x128xf32>
    %176 = vector.shape_cast %175 : vector<1x128x128xf32> to vector<128x128xf32>
    %cst_175 = arith.constant dense<0.000000e+00> : vector<32x128xf32>
    %177 = tpu.matmul %174, %176, %cst_175 {dimension_numbers = #tpu.dot_dimension_numbers<[1], [0], [0], [1], [0, 0, 1, 1], [], []>} : vector<32x128xf32>, vector<128x128xf32>, vector<32x128xf32> -> vector<32x128xf32>
    %178 = arith.addf %173, %177 : vector<32x128xf32>
    %c4_176 = arith.constant 4 : index
    %c0_177 = arith.constant 0 : index
    %179 = vector.load %arg13[%c4_176, %c0_177] : memref<42x128xf32, #tpu.memory_space<vmem>>, vector<32x128xf32>
    %c4_178 = arith.constant 4 : index
    %c0_179 = arith.constant 0 : index
    %c0_180 = arith.constant 0 : index
    %180 = vector.load %arg6[%c4_178, %c0_179, %c0_180] : memref<11x128x128xf32, #tpu.memory_space<vmem>>, vector<1x128x128xf32>
    %181 = vector.shape_cast %180 : vector<1x128x128xf32> to vector<128x128xf32>
    %cst_181 = arith.constant dense<0.000000e+00> : vector<32x128xf32>
    %182 = tpu.matmul %179, %181, %cst_181 {dimension_numbers = #tpu.dot_dimension_numbers<[1], [0], [0], [1], [0, 0, 1, 1], [], []>} : vector<32x128xf32>, vector<128x128xf32>, vector<32x128xf32> -> vector<32x128xf32>
    %183 = arith.addf %178, %182 : vector<32x128xf32>
    %c5_182 = arith.constant 5 : index
    %c0_183 = arith.constant 0 : index
    %184 = vector.load %arg13[%c5_182, %c0_183] : memref<42x128xf32, #tpu.memory_space<vmem>>, vector<32x128xf32>
    %c5_184 = arith.constant 5 : index
    %c0_185 = arith.constant 0 : index
    %c0_186 = arith.constant 0 : index
    %185 = vector.load %arg6[%c5_184, %c0_185, %c0_186] : memref<11x128x128xf32, #tpu.memory_space<vmem>>, vector<1x128x128xf32>
    %186 = vector.shape_cast %185 : vector<1x128x128xf32> to vector<128x128xf32>
    %cst_187 = arith.constant dense<0.000000e+00> : vector<32x128xf32>
    %187 = tpu.matmul %184, %186, %cst_187 {dimension_numbers = #tpu.dot_dimension_numbers<[1], [0], [0], [1], [0, 0, 1, 1], [], []>} : vector<32x128xf32>, vector<128x128xf32>, vector<32x128xf32> -> vector<32x128xf32>
    %188 = arith.addf %183, %187 : vector<32x128xf32>
    %c6_188 = arith.constant 6 : index
    %c0_189 = arith.constant 0 : index
    %189 = vector.load %arg13[%c6_188, %c0_189] : memref<42x128xf32, #tpu.memory_space<vmem>>, vector<32x128xf32>
    %c6_190 = arith.constant 6 : index
    %c0_191 = arith.constant 0 : index
    %c0_192 = arith.constant 0 : index
    %190 = vector.load %arg6[%c6_190, %c0_191, %c0_192] : memref<11x128x128xf32, #tpu.memory_space<vmem>>, vector<1x128x128xf32>
    %191 = vector.shape_cast %190 : vector<1x128x128xf32> to vector<128x128xf32>
    %cst_193 = arith.constant dense<0.000000e+00> : vector<32x128xf32>
    %192 = tpu.matmul %189, %191, %cst_193 {dimension_numbers = #tpu.dot_dimension_numbers<[1], [0], [0], [1], [0, 0, 1, 1], [], []>} : vector<32x128xf32>, vector<128x128xf32>, vector<32x128xf32> -> vector<32x128xf32>
    %193 = arith.addf %188, %192 : vector<32x128xf32>
    %c7_194 = arith.constant 7 : index
    %c0_195 = arith.constant 0 : index
    %194 = vector.load %arg13[%c7_194, %c0_195] : memref<42x128xf32, #tpu.memory_space<vmem>>, vector<32x128xf32>
    %c7_196 = arith.constant 7 : index
    %c0_197 = arith.constant 0 : index
    %c0_198 = arith.constant 0 : index
    %195 = vector.load %arg6[%c7_196, %c0_197, %c0_198] : memref<11x128x128xf32, #tpu.memory_space<vmem>>, vector<1x128x128xf32>
    %196 = vector.shape_cast %195 : vector<1x128x128xf32> to vector<128x128xf32>
    %cst_199 = arith.constant dense<0.000000e+00> : vector<32x128xf32>
    %197 = tpu.matmul %194, %196, %cst_199 {dimension_numbers = #tpu.dot_dimension_numbers<[1], [0], [0], [1], [0, 0, 1, 1], [], []>} : vector<32x128xf32>, vector<128x128xf32>, vector<32x128xf32> -> vector<32x128xf32>
    %198 = arith.addf %193, %197 : vector<32x128xf32>
    %c8_200 = arith.constant 8 : index
    %c0_201 = arith.constant 0 : index
    %199 = vector.load %arg13[%c8_200, %c0_201] : memref<42x128xf32, #tpu.memory_space<vmem>>, vector<32x128xf32>
    %c8_202 = arith.constant 8 : index
    %c0_203 = arith.constant 0 : index
    %c0_204 = arith.constant 0 : index
    %200 = vector.load %arg6[%c8_202, %c0_203, %c0_204] : memref<11x128x128xf32, #tpu.memory_space<vmem>>, vector<1x128x128xf32>
    %201 = vector.shape_cast %200 : vector<1x128x128xf32> to vector<128x128xf32>
    %cst_205 = arith.constant dense<0.000000e+00> : vector<32x128xf32>
    %202 = tpu.matmul %199, %201, %cst_205 {dimension_numbers = #tpu.dot_dimension_numbers<[1], [0], [0], [1], [0, 0, 1, 1], [], []>} : vector<32x128xf32>, vector<128x128xf32>, vector<32x128xf32> -> vector<32x128xf32>
    %203 = arith.addf %198, %202 : vector<32x128xf32>
    %c9_206 = arith.constant 9 : index
    %c0_207 = arith.constant 0 : index
    %204 = vector.load %arg13[%c9_206, %c0_207] : memref<42x128xf32, #tpu.memory_space<vmem>>, vector<32x128xf32>
    %c9_208 = arith.constant 9 : index
    %c0_209 = arith.constant 0 : index
    %c0_210 = arith.constant 0 : index
    %205 = vector.load %arg6[%c9_208, %c0_209, %c0_210] : memref<11x128x128xf32, #tpu.memory_space<vmem>>, vector<1x128x128xf32>
    %206 = vector.shape_cast %205 : vector<1x128x128xf32> to vector<128x128xf32>
    %cst_211 = arith.constant dense<0.000000e+00> : vector<32x128xf32>
    %207 = tpu.matmul %204, %206, %cst_211 {dimension_numbers = #tpu.dot_dimension_numbers<[1], [0], [0], [1], [0, 0, 1, 1], [], []>} : vector<32x128xf32>, vector<128x128xf32>, vector<32x128xf32> -> vector<32x128xf32>
    %208 = arith.addf %203, %207 : vector<32x128xf32>
    %c10_212 = arith.constant 10 : index
    %c0_213 = arith.constant 0 : index
    %209 = vector.load %arg13[%c10_212, %c0_213] : memref<42x128xf32, #tpu.memory_space<vmem>>, vector<32x128xf32>
    %c10_214 = arith.constant 10 : index
    %c0_215 = arith.constant 0 : index
    %c0_216 = arith.constant 0 : index
    %210 = vector.load %arg6[%c10_214, %c0_215, %c0_216] : memref<11x128x128xf32, #tpu.memory_space<vmem>>, vector<1x128x128xf32>
    %211 = vector.shape_cast %210 : vector<1x128x128xf32> to vector<128x128xf32>
    %cst_217 = arith.constant dense<0.000000e+00> : vector<32x128xf32>
    %212 = tpu.matmul %209, %211, %cst_217 {dimension_numbers = #tpu.dot_dimension_numbers<[1], [0], [0], [1], [0, 0, 1, 1], [], []>} : vector<32x128xf32>, vector<128x128xf32>, vector<32x128xf32> -> vector<32x128xf32>
    %213 = arith.addf %208, %212 : vector<32x128xf32>
    %214 = vector.shape_cast %155 : vector<128xf32> to vector<1x128xf32>
    %215 = vector.broadcast %214 : vector<1x128xf32> to vector<32x128xf32>
    %216 = arith.mulf %213, %215 : vector<32x128xf32>
    %217 = vector.shape_cast %157 : vector<128xf32> to vector<1x128xf32>
    %218 = vector.broadcast %217 : vector<1x128xf32> to vector<32x128xf32>
    %219 = arith.addf %216, %218 : vector<32x128xf32>
    %c16 = arith.constant 16 : index
    %c0_218 = arith.constant 0 : index
    %220 = vector.load %arg11[%c16, %c0_218] : memref<64x128xf32, #tpu.memory_space<vmem>>, vector<32x128xf32>
    %c0_219 = arith.constant 0 : index
    %c0_220 = arith.constant 0 : index
    %c0_221 = arith.constant 0 : index
    %221 = vector.load %arg7[%c0_219, %c0_220, %c0_221] : memref<1x128x128xf32, #tpu.memory_space<vmem>>, vector<1x128x128xf32>
    %222 = vector.shape_cast %221 : vector<1x128x128xf32> to vector<128x128xf32>
    %cst_222 = arith.constant dense<0.000000e+00> : vector<32x128xf32>
    %223 = tpu.matmul %220, %222, %cst_222 {dimension_numbers = #tpu.dot_dimension_numbers<[1], [0], [0], [1], [0, 0, 1, 1], [], []>} : vector<32x128xf32>, vector<128x128xf32>, vector<32x128xf32> -> vector<32x128xf32>
    %c3_223 = arith.constant 3 : index
    %c0_224 = arith.constant 0 : index
    %224 = vector.load %arg8[%c3_223, %c0_224] : memref<4x128xf32, #tpu.memory_space<vmem>>, vector<1x128xf32>
    %225 = vector.shape_cast %224 : vector<1x128xf32> to vector<128xf32>
    %226 = vector.shape_cast %225 : vector<128xf32> to vector<1x128xf32>
    %227 = vector.broadcast %226 : vector<1x128xf32> to vector<32x128xf32>
    %228 = arith.mulf %223, %227 : vector<32x128xf32>
    %c3_225 = arith.constant 3 : index
    %c0_226 = arith.constant 0 : index
    %229 = vector.load %arg9[%c3_225, %c0_226] : memref<4x128xf32, #tpu.memory_space<vmem>>, vector<1x128xf32>
    %230 = vector.shape_cast %229 : vector<1x128xf32> to vector<128xf32>
    %231 = vector.shape_cast %230 : vector<128xf32> to vector<1x128xf32>
    %232 = vector.broadcast %231 : vector<1x128xf32> to vector<32x128xf32>
    %233 = arith.addf %228, %232 : vector<32x128xf32>
    %234 = arith.addf %219, %233 : vector<32x128xf32>
    %cst_227 = arith.constant 0.000000e+00 : f32
    %235 = vector.broadcast %cst_227 : f32 to vector<32x128xf32>
    %236 = arith.maximumf %234, %235 : vector<32x128xf32>
    %c0_228 = arith.constant 0 : index
    %c0_229 = arith.constant 0 : index
    %c0_230 = arith.constant 0 : index
    %237 = vector.load %arg10[%c0_228, %c0_229, %c0_230] : memref<1x32x128xf32, #tpu.memory_space<vmem>>, vector<1x32x128xf32>
    %238 = vector.shape_cast %237 : vector<1x32x128xf32> to vector<32x128xf32>
    %239 = vector.shape_cast %236 : vector<32x128xf32> to vector<1x32x128xf32>
    tpu.vector_store %arg10[%c0_228, %c0_229, %c0_230], %239 {strides = array<i32>} : memref<1x32x128xf32, #tpu.memory_space<vmem>>, vector<1x32x128xf32>,
    return
  }
  func.func @transform_0(%arg0: i32, %arg1: i32) -> (i32, i32, i32) {
    %c0_i32 = arith.constant 0 : i32
    %c0_i32_0 = arith.constant 0 : i32
    return %arg0, %arg1, %c0_i32 : i32, i32, i32
  }
  func.func @transform_1(%arg0: i32, %arg1: i32) -> (i32, i32, i32) {
    %c1_i32 = arith.constant 1 : i32
    %0 = arith.addi %arg1, %c1_i32 : i32
    %c1_i32_0 = arith.constant 1 : i32
    %1 = arith.muli %0, %c1_i32_0 : i32
    %c0_i32 = arith.constant 0 : i32
    %c0_i32_1 = arith.constant 0 : i32
    return %arg0, %1, %c0_i32 : i32, i32, i32
  }
  func.func @transform_2(%arg0: i32, %arg1: i32) -> (i32, i32, i32) {
    %c0_i32 = arith.constant 0 : i32
    %c0_i32_0 = arith.constant 0 : i32
    %c0_i32_1 = arith.constant 0 : i32
    %c0_i32_2 = arith.constant 0 : i32
    return %c0_i32, %c0_i32_0, %c0_i32_1 : i32, i32, i32
  }
  func.func @transform_3(%arg0: i32, %arg1: i32) -> (i32, i32, i32) {
    %c0_i32 = arith.constant 0 : i32
    %c0_i32_0 = arith.constant 0 : i32
    %c0_i32_1 = arith.constant 0 : i32
    %c0_i32_2 = arith.constant 0 : i32
    return %c0_i32, %c0_i32_0, %c0_i32_1 : i32, i32, i32
  }
  func.func @transform_4(%arg0: i32, %arg1: i32) -> (i32, i32, i32) {
    %c0_i32 = arith.constant 0 : i32
    %c0_i32_0 = arith.constant 0 : i32
    %c0_i32_1 = arith.constant 0 : i32
    %c0_i32_2 = arith.constant 0 : i32
    return %c0_i32, %c0_i32_0, %c0_i32_1 : i32, i32, i32
  }
  func.func @transform_5(%arg0: i32, %arg1: i32) -> (i32, i32, i32) {
    %c0_i32 = arith.constant 0 : i32
    %c0_i32_0 = arith.constant 0 : i32
    %c0_i32_1 = arith.constant 0 : i32
    %c0_i32_2 = arith.constant 0 : i32
    return %c0_i32, %c0_i32_0, %c0_i32_1 : i32, i32, i32
  }
  func.func @transform_6(%arg0: i32, %arg1: i32) -> (i32, i32) {
    %c0_i32 = arith.constant 0 : i32
    %c0_i32_0 = arith.constant 0 : i32
    %c0_i32_1 = arith.constant 0 : i32
    return %c0_i32, %c0_i32_0 : i32, i32
  }
  func.func @transform_7(%arg0: i32, %arg1: i32) -> (i32, i32) {
    %c0_i32 = arith.constant 0 : i32
    %c0_i32_0 = arith.constant 0 : i32
    %c0_i32_1 = arith.constant 0 : i32
    return %c0_i32, %c0_i32_0 : i32, i32
  }
  func.func @transform_8(%arg0: i32, %arg1: i32) -> (i32, i32, i32) {
    %c0_i32 = arith.constant 0 : i32
    %c0_i32_0 = arith.constant 0 : i32
    return %arg0, %arg1, %c0_i32 : i32, i32, i32
  }
}

</mosaic_0001>

<bundles_post_ra>
// kernel: quartznet_block_forward.1
= control target key start
LH: loop header
LB: loop body
LE: loop exit
PB: predicated region body
PF: predicated region fallthrough
CT: control target
= control target key end

     0   :  { %s7684_s27 = smov 0   ;;  %s7686_s28 = smov 0   ;;  %s9905_s0 = inlined_call_operand.vmem [shape: f32[2,64,128], index: 0, kind: input, shape index: {}, may-alias: {0,1}]   ;;  %s9906_s1 = inlined_call_operand.vmem [shape: f32[2,64,128], index: 1, kind: input, shape index: {}, may-alias: {0,1}]   ;;  %s9907_s2 = inlined_call_operand.vmem [shape: f32[11,128,128], index: 2, kind: input, shape index: {}]   ;;  %s9908_s3 = inlined_call_operand.vmem [shape: f32[11,128,128], index: 3, kind: input, shape index: {}]   ;;  %s9909_s4 = inlined_call_operand.vmem [shape: f32[11,128,128], index: 4, kind: input, shape index: {}]   ;;  %s9910_s5 = inlined_call_operand.vmem [shape: f32[1,128,128], index: 5, kind: input, shape index: {}]   ;;  %s9911_s6 = inlined_call_operand.vmem [shape: f32[4,128], index: 6, kind: input, shape index: {}]   ;;  %s9912_s7 = inlined_call_operand.vmem [shape: f32[4,128], index: 7, kind: input, shape index: {}]   ;;  %s9913_s8 = inlined_call_operand.vmem [shape: f32[2,32,128], index: 8, kind: output, shape index: {}]  }
   0x1   :  { %s7688_s29 = smov 0  }
   0x2 LB: > { %s30_s30 = sadd.s32 1, %s7631_s28  ;;  %p4849_p0 = scmp.ge.s32.totalorder %s7635_s29, 1  ;;  %s7635_s29 = sphi %s7688_s29, %s18_s29   ;;  %s7631_s28 = sphi %s7686_s28, %s9915_s28   ;;  %s7627_s27 = sphi %s7684_s27, %s9914_s27  }
   0x3   : > { %p32_p1 = scmp.ge.s32.totalorder %s30_s30, 2  ;;  %p304_p2 = scmp.lt.s32.totalorder %s7635_s29, 3 }
   0x5   : > { %s9917_s30 = smov (%p32_p1, %s30_s30), 0  ;;  %p305_p3 = pnand %p4849_p0, %p304_p2 }
   0x6   : > { %p357_p4 = scmp.lt.s32.totalorder (!%p305_p3), %s7627_s27, 1 }
   0x7   : > { %308 = sbr.rel (%p305_p3) target bundleno = 1253 (0x4e5), region = 52 }
   0xc   : > { %v4871_v0 = vld [vmem:[%s9907_s2 + $0xf8] sm:$0xff]  ;;  %v7637_v2 = vmov 0.0   ;;  %v4870_v3 = vld [vmem:[%s9907_s2 + $0xf0] sm:$0xff]  ;;  %s9919_s27 = smov (!%p357_p4, %s7627_s27), 1  ;;  %v4869_v5 = vld [vmem:[%s9907_s2 + $0xe8] sm:$0xff]  ;;  %vm7638_vm0 = vmmov 0  }
   0xd   : > { %v433_v1 = vld [vmem:[%s9907_s2 + $0x78] sm:$0xff]  ;;  %6086 = vmatprep.subr.mxu0 %v7637_v2  ;;  %6139 = vmatprep.subr.mxu1 %v7637_v2  ;;  %v432_v4 = vld [vmem:[%s9907_s2 + $0x70] sm:$0xff]  ;;  %1934 = vst [vmem:[#allocation3] sm:$0xff] %v7637_v2  ;;  %1938 = vst [vmem:[#allocation3 + $0x20] sm:$0xff] %v7637_v2  ;;  %s5346_s21 = sshll.u32 %s9919_s27, 6  ;;  %s5349_s26 = sshll.u32 %s9919_s27, 5 }
   0xe   : > { %1939 = vst [vmem:[#allocation3 + $0x28] sm:$0xff] %v7637_v2  ;;  %3383 = vst [vmem:[#allocation4 + $0x18] sm:$0xff] %v7637_v2  ;;  %6087 = vmatpush3.msra.mxu0 %v4871_v0  ;;  %6140 = vmatpush3.msra.mxu1 %v433_v1  ;;  %v431_v6 = vld [vmem:[%s9907_s2 + $0x68] sm:$0xff]  ;;  %v4868_v7 = vld [vmem:[%s9907_s2 + $0xe0] sm:$0xff]  ;;  %s364_s14 = scalar_lea.vmem %s9905_s0, %s5346_s21  ;;  %s5348_s19 = sadd.s32 32, %s5346_s21 }
   0xf   : > { %3384 = vst [vmem:[#allocation4 + $0x20] sm:$0xff] %v7637_v2  ;;  %6088 = vmatprep.subr.mxu0 %v7637_v2  ;;  %6141 = vmatprep.subr.mxu1 %v7637_v2  ;;  %v430_v8 = vld [vmem:[%s9907_s2 + $0x60] sm:$0xff]  ;;  %v4867_v9 = vld [vmem:[%s9907_s2 + $0xd8] sm:$0xff]  ;;  %v4866_v11 = vld [vmem:[%s9907_s2 + $0xd0] sm:$0xff]  ;;  %s7783_s12 = scalar_lea.vmem %s9906_s1, %s5348_s19  ;;  %s386_s11 = scalar_lea.vmem %s9913_s8, %s5349_s26 }
  0x10   : > { %6089 = vmatpush3.msra.mxu0 %v4870_v3  ;;  %6142 = vmatpush3.msra.mxu1 %v432_v4  ;;  %v429_v10 = vld [vmem:[%s9907_s2 + $0x58] sm:$0xff]  ;;  %v428_v12 = vld [vmem:[%s9907_s2 + $0x50] sm:$0xff]  ;;  %v392_v13 = vld [vmem:[%s364_s14] sm:$0xff] }
  0x11   : > { %6090 = vmatprep.subr.mxu0 %v7637_v2  ;;  %6143 = vmatprep.subr.mxu1 %v7637_v2  ;;  %v7759_v14 = vld [vmem:[%s364_s14 + $0x8] sm:$0xff]  ;;  %396 = vst [vmem:[#allocation2] sm:$0xff] %v392_v13  ;;  %v4864_v17 = vld [vmem:[%s9907_s2 + $0xc0] sm:$0xff]  ;;  %v7778_v19 = vld [vmem:[%s364_s14 + $0x10] sm:$0xff] }
  0x12   : > { %6091 = vmatpush3.msra.mxu0 %v4869_v5  ;;  %6144 = vmatpush3.msra.mxu1 %v431_v6  ;;  %v4865_v15 = vld [vmem:[%s9907_s2 + $0xc8] sm:$0xff]  ;;  %397 = vst [vmem:[#allocation2 + $0x8] sm:$0xff] %v7759_v14  ;;  %v426_v18 = vld [vmem:[%s9907_s2 + $0x40] sm:$0xff]  ;;  %398 = vst [vmem:[#allocation2 + $0x10] sm:$0xff] %v7778_v19 }
  0x13   : > { %6092 = vmatprep.subr.mxu0 %v7637_v2  ;;  %6145 = vmatprep.subr.mxu1 %v7637_v2  ;;  %v427_v16 = vld [vmem:[%s9907_s2 + $0x48] sm:$0xff]  ;;  %v395_v20 = vld [vmem:[%s364_s14 + $0x18] sm:$0xff]  ;;  %v400_v23 = vld [vmem:[%s7783_s12] sm:$0xff] }
  0x14   : > { %6093 = vmatpush3.msra.mxu0 %v4868_v7  ;;  %6146 = vmatpush3.msra.mxu1 %v430_v8  ;;  %v4863_v21 = vld [vmem:[%s9907_s2 + $0xb8] sm:$0xff]  ;;  %399 = vst [vmem:[#allocation2 + $0x18] sm:$0xff] %v395_v20  ;;  %v4862_v24 = vld [vmem:[%s9907_s2 + $0xb0] sm:$0xff]  ;;  %404 = vst [vmem:[#allocation2 + $0x20] sm:$0xff] %v400_v23 }
  0x15   : > { %6094 = vmatprep.subr.mxu0 %v7637_v2  ;;  %6147 = vmatprep.subr.mxu1 %v7637_v2  ;;  %v425_v22 = vld [vmem:[%s9907_s2 + $0x38] sm:$0xff]  ;;  %v424_v25 = vld [vmem:[%s9907_s2 + $0x30] sm:$0xff]  ;;  %v401_v26 = vld [vmem:[%s7783_s12 + $0x8] sm:$0xff] }
  0x16   : > { %6095 = vmatpush3.msra.mxu0 %v4867_v9  ;;  %6148 = vmatpush3.msra.mxu1 %v429_v10  ;;  %v4861_v27 = vld [vmem:[%s9907_s2 + $0xa8] sm:$0xff]  ;;  %405 = vst [vmem:[#allocation2 + $0x28] sm:$0xff] %v401_v26  ;;  %v402_v29 = vld [vmem:[%s7783_s12 + $0x10] sm:$0xff]  ;;  %v4860_v30 = vld [vmem:[%s9907_s2 + $0xa0] sm:$0xff] }
  0x17   : > { %6096 = vmatprep.subr.mxu0 %v7637_v2  ;;  %6149 = vmatprep.subr.mxu1 %v7637_v2  ;;  %v423_v28 = vld [vmem:[%s9907_s2 + $0x28] sm:$0xff]  ;;  %v422_v31 = vld [vmem:[%s9907_s2 + $0x20] sm:$0xff]  ;;  %406 = vst [vmem:[#allocation2 + $0x30] sm:$0xff] %v402_v29  ;;  %v4859_v32 = vld [vmem:[%s9907_s2 + $0x98] sm:$0xff] }
  0x18   : > { %6097 = vmatpush3.msra.mxu0 %v4866_v11  ;;  %6150 = vmatpush3.msra.mxu1 %v428_v12  ;;  %v421_v33 = vld [vmem:[%s9907_s2 + $0x18] sm:$0xff]  ;;  %v4858_v34 = vld [vmem:[%s9907_s2 + $0x90] sm:$0xff]  ;;  %v4857_v36 = vld [vmem:[%s9907_s2 + $0x88] sm:$0xff] }
  0x19   : > { %6098 = vmatprep.subr.mxu0 %v7637_v2  ;;  %6151 = vmatprep.subr.mxu1 %v7637_v2  ;;  %v420_v35 = vld [vmem:[%s9907_s2 + $0x10] sm:$0xff]  ;;  %v419_v37 = vld [vmem:[%s9907_s2 + $0x8] sm:$0xff]  ;;  %v4856_v38 = vld [vmem:[%s9907_s2 + $0x80] sm:$0xff] }
  0x1a   : > { %6099 = vmatpush3.msra.mxu0 %v4865_v15  ;;  %6152 = vmatpush3.msra.mxu1 %v427_v16  ;;  %v434_v39 = vld [vmem:[#allocation2 + $0x2] sm:$0xff]  ;;  %v4887_v42 = vld [vmem:[%s9907_s2 + $0x178] sm:$0xff]  ;;  %v4886_v43 = vld [vmem:[%s9907_s2 + $0x170] sm:$0xff] }
  0x1b   : > { %6100 = vmatprep.subr.mxu0 %v7637_v2  ;;  %6153 = vmatprep.subr.mxu1 %v7637_v2  ;;  %v418_v40 = vld [vmem:[%s9907_s2] sm:$0xff]  ;;  %v4903_v44 = vld [vmem:[%s9907_s2 + $0x1f8] sm:$0xff]  ;;  %v4885_v45 = vld [vmem:[%s9907_s2 + $0x168] sm:$0xff] }
  0x1c   : > { %6101 = vmatpush3.msra.mxu0 %v4864_v17  ;;  %6154 = vmatpush3.msra.mxu1 %v426_v18  ;;  %v411_v41 = vld [vmem:[#allocation2 + $0x1] sm:$0xff]  ;;  %v4902_v46 = vld [vmem:[%s9907_s2 + $0x1f0] sm:$0xff]  ;;  %v4883_v51 = vld [vmem:[%s9907_s2 + $0x158] sm:$0xff] }
  0x1d   : > { %6102 = vmatprep.subr.mxu0 %v7637_v2  ;;  %6155 = vmatprep.subr.mxu1 %v7637_v2  ;;  %v435_v47 = vld [vmem:[#allocation2 + $0xa] sm:$0xff]  ;;  %v4884_v48 = vld [vmem:[%s9907_s2 + $0x160] sm:$0xff]  ;;  %v436_v53 = vld [vmem:[#allocation2 + $0x12] sm:$0xff] }
  0x1e   : > { %6103 = vmatpush3.msra.mxu0 %v4863_v21  ;;  %6156 = vmatpush3.msra.mxu1 %v425_v22  ;;  %v4901_v49 = vld [vmem:[%s9907_s2 + $0x1e8] sm:$0xff]  ;;  %v4900_v52 = vld [vmem:[%s9907_s2 + $0x1e0] sm:$0xff]  ;;  %v4882_v54 = vld [vmem:[%s9907_s2 + $0x150] sm:$0xff] }
  0x1f   : > { %6104 = vmatprep.subr.mxu0 %v7637_v2  ;;  %6157 = vmatprep.subr.mxu1 %v7637_v2  ;;  %v412_v50 = vld [vmem:[#allocation2 + $0x9] sm:$0xff]  ;;  %v4899_v55 = vld [vmem:[%s9907_s2 + $0x1d8] sm:$0xff]  ;;  %v4880_v60 = vld [vmem:[%s9907_s2 + $0x140] sm:$0xff] }
  0x20   : > { %6105 = vmatpush3.msra.mxu0 %v4862_v24  ;;  %6158 = vmatpush3.msra.mxu1 %v424_v25  ;;  %v413_v56 = vld [vmem:[#allocation2 + $0x11] sm:$0xff]  ;;  %v4881_v57 = vld [vmem:[%s9907_s2 + $0x148] sm:$0xff]  ;;  %v437_v59 = vld [vmem:[#allocation2 + $0x1a] sm:$0xff] }
  0x21   : > { %6106 = vmatprep.subr.mxu0 %v7637_v2  ;;  %6159 = vmatprep.subr.mxu1 %v7637_v2  ;;  %v4898_v58 = vld [vmem:[%s9907_s2 + $0x1d0] sm:$0xff]  ;;  %v4897_v61 = vld [vmem:[%s9907_s2 + $0x1c8] sm:$0xff]  ;;  %v414_v62 = vld [vmem:[#allocation2 + $0x19] sm:$0xff] }
  0x22   : > { %6107 = vmatpush3.msra.mxu0 %v4861_v27  ;;  %6160 = vmatpush3.msra.mxu1 %v423_v28  ;;  %v4879_v63 = vld [vmem:[%s9907_s2 + $0x138] sm:$0xff]  ;;  %v4896_v0 = vld [vmem:[%s9907_s2 + $0x1c0] sm:$0xff]  ;;  %v4878_v4 = vld [vmem:[%s9907_s2 + $0x130] sm:$0xff] }
  0x23   : > { %6108 = vmatprep.subr.mxu0 %v7637_v2  ;;  %6161 = vmatprep.subr.mxu1 %v7637_v2  ;;  %v403_v1 = vld [vmem:[%s7783_s12 + $0x18] sm:$0xff]  ;;  %v438_v3 = vld [vmem:[#allocation2 + $0x22] sm:$0xff]  ;;  %v4894_v8 = vld [vmem:[%s9907_s2 + $0x1b0] sm:$0xff] }
  0x24   : > { %6109 = vmatpush3.msra.mxu0 %v4860_v30  ;;  %6162 = vmatpush3.msra.mxu1 %v422_v31  ;;  %407 = vst [vmem:[#allocation2 + $0x38] sm:$0xff] %v403_v1  ;;  %v4895_v5 = vld [vmem:[%s9907_s2 + $0x1b8] sm:$0xff]  ;;  %v7950_v6 = vld [vmem:[#allocation2 + $0x21] sm:$0xff]  ;;  %v439_v9 = vld [vmem:[#allocation2 + $0x2a] sm:$0xff] }
  0x25   : > { %6110 = vmatprep.subr.mxu0 %v7637_v2  ;;  %6163 = vmatprep.subr.mxu1 %v7637_v2  ;;  %v4877_v7 = vld [vmem:[%s9907_s2 + $0x128] sm:$0xff]  ;;  %v4876_v10 = vld [vmem:[%s9907_s2 + $0x120] sm:$0xff]  ;;  %v4875_v13 = vld [vmem:[%s9907_s2 + $0x118] sm:$0xff] }
  0x26   : > { %6111 = vmatpush3.msra.mxu0 %v4859_v32  ;;  %6164 = vmatpush3.msra.mxu1 %v421_v33  ;;  %v4893_v11 = vld [vmem:[%s9907_s2 + $0x1a8] sm:$0xff]  ;;  %v4892_v15 = vld [vmem:[%s9907_s2 + $0x1a0] sm:$0xff]  ;;  %v440_v16 = vld [vmem:[#allocation2 + $0x32] sm:$0xf] }
  0x27   : > { %6112 = vmatprep.subr.mxu0 %v7637_v2  ;;  %6165 = vmatprep.subr.mxu1 %v7637_v2  ;;  %v7973_v12 = vld [vmem:[#allocation2 + $0x29] sm:$0xff]  ;;  %v4891_v18 = vld [vmem:[%s9907_s2 + $0x198] sm:$0xff]  ;;  %v417_v20 = vld [vmem:[#allocation2 + $0x31] sm:$0xf] }
  0x28   : > { %6113 = vmatpush3.msra.mxu0 %v4858_v34  ;;  %6166 = vmatpush3.msra.mxu1 %v420_v35  ;;  %v4874_v17 = vld [vmem:[%s9907_s2 + $0x110] sm:$0xff]  ;;  %v4873_v21 = vld [vmem:[%s9907_s2 + $0x108] sm:$0xff]  ;;  %v4872_v23 = vld [vmem:[%s9907_s2 + $0x100] sm:$0xff] }
  0x29   : > { %6114 = vmatprep.subr.mxu0 %v7637_v2  ;;  %6167 = vmatprep.subr.mxu1 %v7637_v2  ;;  %v4890_v22 = vld [vmem:[%s9907_s2 + $0x190] sm:$0xff]  ;;  %v4889_v24 = vld [vmem:[%s9907_s2 + $0x188] sm:$0xff]  ;;  %v4888_v26 = vld [vmem:[%s9907_s2 + $0x180] sm:$0xff] }
  0x2a   : > { %6115 = vmatpush3.msra.mxu0 %v4857_v36  ;;  %6168 = vmatpush3.msra.mxu1 %v419_v37  ;;  %v658_v25 = vld [vmem:[#allocation2 + $0x3] sm:$0xff]  ;;  %v4919_v27 = vld [vmem:[%s9907_s2 + $0x278] sm:$0xff]  ;;  %v4918_v29 = vld [vmem:[%s9907_s2 + $0x270] sm:$0xff] }
  0x2b   : > { %6116 = vmatprep.subr.mxu0 %v7637_v2  ;;  %6118 = vmatprep.mubr.msk.f32.mxu0 %vm7638_vm0, %v7637_v2  ;;  %v789_v28 = vld [vmem:[#allocation2 + $0x4] sm:$0xff]  ;;  %v4935_v30 = vld [vmem:[%s9907_s2 + $0x2f8] sm:$0xff]  ;;  %v4934_v33 = vld [vmem:[%s9907_s2 + $0x2f0] sm:$0xff] }
  0x2c   : > { %6117 = vmatpush3.msra.mxu0 %v4856_v38  ;;  %6169 = vmatprep.subr.mxu1 %v7637_v2  ;;  %v8032_v31 = vld [vmem:[#allocation2 + $0xb] sm:$0xff]  ;;  %v4916_v35 = vld [vmem:[%s9907_s2 + $0x260] sm:$0xff]  ;;  %v8056_v37 = vld [vmem:[#allocation2 + $0x13] sm:$0xff] }
  0x2d   : > { %6119 = vmatmul.mubr.f32.vlgmr.msra.gmra.mxu0 %v434_v39  ;;  %6170 = vmatpush3.msra.mxu1 %v418_v40  ;;  %v4917_v32 = vld [vmem:[%s9907_s2 + $0x268] sm:$0xff]  ;;  %v4915_v38 = vld [vmem:[%s9907_s2 + $0x258] sm:$0xff]  ;;  %v4932_v39 = vld [vmem:[%s9907_s2 + $0x2e0] sm:$0xff] }
  0x2e   : > { %6171 = vmatprep.mubr.msk.f32.mxu1 %vm7638_vm0, %v7637_v2  ;;  %6192 = vmatprep.subr.mxu0 %v7637_v2  ;;  %v790_v34 = vld [vmem:[#allocation2 + $0xc] sm:$0xff]  ;;  %v791_v40 = vld [vmem:[#allocation2 + $0x14] sm:$0xff] }
  0x2f   : > { %6172 = vmatmul.mubr.f32.vlgmr.msra.gmra.mxu1 %v411_v41  ;;  %6193 = vmatpush3.msra.mxu0 %v4887_v42  ;;  %v4933_v36 = vld [vmem:[%s9907_s2 + $0x2e8] sm:$0xff]  ;;  %v4914_v41 = vld [vmem:[%s9907_s2 + $0x250] sm:$0xff]  ;;  %v4931_v42 = vld [vmem:[%s9907_s2 + $0x2d8] sm:$0xff] }
  0x30   : > { %6194 = vmatprep.subr.mxu0 %v7637_v2  ;;  %6245 = vmatprep.subr.mxu1 %v7637_v2  ;;  %v4906_v1 = vld [vmem:[%s9907_s2 + $0x210] sm:$0xff] }
  0x31   : > { %6195 = vmatpush3.msra.mxu0 %v4886_v43  ;;  %6246 = vmatpush3.msra.mxu1 %v4903_v44  ;;  %v8079_v43 = vld [vmem:[#allocation2 + $0x1b] sm:$0xff]  ;;  %v4913_v44 = vld [vmem:[%s9907_s2 + $0x248] sm:$0xff] }
  0x32   : > { %6196 = vmatprep.subr.mxu0 %v7637_v2  ;;  %6247 = vmatprep.subr.mxu1 %v7637_v2 }
  0x33   : > { %6197 = vmatpush3.msra.mxu0 %v4885_v45  ;;  %6248 = vmatpush3.msra.mxu1 %v4902_v46  ;;  %v4930_v45 = vld [vmem:[%s9907_s2 + $0x2d0] sm:$0xff]  ;;  %v792_v46 = vld [vmem:[#allocation2 + $0x1c] sm:$0xff] }
  0x34   : > { %6121 = vmatprep.mubr.msk.f32.mxu0 %vm7638_vm0, %v7637_v2  ;;  %6198 = vmatprep.subr.mxu0 %v7637_v2 }
  0x35   : > { %6249 = vmatprep.subr.mxu1 %v7637_v2  ;;  %6122 = vmatmul.mubr.f32.gmra.mxu0 %v435_v47  ;;  %v4912_v47 = vld [vmem:[%s9907_s2 + $0x240] sm:$0xff] }
  0x36   : > { %6199 = vmatpush3.msra.mxu0 %v4884_v48  ;;  %6250 = vmatpush3.msra.mxu1 %v4901_v49  ;;  %v4929_v48 = vld [vmem:[%s9907_s2 + $0x2c8] sm:$0xff] }
  0x37   : > { %6174 = vmatprep.mubr.msk.f32.mxu1 %vm7638_vm0, %v7637_v2  ;;  %6200 = vmatprep.subr.mxu0 %v7637_v2  ;;  %v8102_v49 = vld [vmem:[#allocation2 + $0x23] sm:$0xff] }
  0x38   : > { %6251 = vmatprep.subr.mxu1 %v7637_v2  ;;  %6175 = vmatmul.mubr.f32.gmra.mxu1 %v412_v50  ;;  %v4911_v50 = vld [vmem:[%s9907_s2 + $0x238] sm:$0xff] }
  0x39   : > { %6201 = vmatpush3.msra.mxu0 %v4883_v51  ;;  %6252 = vmatpush3.msra.mxu1 %v4900_v52  ;;  %v4928_v51 = vld [vmem:[%s9907_s2 + $0x2c0] sm:$0xff] }
  0x3a   : > { %6124 = vmatprep.mubr.msk.f32.mxu0 %vm7638_vm0, %v7637_v2  ;;  %6202 = vmatprep.subr.mxu0 %v7637_v2  ;;  %v793_v52 = vld [vmem:[#allocation2 + $0x24] sm:$0xff] }
  0x3b   : > { %6253 = vmatprep.subr.mxu1 %v7637_v2  ;;  %6125 = vmatmul.mubr.f32.gmra.mxu0 %v436_v53  ;;  %v4910_v53 = vld [vmem:[%s9907_s2 + $0x230] sm:$0xff] }
  0x3c   : > { %6203 = vmatpush3.msra.mxu0 %v4882_v54  ;;  %6254 = vmatpush3.msra.mxu1 %v4899_v55  ;;  %v4927_v54 = vld [vmem:[%s9907_s2 + $0x2b8] sm:$0xff]  ;;  %v8125_v55 = vld [vmem:[#allocation2 + $0x2b] sm:$0xff] }
  0x3d   : > { %6177 = vmatprep.mubr.msk.f32.mxu1 %vm7638_vm0, %v7637_v2  ;;  %6204 = vmatprep.subr.mxu0 %v7637_v2 }
  0x3e   : > { %6255 = vmatprep.subr.mxu1 %v7637_v2  ;;  %6178 = vmatmul.mubr.f32.gmra.mxu1 %v413_v56  ;;  %v4909_v56 = vld [vmem:[%s9907_s2 + $0x228] sm:$0xff] }
  0x3f   : > { %6205 = vmatpush3.msra.mxu0 %v4881_v57  ;;  %6256 = vmatpush3.msra.mxu1 %v4898_v58  ;;  %v4926_v57 = vld [vmem:[%s9907_s2 + $0x2b0] sm:$0xff] }
  0x40   : > { %6127 = vmatprep.mubr.msk.f32.mxu0 %vm7638_vm0, %v7637_v2  ;;  %6206 = vmatprep.subr.mxu0 %v7637_v2  ;;  %v794_v58 = vld [vmem:[#allocation2 + $0x2c] sm:$0xff] }
  0x41   : > { %6257 = vmatprep.subr.mxu1 %v7637_v2  ;;  %6128 = vmatmul.mubr.f32.gmra.mxu0 %v437_v59  ;;  %v4908_v59 = vld [vmem:[%s9907_s2 + $0x220] sm:$0xff] }
  0x42   : > { %6207 = vmatpush3.msra.mxu0 %v4880_v60  ;;  %6258 = vmatpush3.msra.mxu1 %v4897_v61  ;;  %v4925_v60 = vld [vmem:[%s9907_s2 + $0x2a8] sm:$0xff]  ;;  %v664_v61 = vld [vmem:[#allocation2 + $0x33] sm:$0xf] }
  0x43   : > { %6180 = vmatprep.mubr.msk.f32.mxu1 %vm7638_vm0, %v7637_v2  ;;  %6208 = vmatprep.subr.mxu0 %v7637_v2 }
  0x44   : > { %6259 = vmatprep.subr.mxu1 %v7637_v2  ;;  %6181 = vmatmul.mubr.f32.gmra.mxu1 %v414_v62  ;;  %v4907_v62 = vld [vmem:[%s9907_s2 + $0x218] sm:$0xff] }
  0x45   : > { %6209 = vmatpush3.msra.mxu0 %v4879_v63  ;;  %6260 = vmatpush3.msra.mxu1 %v4896_v0  ;;  %v4924_v63 = vld [vmem:[%s9907_s2 + $0x2a0] sm:$0xff]  ;;  %v795_v0 = vld [vmem:[#allocation2 + $0x34] sm:$0xf] }
  0x46   : > { %6130 = vmatprep.mubr.msk.f32.mxu0 %vm7638_vm0, %v7637_v2  ;;  %6210 = vmatprep.subr.mxu0 %v7637_v2 }
  0x47   : > { %6261 = vmatprep.subr.mxu1 %v7637_v2  ;;  %6131 = vmatmul.mubr.f32.gmra.mxu0 %v438_v3  ;;  %v4923_v3 = vld [vmem:[%s9907_s2 + $0x298] sm:$0xff] }
  0x48   : > { %6211 = vmatpush3.msra.mxu0 %v4878_v4  ;;  %6262 = vmatpush3.msra.mxu1 %v4895_v5  ;;  %v4905_v4 = vld [vmem:[%s9907_s2 + $0x208] sm:$0xff]  ;;  %v4922_v5 = vld [vmem:[%s9907_s2 + $0x290] sm:$0xff] }
  0x49   : > { %6183 = vmatprep.mubr.msk.f32.mxu1 %vm7638_vm0, %v7637_v2  ;;  %6212 = vmatprep.subr.mxu0 %v7637_v2 }
  0x4a   : > { %6263 = vmatprep.subr.mxu1 %v7637_v2  ;;  %6184 = vmatmul.mubr.f32.gmra.mxu1 %v7950_v6 }
  0x4b   : > { %6213 = vmatpush3.msra.mxu0 %v4877_v7  ;;  %6264 = vmatpush3.msra.mxu1 %v4894_v8  ;;  %v4904_v7 = vld [vmem:[%s9907_s2 + $0x200] sm:$0xff]  ;;  %v4921_v8 = vld [vmem:[%s9907_s2 + $0x288] sm:$0xff] }
  0x4c   : > { %6133 = vmatprep.mubr.msk.f32.mxu0 %vm7638_vm0, %v7637_v2  ;;  %6214 = vmatprep.subr.mxu0 %v7637_v2 }
  0x4d   : > { %6265 = vmatprep.subr.mxu1 %v7637_v2  ;;  %6134 = vmatmul.mubr.f32.gmra.mxu0 %v439_v9  ;;  %v920_v9 = vld [vmem:[#allocation2 + $0x5] sm:$0xff] }
  0x4e   : > { %6215 = vmatpush3.msra.mxu0 %v4876_v10  ;;  %6266 = vmatpush3.msra.mxu1 %v4893_v11  ;;  %v4920_v10 = vld [vmem:[%s9907_s2 + $0x280] sm:$0xff]  ;;  %v4951_v11 = vld [vmem:[%s9907_s2 + $0x378] sm:$0xff] }
  0x4f   : > { %6186 = vmatprep.mubr.msk.f32.mxu1 %vm7638_vm0, %v7637_v2  ;;  %6216 = vmatprep.subr.mxu0 %v7637_v2 }
  0x50   : > { %6267 = vmatprep.subr.mxu1 %v7637_v2  ;;  %6187 = vmatmul.mubr.f32.gmra.mxu1 %v7973_v12 }
  0x51   : > { %6217 = vmatpush3.msra.mxu0 %v4875_v13  ;;  %6268 = vmatpush3.msra.mxu1 %v4892_v15  ;;  %v1051_v13 = vld [vmem:[#allocation2 + $0x6] sm:$0xff]  ;;  %v4950_v15 = vld [vmem:[%s9907_s2 + $0x370] sm:$0xff] }
  0x52   : > { %6136 = vmatprep.mubr.msk.f32.mxu0 %vm7638_vm0, %v7637_v2  ;;  %6218 = vmatprep.subr.mxu0 %v7637_v2 }
  0x53   : > { %6269 = vmatprep.subr.mxu1 %v7637_v2  ;;  %6137 = vmatmul.mubr.f32.gmra.mxu0 %v440_v16  ;;  %v4967_v16 = vld [vmem:[%s9907_s2 + $0x3f8] sm:$0xff] }
  0x54   : > { %6219 = vmatpush3.msra.mxu0 %v4874_v17  ;;  %6270 = vmatpush3.msra.mxu1 %v4891_v18  ;;  %v921_v17 = vld [vmem:[#allocation2 + $0xd] sm:$0xff] }
  0x55   : > { %6189 = vmatprep.mubr.msk.f32.mxu1 %vm7638_vm0, %v7637_v2  ;;  %6220 = vmatprep.subr.mxu0 %v7637_v2  ;;  %v4949_v18 = vld [vmem:[%s9907_s2 + $0x368] sm:$0xff] }
  0x56   : > { %6271 = vmatprep.subr.mxu1 %v7637_v2  ;;  %6190 = vmatmul.mubr.f32.gmra.mxu1 %v417_v20  ;;  %v4966_v20 = vld [vmem:[%s9907_s2 + $0x3f0] sm:$0xff] }
  0x57   : > { %6221 = vmatpush3.msra.mxu0 %v4873_v21  ;;  %6272 = vmatpush3.msra.mxu1 %v4890_v22  ;;  %v1052_v21 = vld [vmem:[#allocation2 + $0xe] sm:$0xff]  ;;  %v4948_v22 = vld [vmem:[%s9907_s2 + $0x360] sm:$0xff] }
  0x58   : > { %6222 = vmatprep.subr.mxu0 %v7637_v2  ;;  %6273 = vmatprep.subr.mxu1 %v7637_v2 }
  0x59   : > { %6223 = vmatpush3.msra.mxu0 %v4872_v23  ;;  %6224 = vmatprep.mubr.msk.f32.mxu0 %vm7638_vm0, %v7637_v2  ;;  %v4965_v23 = vld [vmem:[%s9907_s2 + $0x3e8] sm:$0xff] }
  0x5a   : > { %6274 = vmatpush3.msra.mxu1 %v4889_v24  ;;  %6225 = vmatmul.mubr.f32.vlgmr.msra.gmra.mxu0 %v658_v25  ;;  %v922_v24 = vld [vmem:[#allocation2 + $0x15] sm:$0xff] }
  0x5b   : > { %6275 = vmatprep.subr.mxu1 %v7637_v2  ;;  %6298 = vmatprep.subr.mxu0 %v7637_v2  ;;  %v4947_v25 = vld [vmem:[%s9907_s2 + $0x358] sm:$0xff] }
  0x5c   : > { %6276 = vmatpush3.msra.mxu1 %v4888_v26  ;;  %6277 = vmatprep.mubr.msk.f32.mxu1 %vm7638_vm0, %v7637_v2  ;;  %v4964_v26 = vld [vmem:[%s9907_s2 + $0x3e0] sm:$0xff] }
  0x5d   : > { %6299 = vmatpush3.msra.mxu0 %v4919_v27  ;;  %6278 = vmatmul.mubr.f32.vlgmr.msra.gmra.mxu1 %v789_v28  ;;  %v1053_v27 = vld [vmem:[#allocation2 + $0x16] sm:$0xff] }
  0x5e   : > { %6300 = vmatprep.subr.mxu0 %v7637_v2  ;;  %6351 = vmatprep.subr.mxu1 %v7637_v2  ;;  %v4946_v28 = vld [vmem:[%s9907_s2 + $0x350] sm:$0xff] }
  0x5f   : > { %6227 = vmatprep.mubr.msk.f32.mxu0 %vm7638_vm0, %v7637_v2  ;;  %6301 = vmatpush3.msra.mxu0 %v4918_v29  ;;  %v4963_v29 = vld [vmem:[%s9907_s2 + $0x3d8] sm:$0xff] }
  0x60   : > { %6352 = vmatpush3.msra.mxu1 %v4935_v30  ;;  %6228 = vmatmul.mubr.f32.gmra.mxu0 %v8032_v31  ;;  %v923_v30 = vld [vmem:[#allocation2 + $0x1d] sm:$0xff] }
  0x61   : > { %6302 = vmatprep.subr.mxu0 %v7637_v2  ;;  %6353 = vmatprep.subr.mxu1 %v7637_v2 }
  0x62   : > { %6280 = vmatprep.mubr.msk.f32.mxu1 %vm7638_vm0, %v7637_v2  ;;  %6303 = vmatpush3.msra.mxu0 %v4917_v32  ;;  %v4945_v32 = vld [vmem:[%s9907_s2 + $0x348] sm:$0xff] }
  0x63   : > { %6354 = vmatpush3.msra.mxu1 %v4934_v33  ;;  %6304 = vmatprep.subr.mxu0 %v7637_v2  ;;  %v4962_v33 = vld [vmem:[%s9907_s2 + $0x3d0] sm:$0xff] }
  0x64   : > { %6281 = vmatmul.mubr.f32.gmra.mxu1 %v790_v34  ;;  %6355 = vmatprep.subr.mxu1 %v7637_v2  ;;  %v1054_v34 = vld [vmem:[#allocation2 + $0x1e] sm:$0xff] }
  0x65   : > { %6230 = vmatprep.mubr.msk.f32.mxu0 %vm7638_vm0, %v7637_v2  ;;  %6305 = vmatpush3.msra.mxu0 %v4916_v35  ;;  %v4944_v35 = vld [vmem:[%s9907_s2 + $0x340] sm:$0xff] }
  0x66   : > { %6356 = vmatpush3.msra.mxu1 %v4933_v36  ;;  %6231 = vmatmul.mubr.f32.gmra.mxu0 %v8056_v37  ;;  %v4961_v36 = vld [vmem:[%s9907_s2 + $0x3c8] sm:$0xff] }
  0x67   : > { %6306 = vmatprep.subr.mxu0 %v7637_v2  ;;  %6357 = vmatprep.subr.mxu1 %v7637_v2 }
  0x68   : > { %6283 = vmatprep.mubr.msk.f32.mxu1 %vm7638_vm0, %v7637_v2  ;;  %6307 = vmatpush3.msra.mxu0 %v4915_v38  ;;  %v924_v38 = vld [vmem:[#allocation2 + $0x25] sm:$0xff] }
  0x69   : > { %6358 = vmatpush3.msra.mxu1 %v4932_v39  ;;  %6308 = vmatprep.subr.mxu0 %v7637_v2  ;;  %v4943_v39 = vld [vmem:[%s9907_s2 + $0x338] sm:$0xff] }
  0x6a   : > { %6284 = vmatmul.mubr.f32.gmra.mxu1 %v791_v40  ;;  %6359 = vmatprep.subr.mxu1 %v7637_v2  ;;  %v4960_v40 = vld [vmem:[%s9907_s2 + $0x3c0] sm:$0xff] }
  0x6b   : > { %6233 = vmatprep.mubr.msk.f32.mxu0 %vm7638_vm0, %v7637_v2  ;;  %6309 = vmatpush3.msra.mxu0 %v4914_v41  ;;  %v1055_v41 = vld [vmem:[#allocation2 + $0x26] sm:$0xff] }
  0x6c   : > { %6360 = vmatpush3.msra.mxu1 %v4931_v42  ;;  %6234 = vmatmul.mubr.f32.gmra.mxu0 %v8079_v43  ;;  %v4942_v42 = vld [vmem:[%s9907_s2 + $0x330] sm:$0xff] }
  0x6d   : > { %6310 = vmatprep.subr.mxu0 %v7637_v2  ;;  %6361 = vmatprep.subr.mxu1 %v7637_v2 }
  0x6e   : > { %6286 = vmatprep.mubr.msk.f32.mxu1 %vm7638_vm0, %v7637_v2  ;;  %6311 = vmatpush3.msra.mxu0 %v4913_v44  ;;  %v4959_v44 = vld [vmem:[%s9907_s2 + $0x3b8] sm:$0xff] }
  0x6f   : > { %6362 = vmatpush3.msra.mxu1 %v4930_v45  ;;  %6312 = vmatprep.subr.mxu0 %v7637_v2  ;;  %v925_v45 = vld [vmem:[#allocation2 + $0x2d] sm:$0xff] }
  0x70   : > { %6287 = vmatmul.mubr.f32.gmra.mxu1 %v792_v46  ;;  %6363 = vmatprep.subr.mxu1 %v7637_v2  ;;  %v4941_v46 = vld [vmem:[%s9907_s2 + $0x328] sm:$0xff] }
  0x71   : > { %6236 = vmatprep.mubr.msk.f32.mxu0 %vm7638_vm0, %v7637_v2  ;;  %6313 = vmatpush3.msra.mxu0 %v4912_v47  ;;  %v4958_v47 = vld [vmem:[%s9907_s2 + $0x3b0] sm:$0xff] }
  0x72   : > { %6364 = vmatpush3.msra.mxu1 %v4929_v48  ;;  %6237 = vmatmul.mubr.f32.gmra.mxu0 %v8102_v49  ;;  %v1056_v48 = vld [vmem:[#allocation2 + $0x2e] sm:$0xff] }
  0x73   : > { %6314 = vmatprep.subr.mxu0 %v7637_v2  ;;  %6365 = vmatprep.subr.mxu1 %v7637_v2 }
  0x74   : > { %6289 = vmatprep.mubr.msk.f32.mxu1 %vm7638_vm0, %v7637_v2  ;;  %6315 = vmatpush3.msra.mxu0 %v4911_v50  ;;  %v4940_v50 = vld [vmem:[%s9907_s2 + $0x320] sm:$0xff] }
  0x75   : > { %6366 = vmatpush3.msra.mxu1 %v4928_v51  ;;  %6316 = vmatprep.subr.mxu0 %v7637_v2  ;;  %v4957_v51 = vld [vmem:[%s9907_s2 + $0x3a8] sm:$0xff] }
  0x76   : > { %6290 = vmatmul.mubr.f32.gmra.mxu1 %v793_v52  ;;  %6367 = vmatprep.subr.mxu1 %v7637_v2  ;;  %v926_v52 = vld [vmem:[#allocation2 + $0x35] sm:$0xf] }
  0x77   : > { %6239 = vmatprep.mubr.msk.f32.mxu0 %vm7638_vm0, %v7637_v2  ;;  %6317 = vmatpush3.msra.mxu0 %v4910_v53  ;;  %v4939_v53 = vld [vmem:[%s9907_s2 + $0x318] sm:$0xff] }
  0x78   : > { %6368 = vmatpush3.msra.mxu1 %v4927_v54  ;;  %6240 = vmatmul.mubr.f32.gmra.mxu0 %v8125_v55  ;;  %v4956_v54 = vld [vmem:[%s9907_s2 + $0x3a0] sm:$0xff] }
  0x79   : > { %6318 = vmatprep.subr.mxu0 %v7637_v2  ;;  %6369 = vmatprep.subr.mxu1 %v7637_v2 }
  0x7a   : > { %6292 = vmatprep.mubr.msk.f32.mxu1 %vm7638_vm0, %v7637_v2  ;;  %6319 = vmatpush3.msra.mxu0 %v4909_v56  ;;  %v1057_v56 = vld [vmem:[#allocation2 + $0x36] sm:$0xf] }
  0x7b   : > { %6370 = vmatpush3.msra.mxu1 %v4926_v57  ;;  %6320 = vmatprep.subr.mxu0 %v7637_v2  ;;  %v4938_v57 = vld [vmem:[%s9907_s2 + $0x310] sm:$0xff] }
  0x7c   : > { %6293 = vmatmul.mubr.f32.gmra.mxu1 %v794_v58  ;;  %6371 = vmatprep.subr.mxu1 %v7637_v2  ;;  %v4955_v58 = vld [vmem:[%s9907_s2 + $0x398] sm:$0xff] }
  0x7d   : > { %6242 = vmatprep.mubr.msk.f32.mxu0 %vm7638_vm0, %v7637_v2  ;;  %6321 = vmatpush3.msra.mxu0 %v4908_v59  ;;  %v8324_v59 = vld [vmem:[#allocation3] sm:$0xff] }
  0x7e   : > { %6372 = vmatpush3.msra.mxu1 %v4925_v60  ;;  %6243 = vmatmul.mubr.f32.gmra.mxu0 %v664_v61  ;;  %v4937_v60 = vld [vmem:[%s9907_s2 + $0x308] sm:$0xff]  ;;  %v4954_v61 = vld [vmem:[%s9907_s2 + $0x390] sm:$0xff] }
  0x7f   : > { %6322 = vmatprep.subr.mxu0 %v7637_v2  ;;  %6373 = vmatprep.subr.mxu1 %v7637_v2 }
  0x80   : > { %6295 = vmatprep.mubr.msk.f32.mxu1 %vm7638_vm0, %v7637_v2  ;;  %6323 = vmatpush3.msra.mxu0 %v4907_v62  ;;  %v4953_v62 = vld [vmem:[%s9907_s2 + $0x388] sm:$0xff] }
  0x81   : > { %6374 = vmatpush3.msra.mxu1 %v4924_v63  ;;  %6324 = vmatprep.subr.mxu0 %v7637_v2  ;;  %v1182_v63 = vld [vmem:[#allocation2 + $0x7] sm:$0xff] }
  0x82   : > { %6296 = vmatmul.mubr.f32.gmra.mxu1 %v795_v0  ;;  %6375 = vmatprep.subr.mxu1 %v7637_v2  ;;  %v4952_v0 = vld [vmem:[%s9907_s2 + $0x380] sm:$0xff] }
  0x83   : > { %6325 = vmatpush3.msra.mxu0 %v4906_v1  ;;  %6376 = vmatpush3.msra.mxu1 %v4923_v3  ;;  %v4983_v1 = vld [vmem:[%s9907_s2 + $0x478] sm:$0xff]  ;;  %v4982_v3 = vld [vmem:[%s9907_s2 + $0x470] sm:$0xff] }
  0x84   : > { %6326 = vmatprep.subr.mxu0 %v7637_v2  ;;  %6377 = vmatprep.subr.mxu1 %v7637_v2 }
  0x85   : > { %6327 = vmatpush3.msra.mxu0 %v4905_v4  ;;  %6378 = vmatpush3.msra.mxu1 %v4922_v5  ;;  %v4999_v4 = vld [vmem:[%s9907_s2 + $0x4f8] sm:$0xff]  ;;  %v1183_v5 = vld [vmem:[#allocation2 + $0xf] sm:$0xff] }
  0x86   : > { %6328 = vmatprep.subr.mxu0 %v7637_v2  ;;  %6379 = vmatprep.subr.mxu1 %v7637_v2 }
  0x87   : > { %6329 = vmatpush3.msra.mxu0 %v4904_v7  ;;  %6330 = vmatprep.mubr.msk.f32.mxu0 %vm7638_vm0, %v7637_v2  ;;  %v4981_v7 = vld [vmem:[%s9907_s2 + $0x468] sm:$0xff] }
  0x88   : > { %6380 = vmatpush3.msra.mxu1 %v4921_v8  ;;  %6331 = vmatmul.mubr.f32.vlgmr.msra.gmra.mxu0 %v920_v9  ;;  %v4980_v8 = vld [vmem:[%s9907_s2 + $0x460] sm:$0xff]  ;;  %v4997_v9 = vld [vmem:[%s9907_s2 + $0x4e8] sm:$0xff] }
  0x89   : > { %6381 = vmatprep.subr.mxu1 %v7637_v2  ;;  %6404 = vmatprep.subr.mxu0 %v7637_v2 }
  0x8a   : > { %6382 = vmatpush3.msra.mxu1 %v4920_v10  ;;  %6383 = vmatprep.mubr.msk.f32.mxu1 %vm7638_vm0, %v7637_v2  ;;  %v1184_v10 = vld [vmem:[#allocation2 + $0x17] sm:$0xff] }
  0x8b   : > { %6405 = vmatpush3.msra.mxu0 %v4951_v11  ;;  %6384 = vmatmul.mubr.f32.vlgmr.msra.gmra.mxu1 %v1051_v13  ;;  %v4979_v11 = vld [vmem:[%s9907_s2 + $0x458] sm:$0xff]  ;;  %v4996_v13 = vld [vmem:[%s9907_s2 + $0x4e0] sm:$0xff] }
  0x8c   : > { %6406 = vmatprep.subr.mxu0 %v7637_v2  ;;  %6457 = vmatprep.subr.mxu1 %v7637_v2 }
  0x8d   : > { %6333 = vmatprep.mubr.msk.f32.mxu0 %vm7638_vm0, %v7637_v2  ;;  %6407 = vmatpush3.msra.mxu0 %v4950_v15  ;;  %v4995_v15 = vld [vmem:[%s9907_s2 + $0x4d8] sm:$0xff] }
  0x8e   : > { %6458 = vmatpush3.msra.mxu1 %v4967_v16  ;;  %6334 = vmatmul.mubr.f32.gmra.mxu0 %v921_v17  ;;  %v1185_v16 = vld [vmem:[#allocation2 + $0x1f] sm:$0xff] }
  0x8f   : > { %6408 = vmatprep.subr.mxu0 %v7637_v2  ;;  %6459 = vmatprep.subr.mxu1 %v7637_v2  ;;  %v7603_v17 = vld [vmem:[#allocation2 + $0x18] sm:$0xff] }
  0x90   : > { %6386 = vmatprep.mubr.msk.f32.mxu1 %vm7638_vm0, %v7637_v2  ;;  %6409 = vmatpush3.msra.mxu0 %v4949_v18  ;;  %v4977_v18 = vld [vmem:[%s9907_s2 + $0x448] sm:$0xff] }
  0x91   : > { %6460 = vmatpush3.msra.mxu1 %v4966_v20  ;;  %6410 = vmatprep.subr.mxu0 %v7637_v2  ;;  %v4994_v20 = vld [vmem:[%s9907_s2 + $0x4d0] sm:$0xff] }
  0x92   : > { %6387 = vmatmul.mubr.f32.gmra.mxu1 %v1052_v21  ;;  %6461 = vmatprep.subr.mxu1 %v7637_v2  ;;  %v4976_v21 = vld [vmem:[%s9907_s2 + $0x440] sm:$0xff] }
  0x93   : > { %6336 = vmatprep.mubr.msk.f32.mxu0 %vm7638_vm0, %v7637_v2  ;;  %6411 = vmatpush3.msra.mxu0 %v4948_v22  ;;  %v4993_v22 = vld [vmem:[%s9907_s2 + $0x4c8] sm:$0xff] }
  0x94   : > { %6462 = vmatpush3.msra.mxu1 %v4965_v23  ;;  %6337 = vmatmul.mubr.f32.gmra.mxu0 %v922_v24  ;;  %v1186_v23 = vld [vmem:[#allocation2 + $0x27] sm:$0xff] }
  0x95   : > { %6412 = vmatprep.subr.mxu0 %v7637_v2  ;;  %6463 = vmatprep.subr.mxu1 %v7637_v2  ;;  %v7604_v24 = vld [vmem:[#allocation2 + $0x20] sm:$0xff] }
  0x96   : > { %6389 = vmatprep.mubr.msk.f32.mxu1 %vm7638_vm0, %v7637_v2  ;;  %6413 = vmatpush3.msra.mxu0 %v4947_v25  ;;  %v4975_v25 = vld [vmem:[%s9907_s2 + $0x438] sm:$0xff] }
  0x97   : > { %6464 = vmatpush3.msra.mxu1 %v4964_v26  ;;  %6414 = vmatprep.subr.mxu0 %v7637_v2  ;;  %v4992_v26 = vld [vmem:[%s9907_s2 + $0x4c0] sm:$0xff] }
  0x98   : > { %6390 = vmatmul.mubr.f32.gmra.mxu1 %v1053_v27  ;;  %6465 = vmatprep.subr.mxu1 %v7637_v2  ;;  %v4974_v27 = vld [vmem:[%s9907_s2 + $0x430] sm:$0xff] }
  0x99   : > { %6339 = vmatprep.mubr.msk.f32.mxu0 %vm7638_vm0, %v7637_v2  ;;  %6415 = vmatpush3.msra.mxu0 %v4946_v28  ;;  %v4991_v28 = vld [vmem:[%s9907_s2 + $0x4b8] sm:$0xff] }
  0x9a   : > { %6466 = vmatpush3.msra.mxu1 %v4963_v29  ;;  %6340 = vmatmul.mubr.f32.gmra.mxu0 %v923_v30  ;;  %v1187_v29 = vld [vmem:[#allocation2 + $0x2f] sm:$0xff] }
  0x9b   : > { %6416 = vmatprep.subr.mxu0 %v7637_v2  ;;  %6467 = vmatprep.subr.mxu1 %v7637_v2  ;;  %v7605_v30 = vld [vmem:[#allocation2 + $0x28] sm:$0xff] }
  0x9c   : > { %6392 = vmatprep.mubr.msk.f32.mxu1 %vm7638_vm0, %v7637_v2  ;;  %6417 = vmatpush3.msra.mxu0 %v4945_v32  ;;  %v4973_v32 = vld [vmem:[%s9907_s2 + $0x428] sm:$0xff] }
  0x9d   : > { %6468 = vmatpush3.msra.mxu1 %v4962_v33  ;;  %6418 = vmatprep.subr.mxu0 %v7637_v2  ;;  %v4990_v33 = vld [vmem:[%s9907_s2 + $0x4b0] sm:$0xff] }
  0x9e   : > { %6393 = vmatmul.mubr.f32.gmra.mxu1 %v1054_v34  ;;  %6469 = vmatprep.subr.mxu1 %v7637_v2  ;;  %v4972_v34 = vld [vmem:[%s9907_s2 + $0x420] sm:$0xff] }
  0x9f   : > { %6342 = vmatprep.mubr.msk.f32.mxu0 %vm7638_vm0, %v7637_v2  ;;  %6419 = vmatpush3.msra.mxu0 %v4944_v35  ;;  %v4989_v35 = vld [vmem:[%s9907_s2 + $0x4a8] sm:$0xff] }
  0xa0   : > { %6470 = vmatpush3.msra.mxu1 %v4961_v36  ;;  %6343 = vmatmul.mubr.f32.gmra.mxu0 %v924_v38  ;;  %v1188_v36 = vld [vmem:[#allocation2 + $0x37] sm:$0xf] }
  0xa1   : > { %6420 = vmatprep.subr.mxu0 %v7637_v2  ;;  %6471 = vmatprep.subr.mxu1 %v7637_v2  ;;  %v7606_v38 = vld [vmem:[#allocation2 + $0x30] sm:$0xff] }
  0xa2   : > { %6395 = vmatprep.mubr.msk.f32.mxu1 %vm7638_vm0, %v7637_v2  ;;  %6421 = vmatpush3.msra.mxu0 %v4943_v39  ;;  %v4971_v39 = vld [vmem:[%s9907_s2 + $0x418] sm:$0xff] }
  0xa3   : > { %6472 = vmatpush3.msra.mxu1 %v4960_v40  ;;  %6422 = vmatprep.subr.mxu0 %v7637_v2  ;;  %v4988_v40 = vld [vmem:[%s9907_s2 + $0x4a0] sm:$0xff] }
  0xa4   : > { %6396 = vmatmul.mubr.f32.gmra.mxu1 %v1055_v41  ;;  %6473 = vmatprep.subr.mxu1 %v7637_v2  ;;  %v1319_v41 = vld [vmem:[#allocation2 + $0x38] sm:$0xf] }
  0xa5   : > { %6345 = vmatprep.mubr.msk.f32.mxu0 %vm7638_vm0, %v7637_v2  ;;  %6423 = vmatpush3.msra.mxu0 %v4942_v42  ;;  %v4970_v42 = vld [vmem:[%s9907_s2 + $0x410] sm:$0xff] }
  0xa6   : > { %6474 = vmatpush3.msra.mxu1 %v4959_v44  ;;  %6346 = vmatmul.mubr.f32.gmra.mxu0 %v925_v45  ;;  %v4987_v44 = vld [vmem:[%s9907_s2 + $0x498] sm:$0xff]  ;;  %v4969_v45 = vld [vmem:[%s9907_s2 + $0x408] sm:$0xff] }
  0xa7   : > { %6424 = vmatprep.subr.mxu0 %v7637_v2  ;;  %6475 = vmatprep.subr.mxu1 %v7637_v2 }
  0xa8   : > { %6398 = vmatprep.mubr.msk.f32.mxu1 %vm7638_vm0, %v7637_v2  ;;  %6425 = vmatpush3.msra.mxu0 %v4941_v46  ;;  %v4986_v46 = vld [vmem:[%s9907_s2 + $0x490] sm:$0xff] }
  0xa9   : > { %6476 = vmatpush3.msra.mxu1 %v4958_v47  ;;  %6426 = vmatprep.subr.mxu0 %v7637_v2  ;;  %v4968_v47 = vld [vmem:[%s9907_s2 + $0x400] sm:$0xff] }
  0xaa   : > { %6399 = vmatmul.mubr.f32.gmra.mxu1 %v1056_v48  ;;  %6477 = vmatprep.subr.mxu1 %v7637_v2  ;;  %v4985_v48 = vld [vmem:[%s9907_s2 + $0x488] sm:$0xff] }
  0xab   : > { %6348 = vmatprep.mubr.msk.f32.mxu0 %vm7638_vm0, %v7637_v2  ;;  %6427 = vmatpush3.msra.mxu0 %v4940_v50  ;;  %v1444_v50 = vld [vmem:[#allocation2 + $0x9] sm:$0xff] }
  0xac   : > { %6478 = vmatpush3.msra.mxu1 %v4957_v51  ;;  %6349 = vmatmul.mubr.f32.gmra.mxu0 %v926_v52  ;;  %v4984_v51 = vld [vmem:[%s9907_s2 + $0x480] sm:$0xff]  ;;  %v5015_v52 = vld [vmem:[%s9907_s2 + $0x578] sm:$0xff] }
  0xad   : > { %6428 = vmatprep.subr.mxu0 %v7637_v2  ;;  %6479 = vmatprep.subr.mxu1 %v7637_v2 }
  0xae   : > { %6401 = vmatprep.mubr.msk.f32.mxu1 %vm7638_vm0, %v7637_v2  ;;  %6429 = vmatpush3.msra.mxu0 %v4939_v53  ;;  %v1575_v53 = vld [vmem:[#allocation2 + $0xa] sm:$0xff] }
  0xaf   : > { %6480 = vmatpush3.msra.mxu1 %v4956_v54  ;;  %6430 = vmatprep.subr.mxu0 %v7637_v2  ;;  %v4936_v2 = vld [vmem:[%s9907_s2 + $0x300] sm:$0xff]  ;;  %v5014_v54 = vld [vmem:[%s9907_s2 + $0x570] sm:$0xff] }
  0xb0   : > { %6402 = vmatmul.mubr.f32.gmra.mxu1 %v1057_v56  ;;  %6481 = vmatprep.subr.mxu1 %v8324_v59  ;;  %v1445_v56 = vld [vmem:[#allocation2 + $0x11] sm:$0xff] }
  0xb1   : > { %6431 = vmatpush3.msra.mxu0 %v4938_v57  ;;  %6482 = vmatpush3.msra.mxu1 %v4955_v58  ;;  %v5013_v57 = vld [vmem:[%s9907_s2 + $0x568] sm:$0xff]  ;;  %v1576_v58 = vld [vmem:[#allocation2 + $0x12] sm:$0xff] }
  0xb2   : > { %6432 = vmatprep.subr.mxu0 %v8324_v59  ;;  %6483 = vmatprep.subr.mxu1 %v8324_v59 }
  0xb3   : > { %6433 = vmatpush3.msra.mxu0 %v4937_v60  ;;  %6484 = vmatpush3.msra.mxu1 %v4954_v61  ;;  %v5012_v60 = vld [vmem:[%s9907_s2 + $0x560] sm:$0xff] }
  0xb4   : > { %6434 = vmatprep.subr.mxu0 %v8324_v59  ;;  %6485 = vmatprep.subr.mxu1 %v8324_v59  ;;  %v1446_v61 = vld [vmem:[#allocation2 + $0x19] sm:$0xff] }
  0xb5   : > { %6435 = vmatpush3.msra.mxu0 %v4936_v2  ;;  %6436 = vmatprep.mubr.msk.f32.mxu0 %vm7638_vm0, %v8324_v59  ;;  %v5011_v2 = vld [vmem:[%s9907_s2 + $0x558] sm:$0xff] }
  0xb6   : > { %6486 = vmatpush3.msra.mxu1 %v4953_v62  ;;  %6437 = vmatmul.mubr.f32.vlgmr.msra.gmra.mxu0 %v1182_v63  ;;  %v1577_v62 = vld [vmem:[#allocation2 + $0x1a] sm:$0xff] }
  0xb7   : > { %6487 = vmatprep.subr.mxu1 %v8324_v59  ;;  %6510 = vmatprep.subr.mxu0 %v8324_v59 }
  0xb8   : > { %6488 = vmatpush3.msra.mxu1 %v4952_v0  ;;  %6489 = vmatprep.mubr.msk.f32.mxu1 %vm7638_vm0, %v8324_v59  ;;  %v5010_v0 = vld [vmem:[%s9907_s2 + $0x550] sm:$0xff] }
  0xb9   : > { %6511 = vmatpush3.msra.mxu0 %v4983_v1  ;;  %6490 = vmatmul.mubr.f32.vlgmr.msra.gmra.mxu1 %v7759_v14  ;;  %v4998_v14 = vld [vmem:[%s9907_s2 + $0x4f0] sm:$0xff] }
  0xba   : > { %6512 = vmatprep.subr.mxu0 %v8324_v59  ;;  %6563 = vmatprep.subr.mxu1 %v8324_v59 }
  0xbb   : > { %6439 = vmatprep.mubr.msk.f32.mxu0 %vm7638_vm0, %v8324_v59  ;;  %6513 = vmatpush3.msra.mxu0 %v4982_v3 }
  0xbc   : > { %6564 = vmatpush3.msra.mxu1 %v4999_v4  ;;  %6440 = vmatmul.mubr.f32.gmra.mxu0 %v1183_v5  ;;  %v5009_v4 = vld [vmem:[%s9907_s2 + $0x548] sm:$0xff] }
  0xbd   : > { %6514 = vmatprep.subr.mxu0 %v8324_v59  ;;  %6565 = vmatprep.subr.mxu1 %v8324_v59  ;;  %v1578_v5 = vld [vmem:[#allocation2 + $0x22] sm:$0xff] }
  0xbe   : > { %6492 = vmatprep.mubr.msk.f32.mxu1 %vm7638_vm0, %v8324_v59  ;;  %6515 = vmatpush3.msra.mxu0 %v4981_v7 }
  0xbf   : > { %6566 = vmatpush3.msra.mxu1 %v4998_v14  ;;  %6516 = vmatprep.subr.mxu0 %v8324_v59  ;;  %v5008_v14 = vld [vmem:[%s9907_s2 + $0x540] sm:$0xff] }
  0xc0   : > { %6493 = vmatmul.mubr.f32.gmra.mxu1 %v7778_v19  ;;  %6567 = vmatprep.subr.mxu1 %v8324_v59  ;;  %v4978_v19 = vld [vmem:[%s9907_s2 + $0x450] sm:$0xff] }
  0xc1   : > { %6442 = vmatprep.mubr.msk.f32.mxu0 %vm7638_vm0, %v8324_v59  ;;  %6517 = vmatpush3.msra.mxu0 %v4980_v8  ;;  %v5007_v8 = vld [vmem:[%s9907_s2 + $0x538] sm:$0xff] }
  0xc2   : > { %6568 = vmatpush3.msra.mxu1 %v4997_v9  ;;  %6443 = vmatmul.mubr.f32.gmra.mxu0 %v1184_v10  ;;  %v1579_v9 = vld [vmem:[#allocation2 + $0x2a] sm:$0xff] }
  0xc3   : > { %6518 = vmatprep.subr.mxu0 %v8324_v59  ;;  %6569 = vmatprep.subr.mxu1 %v8324_v59  ;;  %v5006_v10 = vld [vmem:[%s9907_s2 + $0x530] sm:$0xff] }
  0xc4   : > { %6495 = vmatprep.mubr.msk.f32.mxu1 %vm7638_vm0, %v8324_v59  ;;  %6519 = vmatpush3.msra.mxu0 %v4979_v11  ;;  %v1449_v11 = vld [vmem:[#allocation2 + $0x31] sm:$0xff] }
  0xc5   : > { %6570 = vmatpush3.msra.mxu1 %v4996_v13  ;;  %6520 = vmatprep.subr.mxu0 %v8324_v59 }
  0xc6   : > { %6496 = vmatmul.mubr.f32.gmra.mxu1 %v7603_v17  ;;  %6571 = vmatprep.subr.mxu1 %v8324_v59  ;;  %v5004_v17 = vld [vmem:[%s9907_s2 + $0x520] sm:$0xff] }
  0xc7   : > { %6445 = vmatprep.mubr.msk.f32.mxu0 %vm7638_vm0, %v8324_v59  ;;  %6521 = vmatpush3.msra.mxu0 %v4978_v19  ;;  %v5005_v19 = vld [vmem:[%s9907_s2 + $0x528] sm:$0xff] }
  0xc8   : > { %6572 = vmatpush3.msra.mxu1 %v4995_v15  ;;  %6446 = vmatmul.mubr.f32.gmra.mxu0 %v1185_v16 }
  0xc9   : > { %6522 = vmatprep.subr.mxu0 %v8324_v59  ;;  %6573 = vmatprep.subr.mxu1 %v8324_v59 }
  0xca   : > { %6498 = vmatprep.mubr.msk.f32.mxu1 %vm7638_vm0, %v8324_v59  ;;  %6523 = vmatpush3.msra.mxu0 %v4977_v18 }
  0xcb   : > { %6574 = vmatpush3.msra.mxu1 %v4994_v20  ;;  %6524 = vmatprep.subr.mxu0 %v8324_v59  ;;  %v1450_v20 = vld [vmem:[#allocation2 + $0x39] sm:$0xf] }
  0xcc   : > { %6499 = vmatmul.mubr.f32.gmra.mxu1 %v7604_v24  ;;  %6575 = vmatprep.subr.mxu1 %v8324_v59 }
  0xcd   : > { %6448 = vmatprep.mubr.msk.f32.mxu0 %vm7638_vm0, %v8324_v59  ;;  %6525 = vmatpush3.msra.mxu0 %v4976_v21 }
  0xce   : > { %6576 = vmatpush3.msra.mxu1 %v4993_v22  ;;  %6449 = vmatmul.mubr.f32.gmra.mxu0 %v1186_v23  ;;  %v5003_v22 = vld [vmem:[%s9907_s2 + $0x518] sm:$0xff] }
  0xcf   : > { %6526 = vmatprep.subr.mxu0 %v8324_v59  ;;  %6577 = vmatprep.subr.mxu1 %v8324_v59  ;;  %v1581_v23 = vld [vmem:[#allocation2 + $0x3a] sm:$0xf] }
  0xd0   : > { %6501 = vmatprep.mubr.msk.f32.mxu1 %vm7638_vm0, %v8324_v59  ;;  %6527 = vmatpush3.msra.mxu0 %v4975_v25  ;;  %v5002_v25 = vld [vmem:[%s9907_s2 + $0x510] sm:$0xff] }
  0xd1   : > { %6578 = vmatpush3.msra.mxu1 %v4992_v26  ;;  %6528 = vmatprep.subr.mxu0 %v8324_v59 }
  0xd2   : > { %6502 = vmatmul.mubr.f32.gmra.mxu1 %v7605_v30  ;;  %6579 = vmatprep.subr.mxu1 %v8324_v59 }
  0xd3   : > { %6451 = vmatprep.mubr.msk.f32.mxu0 %vm7638_vm0, %v8324_v59  ;;  %6529 = vmatpush3.msra.mxu0 %v4974_v27 }
  0xd4   : > { %6580 = vmatpush3.msra.mxu1 %v4991_v28  ;;  %6452 = vmatmul.mubr.f32.gmra.mxu0 %v1187_v29  ;;  %v5001_v28 = vld [vmem:[%s9907_s2 + $0x508] sm:$0xff] }
  0xd5   : > { %6530 = vmatprep.subr.mxu0 %v8324_v59  ;;  %6581 = vmatprep.subr.mxu1 %v8324_v59 }
  0xd6   : > { %6504 = vmatprep.mubr.msk.f32.mxu1 %vm7638_vm0, %v8324_v59  ;;  %6531 = vmatpush3.msra.mxu0 %v4973_v32  ;;  %v5000_v32 = vld [vmem:[%s9907_s2 + $0x500] sm:$0xff] }
  0xd7   : > { %6582 = vmatpush3.msra.mxu1 %v4990_v33  ;;  %6532 = vmatprep.subr.mxu0 %v8324_v59 }
  0xd8   : > { %6505 = vmatmul.mubr.f32.gmra.mxu1 %v7606_v38  ;;  %6583 = vmatprep.subr.mxu1 %v8324_v59 }
  0xd9   : > { %6454 = vmatprep.mubr.msk.f32.mxu0 %vm7638_vm0, %v8324_v59  ;;  %6533 = vmatpush3.msra.mxu0 %v4972_v34 }
  0xda   : > { %6584 = vmatpush3.msra.mxu1 %v4989_v35  ;;  %6455 = vmatmul.mubr.f32.gmra.mxu0 %v1188_v36 }
  0xdb   : > { %6534 = vmatprep.subr.mxu0 %v8324_v59  ;;  %6585 = vmatprep.subr.mxu1 %v8324_v59 }
  0xdc   : > { %6507 = vmatprep.mubr.msk.f32.mxu1 %vm7638_vm0, %v8324_v59  ;;  %6535 = vmatpush3.msra.mxu0 %v4971_v39 }
  0xdd   : > { %6586 = vmatpush3.msra.mxu1 %v4988_v40  ;;  %6536 = vmatprep.subr.mxu0 %v8324_v59 }
  0xde   : > { %6508 = vmatmul.mubr.f32.gmra.mxu1 %v1319_v41  ;;  %6587 = vmatprep.subr.mxu1 %v8324_v59 }
  0xdf   : > { %6537 = vmatpush3.msra.mxu0 %v4970_v42  ;;  %6588 = vmatpush3.msra.mxu1 %v4987_v44 }
  0xe0   : > { %6538 = vmatprep.subr.mxu0 %v8324_v59  ;;  %6589 = vmatprep.subr.mxu1 %v8324_v59 }
  0xe1   : > { %6539 = vmatpush3.msra.mxu0 %v4969_v45  ;;  %6590 = vmatpush3.msra.mxu1 %v4986_v46 }
  0xe2   : > { %6540 = vmatprep.subr.mxu0 %v8324_v59  ;;  %6591 = vmatprep.subr.mxu1 %v8324_v59 }
  0xe3   : > { %6541 = vmatpush3.msra.mxu0 %v4968_v47  ;;  %6542 = vmatprep.mubr.msk.f32.mxu0 %vm7638_vm0, %v8324_v59 }
  0xe4   : > { %6592 = vmatpush3.msra.mxu1 %v4985_v48  ;;  %6543 = vmatmul.mubr.f32.vlgmr.msra.gmra.mxu0 %v1444_v50 }
  0xe5   : > { %6593 = vmatprep.subr.mxu1 %v8324_v59  ;;  %6616 = vmatprep.subr.mxu0 %v8324_v59 }
  0xe6   : > { %6594 = vmatpush3.msra.mxu1 %v4984_v51  ;;  %6595 = vmatprep.mubr.msk.f32.mxu1 %vm7638_vm0, %v8324_v59 }
  0xe7   : > { %6617 = vmatpush3.msra.mxu0 %v5015_v52  ;;  %6596 = vmatmul.mubr.f32.vlgmr.msra.gmra.mxu1 %v1575_v53 }
  0xe8   : > { %6618 = vmatprep.subr.mxu0 %v8324_v59  ;;  %6545 = vmatprep.mubr.msk.f32.mxu0 %vm7638_vm0, %v8324_v59 }
  0xe9   : > { %6619 = vmatpush3.msra.mxu0 %v5014_v54  ;;  %6598 = vmatprep.mubr.msk.f32.mxu1 %vm7638_vm0, %v8324_v59 }
  0xea   : > { %6546 = vmatmul.mubr.f32.gmra.mxu0 %v1445_v56  ;;  %6620 = vmatprep.subr.mxu0 %v8324_v59 }
  0xeb   : > { %6621 = vmatpush3.msra.mxu0 %v5013_v57  ;;  %6599 = vmatmul.mubr.f32.gmra.mxu1 %v1576_v58 }
  0xec   : > { %6622 = vmatprep.subr.mxu0 %v8324_v59  ;;  %6548 = vmatprep.mubr.msk.f32.mxu0 %vm7638_vm0, %v8324_v59 }
  0xed   : > { %6623 = vmatpush3.msra.mxu0 %v5012_v60  ;;  %6601 = vmatprep.mubr.msk.f32.mxu1 %vm7638_vm0, %v8324_v59  ;;  %v524_v63 = vpop.f32.mrf.mxu0 }
  0xee   : > { %6549 = vmatmul.mubr.f32.gmra.mxu0 %v1446_v61  ;;  %6624 = vmatprep.subr.mxu0 %v8324_v59 }
  0xef   : > { %6625 = vmatpush3.msra.mxu0 %v5011_v2  ;;  %6602 = vmatmul.mubr.f32.gmra.mxu1 %v1577_v62  ;;  %v624_v1 = vpop.f32.mrf.mxu1  ;;  %v6120_v3 = vpop.f32.mrf.mxu0 }
  0xf0   : > { %6626 = vmatprep.subr.mxu0 %v8324_v59  ;;  %6551 = vmatprep.mubr.msk.f32.mxu0 %vm7638_vm0, %v8324_v59 }
  0xf1   : > { %6627 = vmatpush3.msra.mxu0 %v5010_v0  ;;  %6604 = vmatprep.mubr.msk.f32.mxu1 %vm7638_vm0, %v8324_v59  ;;  %v6173_v7 = vpop.f32.mrf.mxu1 }
  0xf2   : > { %6552 = vmatmul.mubr.f32.gmra.mxu0 %v7950_v6  ;;  %6628 = vmatprep.subr.mxu0 %v8324_v59 }
  0xf3   : > { %6629 = vmatpush3.msra.mxu0 %v5009_v4  ;;  %6605 = vmatmul.mubr.f32.gmra.mxu1 %v1578_v5 }
  0xf4   : > { %6630 = vmatprep.subr.mxu0 %v8324_v59  ;;  %6554 = vmatprep.mubr.msk.f32.mxu0 %vm7638_vm0, %v8324_v59 }
  0xf5   : > { %6631 = vmatpush3.msra.mxu0 %v5008_v14  ;;  %6607 = vmatprep.mubr.msk.f32.mxu1 %vm7638_vm0, %v8324_v59  ;;  %v529_v6 = vpop.f32.mrf.mxu0 }
  0xf6   : > { %6555 = vmatmul.mubr.f32.gmra.mxu0 %v7973_v12  ;;  %6632 = vmatprep.subr.mxu0 %v8324_v59  ;;  %v1580_v12 = vld [vmem:[#allocation2 + $0x32] sm:$0xff] }
  0xf7   : > { %6633 = vmatpush3.msra.mxu0 %v5007_v8  ;;  %6608 = vmatmul.mubr.f32.gmra.mxu1 %v1579_v9  ;;  %v6123_v13 = vpop.f32.mrf.mxu0 }
  0xf8   : > { %6634 = vmatprep.subr.mxu0 %v8324_v59  ;;  %6557 = vmatprep.mubr.msk.f32.mxu0 %vm7638_vm0, %v8324_v59  ;;  %v629_v15 = vpop.f32.mrf.mxu1 }
  0xf9   : > { %6635 = vmatpush3.msra.mxu0 %v5006_v10  ;;  %6610 = vmatprep.mubr.msk.f32.mxu1 %vm7638_vm0, %v8324_v59  ;;  %v8574_v16 = vadd.f32 %v629_v15, %v529_v6  ;;  %v1965_v6 = vld [vmem:[%s9908_s3 + $0x78] sm:$0xff] }
  0xfa   : > { %6558 = vmatmul.mubr.f32.gmra.mxu0 %v1449_v11  ;;  %6636 = vmatprep.subr.mxu0 %v8324_v59  ;;  %v6176_v18 = vpop.f32.mrf.mxu1  ;;  %v1964_v11 = vld [vmem:[%s9908_s3 + $0x70] sm:$0xff] }
  0xfb   : > { %6637 = vmatpush3.msra.mxu0 %v5005_v19  ;;  %6611 = vmatmul.mubr.f32.gmra.mxu1 %v1580_v12  ;;  %v534_v21 = vpop.f32.mrf.mxu0  ;;  %v1963_v19 = vld [vmem:[%s9908_s3 + $0x68] sm:$0xff]  ;;  %v1961_v18 = vld [vmem:[%s9908_s3 + $0x58] sm:$0xff] }
  0xfc   : > { %6638 = vmatprep.subr.mxu0 %v8324_v59  ;;  %6560 = vmatprep.mubr.msk.f32.mxu0 %vm7638_vm0, %v8324_v59 }
  0xfd   : > { %6639 = vmatpush3.msra.mxu0 %v5004_v17  ;;  %6613 = vmatprep.mubr.msk.f32.mxu1 %vm7638_vm0, %v8324_v59  ;;  %v6126_v24 = vpop.f32.mrf.mxu0 }
  0xfe   : > { %6561 = vmatmul.mubr.f32.gmra.mxu0 %v1450_v20  ;;  %6640 = vmatprep.subr.mxu0 %v8324_v59  ;;  %v634_v26 = vpop.f32.mrf.mxu1 }
  0xff   : > { %6641 = vmatpush3.msra.mxu0 %v5003_v22  ;;  %6614 = vmatmul.mubr.f32.gmra.mxu1 %v1581_v23  ;;  %v635_v27 = vadd.f32 %v634_v26, %v534_v21  ;;  %v1960_v21 = vld [vmem:[%s9908_s3 + $0x50] sm:$0xff]  ;;  %v5033_v22 = vld [vmem:[%s9908_s3 + $0xf8] sm:$0xff] }
 0x100   : > { %6642 = vmatprep.subr.mxu0 %v8324_v59  ;;  %6648 = vmatprep.mubr.msk.f32.mxu0 %vm7638_vm0, %v8324_v59  ;;  %v6179_v29 = vpop.f32.mrf.mxu1 }
 0x101   : > { %6643 = vmatpush3.msra.mxu0 %v5002_v25  ;;  %v539_v30 = vpop.f32.mrf.mxu0  ;;  %6669 = vmatprep.subr.mxu1 %v5033_v22  ;;  %v1959_v25 = vld [vmem:[%s9908_s3 + $0x48] sm:$0xff]  ;;  %v1958_v29 = vld [vmem:[%s9908_s3 + $0x40] sm:$0xff] }
 0x102   : > { %6644 = vmatprep.subr.mxu0 %v8324_v59  ;;  %6670 = vmatpush3.msra.mxu1 %v5033_v22 }
 0x103   : > { %6645 = vmatpush3.msra.mxu0 %v5001_v28  ;;  %v6129_v33 = vpop.f32.mrf.mxu0 }
 0x104   : > { %6646 = vmatprep.subr.mxu0 %v8324_v59  ;;  %v639_v34 = vpop.f32.mrf.mxu1 }
 0x105   : > { %6647 = vmatpush3.msra.mxu0 %v5000_v32  ;;  %v640_v35 = vadd.f32 %v639_v34, %v539_v30  ;;  %v5031_v30 = vld [vmem:[%s9908_s3 + $0xe8] sm:$0xff]  ;;  %v5030_v32 = vld [vmem:[%s9908_s3 + $0xe0] sm:$0xff]  ;;  %v1957_v34 = vld [vmem:[%s9908_s3 + $0x38] sm:$0xff] }
 0x106   : > { %6649 = vmatmul.mubr.f32.vlgmr.msra.gmra.mxu0 %v8032_v31  ;;  %v6182_v36 = vpop.f32.mrf.mxu1  ;;  %6710 = vmatprep.subr.mxu0 %v1965_v6 }
 0x107   : > { %6651 = vmatprep.mubr.msk.f32.mxu0 %vm7638_vm0, %v8324_v59  ;;  %v544_v38 = vpop.f32.mrf.mxu0  ;;  %6711 = vmatpush3.msra.mxu0 %v1965_v6 }
 0x108   : > { %6712 = vmatprep.subr.mxu0 %v1964_v11  ;;  %v1956_v38 = vld [vmem:[%s9908_s3 + $0x30] sm:$0xff] }
 0x109   : > { %v6132_v39 = vpop.f32.mrf.mxu0  ;;  %6713 = vmatpush3.msra.mxu0 %v1964_v11 }
 0x10a   : > { %6652 = vmatmul.mubr.f32.gmra.mxu0 %v8056_v37  ;;  %v644_v40 = vpop.f32.mrf.mxu1  ;;  %6714 = vmatprep.subr.mxu0 %v1963_v19  ;;  %v5029_v39 = vld [vmem:[%s9908_s3 + $0xd8] sm:$0xff] }
 0x10b   : > { %6654 = vmatprep.mubr.msk.f32.mxu0 %vm7638_vm0, %v8324_v59  ;;  %6715 = vmatpush3.msra.mxu0 %v1963_v19  ;;  %v1955_v40 = vld [vmem:[%s9908_s3 + $0x28] sm:$0xff] }
 0x10c   : > { %v6185_v41 = vpop.f32.mrf.mxu1 }
 0x10d   : > { %v549_v42 = vpop.f32.mrf.mxu0  ;;  %v5028_v41 = vld [vmem:[%s9908_s3 + $0xd0] sm:$0xff] }
 0x10e   : > { %6655 = vmatmul.mubr.f32.gmra.mxu0 %v8079_v43  ;;  %v1711_v43 = vld [vmem:[#allocation2 + $0x33] sm:$0xff] }
 0x10f   : > { %6657 = vmatprep.mubr.msk.f32.mxu0 %vm7638_vm0, %v8324_v59  ;;  %v6135_v31 = vpop.f32.mrf.mxu0 }
 0x110   : > { %v649_v44 = vpop.f32.mrf.mxu1  ;;  %v1954_v31 = vld [vmem:[%s9908_s3 + $0x20] sm:$0xff] }
 0x111   : > { %v5027_v44 = vld [vmem:[%s9908_s3 + $0xc8] sm:$0xff] }
 0x112   : > { %6658 = vmatmul.mubr.f32.gmra.mxu0 %v8102_v49  ;;  %v6188_v45 = vpop.f32.mrf.mxu1  ;;  %v1712_v49 = vld [vmem:[#allocation2 + $0x3b] sm:$0xf] }
 0x113   : > { %6660 = vmatprep.mubr.msk.f32.mxu0 %vm7638_vm0, %v8324_v59  ;;  %v554_v37 = vpop.f32.mrf.mxu0 }
 0x115   : > { %v6138_v46 = vpop.f32.mrf.mxu0 }
 0x116   : > { %6661 = vmatmul.mubr.f32.gmra.mxu0 %v8125_v55  ;;  %v654_v47 = vpop.f32.mrf.mxu1 }
 0x117   : > { %6663 = vmatprep.mubr.msk.f32.mxu0 %vm7638_vm0, %v8324_v59  ;;  %v655_v48 = vadd.f32 %v654_v47, %v554_v37  ;;  %v1953_v37 = vld [vmem:[%s9908_s3 + $0x18] sm:$0xff]  ;;  %v5026_v47 = vld [vmem:[%s9908_s3 + $0xc0] sm:$0xff] }
 0x118   : > { %v6191_v50 = vpop.f32.mrf.mxu1 }
 0x119   : > { %v5025_v50 = vld [vmem:[%s9908_s3 + $0xb8] sm:$0xff] }
 0x11a   : > { %6664 = vmatmul.mubr.f32.gmra.mxu0 %v1711_v43  ;;  %v748_v51 = vpop.f32.mrf.mxu0  ;;  %v1952_v43 = vld [vmem:[%s9908_s3 + $0x10] sm:$0xff] }
 0x11b   : > { %6666 = vmatprep.mubr.msk.f32.mxu0 %vm7638_vm0, %v8324_v59 }
 0x11c   : > { %v6226_v52 = vpop.f32.mrf.mxu0 }
 0x11d   : > { %v879_v53 = vpop.f32.mrf.mxu1 }
 0x11e   : > { %6667 = vmatmul.mubr.f32.gmra.mxu0 %v1712_v49  ;;  %v1951_v49 = vld [vmem:[%s9908_s3 + $0x8] sm:$0xff]  ;;  %v5024_v53 = vld [vmem:[%s9908_s3 + $0xb0] sm:$0xff] }
 0x11f   : > { %v6279_v54 = vpop.f32.mrf.mxu1  ;;  %6742 = vmatprep.mubr.f32.mxu0 %v8324_v59 }
 0x120   : > { %v753_v55 = vpop.f32.mrf.mxu0 }
 0x121   : > { %v783_v56 = vadd.f32 %v753_v55, %v8574_v16  ;;  %v1962_v16 = vld [vmem:[%s9908_s3 + $0x60] sm:$0xff] }
 0x122   : > { %v6229_v57 = vpop.f32.mrf.mxu0  ;;  %6716 = vmatprep.subr.mxu0 %v1962_v16  ;;  %v1950_v55 = vld [vmem:[%s9908_s3] sm:$0xff] }
 0x123   : > { %6717 = vmatpush3.msra.mxu0 %v1962_v16 }
 0x124   : > { %v884_v58 = vpop.f32.mrf.mxu1  ;;  %6718 = vmatprep.subr.mxu0 %v1961_v18 }
 0x125   : > { %v8622_v60 = vadd.f32 %v884_v58, %v783_v56  ;;  %6719 = vmatpush3.msra.mxu0 %v1961_v18  ;;  %v5023_v56 = vld [vmem:[%s9908_s3 + $0xa8] sm:$0xff]  ;;  %v8715_v58 = vld [vmem:[%s9908_s3 + $0x1f8] sm:$0xff] }
 0x126   : > { %v758_v61 = vpop.f32.mrf.mxu0  ;;  %v6282_v2 = vpop.f32.mrf.mxu1  ;;  %6720 = vmatprep.subr.mxu0 %v1960_v21 }
 0x127   : > { %v784_v62 = vadd.f32 %v758_v61, %v635_v27  ;;  %6721 = vmatpush3.msra.mxu0 %v1960_v21  ;;  %v5032_v27 = vld [vmem:[%s9908_s3 + $0xf0] sm:$0xff]  ;;  %v5022_v61 = vld [vmem:[%s9908_s3 + $0xa0] sm:$0xff] }
 0x128   : > { %v6232_v63 = vpop.f32.mrf.mxu0  ;;  %6722 = vmatprep.subr.mxu0 %v1959_v25  ;;  %6671 = vmatprep.subr.mxu1 %v5032_v27 }
 0x129   : > { %6723 = vmatpush3.msra.mxu0 %v1959_v25  ;;  %6672 = vmatpush3.msra.mxu1 %v5032_v27 }
 0x12a   : > { %v889_v0 = vpop.f32.mrf.mxu1  ;;  %6724 = vmatprep.subr.mxu0 %v1958_v29  ;;  %6673 = vmatprep.subr.mxu1 %v5031_v30 }
 0x12b   : > { %v8624_v1 = vadd.f32 %v889_v0, %v784_v62  ;;  %6725 = vmatpush3.msra.mxu0 %v1958_v29  ;;  %6674 = vmatpush3.msra.mxu1 %v5031_v30  ;;  %v5021_v0 = vld [vmem:[%s9908_s3 + $0x98] sm:$0xff] }
 0x12c   : > { %v763_v3 = vpop.f32.mrf.mxu0  ;;  %v6285_v4 = vpop.f32.mrf.mxu1  ;;  %6726 = vmatprep.subr.mxu0 %v1957_v34  ;;  %6675 = vmatprep.subr.mxu1 %v5030_v32 }
 0x12d   : > { %v785_v5 = vadd.f32 %v763_v3, %v640_v35  ;;  %6727 = vmatpush3.msra.mxu0 %v1957_v34  ;;  %6676 = vmatpush3.msra.mxu1 %v5030_v32  ;;  %v5020_v4 = vld [vmem:[%s9908_s3 + $0x90] sm:$0xff] }
 0x12e   : > { %v6235_v7 = vpop.f32.mrf.mxu0  ;;  %6728 = vmatprep.subr.mxu0 %v1956_v38  ;;  %6677 = vmatprep.subr.mxu1 %v5029_v39 }
 0x12f   : > { %6729 = vmatpush3.msra.mxu0 %v1956_v38  ;;  %6678 = vmatpush3.msra.mxu1 %v5029_v39 }
 0x130   : > { %v894_v14 = vpop.f32.mrf.mxu1  ;;  %6730 = vmatprep.subr.mxu0 %v1955_v40  ;;  %6679 = vmatprep.subr.mxu1 %v5028_v41 }
 0x131   : > { %v8626_v59 = vadd.f32 %v894_v14, %v785_v5  ;;  %6731 = vmatpush3.msra.mxu0 %v1955_v40  ;;  %6680 = vmatpush3.msra.mxu1 %v5028_v41 }
 0x132   : > { %v768_v8 = vpop.f32.mrf.mxu0  ;;  %v6288_v9 = vpop.f32.mrf.mxu1  ;;  %6732 = vmatprep.subr.mxu0 %v1954_v31  ;;  %6681 = vmatprep.subr.mxu1 %v5027_v44 }
 0x133   : > { %6733 = vmatpush3.msra.mxu0 %v1954_v31  ;;  %6682 = vmatpush3.msra.mxu1 %v5027_v44 }
 0x134   : > { %v6238_v10 = vpop.f32.mrf.mxu0  ;;  %6734 = vmatprep.subr.mxu0 %v1953_v37  ;;  %6683 = vmatprep.subr.mxu1 %v5026_v47 }
 0x135   : > { %6735 = vmatpush3.msra.mxu0 %v1953_v37  ;;  %6684 = vmatpush3.msra.mxu1 %v5026_v47  ;;  %v5018_v10 = vld [vmem:[%s9908_s3 + $0x80] sm:$0xff] }
 0x136   : > { %v899_v13 = vpop.f32.mrf.mxu1  ;;  %6736 = vmatprep.subr.mxu0 %v1952_v43  ;;  %6685 = vmatprep.subr.mxu1 %v5025_v50 }
 0x137   : > { %6737 = vmatpush3.msra.mxu0 %v1952_v43  ;;  %6686 = vmatpush3.msra.mxu1 %v5025_v50  ;;  %v8738_v13 = vld [vmem:[%s9908_s3 + $0x178] sm:$0xff] }
 0x138   : > { %v773_v12 = vpop.f32.mrf.mxu0  ;;  %v6291_v15 = vpop.f32.mrf.mxu1  ;;  %6738 = vmatprep.subr.mxu0 %v1951_v49  ;;  %6687 = vmatprep.subr.mxu1 %v5024_v53 }
 0x139   : > { %6739 = vmatpush3.msra.mxu0 %v1951_v49  ;;  %6688 = vmatpush3.msra.mxu1 %v5024_v53 }
 0x13a   : > { %v6241_v17 = vpop.f32.mrf.mxu0  ;;  %6740 = vmatprep.subr.mxu0 %v1950_v55  ;;  %6689 = vmatprep.subr.mxu1 %v5023_v56 }
 0x13b   : > { %6741 = vmatpush3.msra.mxu0 %v1950_v55  ;;  %6690 = vmatpush3.msra.mxu1 %v5023_v56 }
 0x13c   : > { %v904_v20 = vpop.f32.mrf.mxu1  ;;  %6792 = vmatprep.subr.mxu0 %v8715_v58  ;;  %6691 = vmatprep.subr.mxu1 %v5022_v61 }
 0x13d   : > { %6692 = vmatpush3.msra.mxu1 %v5022_v61 }
 0x13e   : > { %v778_v23 = vpop.f32.mrf.mxu0  ;;  %v6294_v24 = vpop.f32.mrf.mxu1  ;;  %6693 = vmatprep.subr.mxu1 %v5021_v0 }
 0x13f   : > { %v788_v26 = vadd.f32 %v778_v23, %v655_v48  ;;  %6694 = vmatpush3.msra.mxu1 %v5021_v0 }
 0x140   : > { %v6244_v28 = vpop.f32.mrf.mxu0  ;;  %6695 = vmatprep.subr.mxu1 %v5020_v4 }
 0x141   : > { %6696 = vmatpush3.msra.mxu1 %v5020_v4 }
 0x142   : > { %v909_v33 = vpop.f32.mrf.mxu1 }
 0x143   : > { %v8667_v35 = vadd.f32 %v909_v33, %v788_v26 }
 0x144   : > { %v6297_v36 = vpop.f32.mrf.mxu1 }
 0x148   : > { %v1010_v42 = vpop.f32.mrf.mxu0 }
 0x14a   : > { %v6332_v45 = vpop.f32.mrf.mxu0 }
 0x14b   : > { %v1141_v46 = vpop.f32.mrf.mxu1 }
 0x14d   : > { %v6385_v48 = vpop.f32.mrf.mxu1 }
 0x14e   : > { %v1015_v51 = vpop.f32.mrf.mxu0 }
 0x14f   : > { %v1045_v52 = vadd.f32 %v1015_v51, %v8622_v60 }
 0x150   : > { %v6335_v54 = vpop.f32.mrf.mxu0 }
 0x152   : > { %v1146_v57 = vpop.f32.mrf.mxu1 }
 0x153   : > { %v1176_v60 = vadd.f32 %v1146_v57, %v1045_v52 }
 0x154   : > { %v1020_v2 = vpop.f32.mrf.mxu0  ;;  %v6388_v62 = vpop.f32.mrf.mxu1 }
 0x155   : > { %v1046_v63 = vadd.f32 %v1020_v2, %v8624_v1  ;;  %v5019_v1 = vld [vmem:[%s9908_s3 + $0x88] sm:$0xff] }
 0x156   : > { %v6338_v3 = vpop.f32.mrf.mxu0  ;;  %6697 = vmatprep.subr.mxu1 %v5019_v1 }
 0x157   : > { %6698 = vmatpush3.msra.mxu1 %v5019_v1 }
 0x158   : > { %v1151_v5 = vpop.f32.mrf.mxu1  ;;  %6699 = vmatprep.subr.mxu1 %v5018_v10 }
 0x159   : > { %v1177_v7 = vadd.f32 %v1151_v5, %v1046_v63  ;;  %6700 = vmatpush3.msra.mxu1 %v5018_v10 }
 0x15a   : > { %v1025_v14 = vpop.f32.mrf.mxu0  ;;  %v6391_v8 = vpop.f32.mrf.mxu1  ;;  %6751 = vmatprep.subr.mxu1 %v8738_v13 }
 0x15b   : > { %v1047_v9 = vadd.f32 %v1025_v14, %v8626_v59 }
 0x15c   : > { %v6341_v6 = vpop.f32.mrf.mxu0 }
 0x15e   : > { %v1156_v11 = vpop.f32.mrf.mxu1 }
 0x15f   : > { %v1178_v19 = vadd.f32 %v1156_v11, %v1047_v9 }
 0x160   : > { %v1030_v12 = vpop.f32.mrf.mxu0  ;;  %v6394_v15 = vpop.f32.mrf.mxu1 }
 0x162   : > { %v6344_v59 = vpop.f32.mrf.mxu0 }
 0x164   : > { %v1161_v16 = vpop.f32.mrf.mxu1 }
 0x166   : > { %v1035_v17 = vpop.f32.mrf.mxu0  ;;  %v6397_v18 = vpop.f32.mrf.mxu1 }
 0x168   : > { %v6347_v20 = vpop.f32.mrf.mxu0 }
 0x16a   : > { %v1166_v21 = vpop.f32.mrf.mxu1 }
 0x16c   : > { %v1040_v22 = vpop.f32.mrf.mxu0  ;;  %v6400_v23 = vpop.f32.mrf.mxu1 }
 0x16d   : > { %v1050_v24 = vadd.f32 %v1040_v22, %v8667_v35 }
 0x16e   : > { %v6350_v25 = vpop.f32.mrf.mxu0 }
 0x170   : > { %v1171_v26 = vpop.f32.mrf.mxu1 }
 0x171   : > { %v8742_v27 = vadd.f32 %v1171_v26, %v1050_v24 }
 0x172   : > { %v6403_v28 = vpop.f32.mrf.mxu1 }
 0x176   : > { %v1272_v29 = vpop.f32.mrf.mxu0 }
 0x177   : > { %v1876_v29 = vlaneseq }
 0x178   : > { %v6438_v30 = vpop.f32.mrf.mxu0 }
 0x179   : > { %v1403_v32 = vpop.f32.mrf.mxu1 }
 0x17a   : > { %v8748_v32 = vshrl.u32 %v1876_v29, 7 }
 0x17b   : > { %v6491_v33 = vpop.f32.mrf.mxu1 }
 0x17c   : > { %v1277_v34 = vpop.f32.mrf.mxu0 }
 0x17d   : > { %v1307_v36 = vadd.f32 %v1277_v34, %v1176_v60 }
 0x17e   : > { %v6441_v38 = vpop.f32.mrf.mxu0 }
 0x17f   : > { %v1878_v38 = vadd.s32 8, %v8748_v32 }
 0x180   : > { %v1408_v39 = vpop.f32.mrf.mxu1 }
 0x181   : > { %v1438_v40 = vadd.f32 %v1408_v39, %v1307_v36 }
 0x182   : > { %v1282_v41 = vpop.f32.mrf.mxu0  ;;  %v6494_v42 = vpop.f32.mrf.mxu1 }
 0x183   : > { %v1308_v31 = vadd.f32 %v1282_v41, %v1177_v7  ;;  %v8754_v42 = vld [vmem:[%s9911_s6] ss:$0 sm:$0xff] }
 0x184   : > { %v6444_v44 = vpop.f32.mrf.mxu0 }
 0x186   : > { %v1413_v45 = vpop.f32.mrf.mxu1 }
 0x187   : > { %v1439_v35 = vadd.f32 %v1413_v45, %v1308_v31  ;;  %v8759_v45 = vld [vmem:[%s9912_s7] ss:$0 sm:$0xff] }
 0x188   : > { %v1287_v37 = vpop.f32.mrf.mxu0  ;;  %v6497_v46 = vpop.f32.mrf.mxu1 }
 0x189   : > { %v1309_v47 = vadd.f32 %v1287_v37, %v1178_v19  ;;  %v1886_v37 = vadd.s32 4294967286, %v1878_v38  ;;  %v5044_v38 = vld [vmem:[%s9908_s3 + $0x150] sm:$0xff] }
 0x18a   : > { %v6447_v43 = vpop.f32.mrf.mxu0 }
 0x18b   : > { %vm1893_vm1 = vcmp.ge.s32.totalorder %v1886_v37, 0  ;;  %v5041_v37 = vld [vmem:[%s9908_s3 + $0x138] sm:$0xff] }
 0x18c   : > { %v1418_v48 = vpop.f32.mrf.mxu1 }
 0x18d   : > { %v1440_v50 = vadd.f32 %v1418_v48, %v1309_v47 }
 0x18e   : > { %v1292_v51 = vpop.f32.mrf.mxu0  ;;  %v6500_v49 = vpop.f32.mrf.mxu1 }
 0x190   : > { %v6450_v52 = vpop.f32.mrf.mxu0 }
 0x191   : > { %v1880_v52 = vadd.s32 24, %v8748_v32 }
 0x192   : > { %v1423_v53 = vpop.f32.mrf.mxu1 }
 0x194   : > { %v1297_v54 = vpop.f32.mrf.mxu0  ;;  %v6503_v55 = vpop.f32.mrf.mxu1 }
 0x196   : > { %v6453_v56 = vpop.f32.mrf.mxu0 }
 0x198   : > { %v1428_v57 = vpop.f32.mrf.mxu1 }
 0x19a   : > { %v1302_v60 = vpop.f32.mrf.mxu0  ;;  %v6506_v61 = vpop.f32.mrf.mxu1 }
 0x19b   : > { %v1312_v57 = vadd.f32 %v1302_v60, %v8742_v27  ;;  %v5063_v27 = vld [vmem:[%s9908_s3 + $0x1e8] sm:$0xff] }
 0x19c   : > { %v6456_v2 = vpop.f32.mrf.mxu0 }
 0x19e   : > { %v8744_v62 = vpop.f32.mrf.mxu1 }
 0x1a0   : > { %v6509_v63 = vpop.f32.mrf.mxu1 }
 0x1a1   : > { %v5064_v63 = vld [vmem:[%s9908_s3 + $0x1f0] sm:$0xff] }
 0x1a4   : > { %v1534_v0 = vpop.f32.mrf.mxu0 }
 0x1a5   : > { %v1888_v0 = vadd.s32 4294967286, %v1880_v52  ;;  %v5037_v52 = vld [vmem:[%s9908_s3 + $0x118] sm:$0xff] }
 0x1a6   : > { %v6544_v3 = vpop.f32.mrf.mxu0 }
 0x1a7   : > { %v1665_v4 = vpop.f32.mrf.mxu1  ;;  %vm1902_vm2 = vcmp.lt.s32.totalorder %v1888_v0, 16  ;;  %v5081_v0 = vld [vmem:[%s9908_s3 + $0x278] sm:$0xff] }
 0x1a9   : > { %v6597_v5 = vpop.f32.mrf.mxu1 }
 0x1aa   : > { %v1539_v7 = vpop.f32.mrf.mxu0 }
 0x1ab   : > { %v1670_v1 = vpop.f32.mrf.mxu1  ;;  %v1569_v33 = vadd.f32 %v1539_v7, %v1438_v40  ;;  %v1443_v7 = vadd.f32 %v8744_v62, %v1312_v57  ;;  %v5097_v57 = vld [vmem:[%s9908_s3 + $0x2f8] sm:$0xff] }
 0x1ac   : > { %v6547_v14 = vpop.f32.mrf.mxu0 }
 0x1ad   : > { %v6600_v8 = vpop.f32.mrf.mxu1  ;;  %v1700_v39 = vadd.f32 %v1670_v1, %v1569_v33  ;;  %v5062_v14 = vld [vmem:[%s9908_s3 + $0x1e0] sm:$0xff]  ;;  %v5057_v33 = vld [vmem:[%s9908_s3 + $0x1b8] sm:$0xff] }
 0x1ae   : > { %v1544_v9 = vpop.f32.mrf.mxu0 }
 0x1af   : > { %v1675_v6 = vpop.f32.mrf.mxu1  ;;  %v1570_v41 = vadd.f32 %v1544_v9, %v1439_v35 }
 0x1b0   : > { %v6550_v10 = vpop.f32.mrf.mxu0 }
 0x1b1   : > { %v6603_v11 = vpop.f32.mrf.mxu1  ;;  %v1701_v46 = vadd.f32 %v1675_v6, %v1570_v41  ;;  %v5061_v6 = vld [vmem:[%s9908_s3 + $0x1d8] sm:$0xff]  ;;  %v5043_v41 = vld [vmem:[%s9908_s3 + $0x148] sm:$0xff] }
 0x1b2   : > { %v1549_v19 = vpop.f32.mrf.mxu0 }
 0x1b3   : > { %v1680_v12 = vpop.f32.mrf.mxu1  ;;  %v1571_v47 = vadd.f32 %v1549_v19, %v1440_v50 }
 0x1b4   : > { %v6553_v15 = vpop.f32.mrf.mxu0 }
 0x1b5   : > { %v6606_v59 = vpop.f32.mrf.mxu1  ;;  %v1702_v53 = vadd.f32 %v1680_v12, %v1571_v47  ;;  %v5060_v12 = vld [vmem:[%s9908_s3 + $0x1d0] sm:$0xff] }
 0x1b6   : > { %v1554_v16 = vpop.f32.mrf.mxu0  ;;  %v5040_v47 = vld [vmem:[%s9908_s3 + $0x130] sm:$0xff] }
 0x1b7   : > { %v1685_v17 = vpop.f32.mrf.mxu1 }
 0x1b8   : > { %v6556_v18 = vpop.f32.mrf.mxu0  ;;  %v5048_v17 = vld [vmem:[%s9908_s3 + $0x170] sm:$0xff] }
 0x1b9   : > { %v6609_v20 = vpop.f32.mrf.mxu1  ;;  %v5059_v18 = vld [vmem:[%s9908_s3 + $0x1c8] sm:$0xff] }
 0x1ba   : > { %v1559_v21 = vpop.f32.mrf.mxu0  ;;  %v8797_v20 = vld [vmem:[#allocation3] sm:$0xff] }
 0x1bb   : > { %v1690_v22 = vpop.f32.mrf.mxu1 }
 0x1bc   : > { %v6559_v23 = vpop.f32.mrf.mxu0  ;;  %v5047_v22 = vld [vmem:[%s9908_s3 + $0x168] sm:$0xff] }
 0x1bd   : > { %v6612_v24 = vpop.f32.mrf.mxu1  ;;  %v5058_v23 = vld [vmem:[%s9908_s3 + $0x1c0] sm:$0xff] }
 0x1be   : > { %v1564_v25 = vpop.f32.mrf.mxu0 }
 0x1bf   : > { %v8746_v26 = vpop.f32.mrf.mxu1 }
 0x1c0   : > { %v6562_v28 = vpop.f32.mrf.mxu0 }
 0x1c1   : > { %v6615_v30 = vpop.f32.mrf.mxu1 }
 0x1c2   : > { %v5045_v30 = vld [vmem:[%s9908_s3 + $0x158] sm:$0xff] }
 0x1c6   : > { %v1796_v34 = vpop.f32.mrf.mxu0 }
 0x1c8   : > { %v6650_v36 = vpop.f32.mrf.mxu0 }
 0x1c9   : > { %v8825_v36 = vld [vmem:[#allocation3 + $0x21] sm:$0xff] }
 0x1ca   : > { %v1801_v31 = vpop.f32.mrf.mxu0 }
 0x1cb   : > { %v1831_v44 = vadd.f32 %v1801_v31, %v1700_v39  ;;  %v1949_v39 = vld [vmem:[#allocation3 + $0x28] sm:$0x3]  ;;  %v5056_v31 = vld [vmem:[%s9908_s3 + $0x1b0] sm:$0xff] }
 0x1cc   : > { %v6653_v40 = vpop.f32.mrf.mxu0 }
 0x1cd   : > { %v1842_v43 = vmul.f32 %v8754_v42, %v1831_v44  ;;  %v5042_v44 = vld [vmem:[%s9908_s3 + $0x140] sm:$0xff] }
 0x1ce   : > { %v1806_v48 = vpop.f32.mrf.mxu0 }
 0x1cf   : > { %v1853_v35 = vadd.f32 %v8759_v45, %v1842_v43  ;;  %v1832_v51 = vadd.f32 %v1806_v48, %v1701_v46  ;;  %v5055_v46 = vld [vmem:[%s9908_s3 + $0x1a8] sm:$0xff]  ;;  %v5054_v43 = vld [vmem:[%s9908_s3 + $0x1a0] sm:$0xff] }
 0x1d0   : > { %v6656_v49 = vpop.f32.mrf.mxu0  ;;  %v5039_v48 = vld [vmem:[%s9908_s3 + $0x128] sm:$0xff] }
 0x1d1   : > { %v1860_v54 = vmax.f32 %v1853_v35, 0.0  ;;  %v1843_v55 = vmul.f32 %v8754_v42, %v1832_v51  ;;  %v5053_v35 = vld [vmem:[%s9908_s3 + $0x198] sm:$0xff]  ;;  %v5038_v51 = vld [vmem:[%s9908_s3 + $0x120] sm:$0xff]  ;;  %v5052_v49 = vld [vmem:[%s9908_s3 + $0x190] sm:$0xff] }
 0x1d2   : > { %v1811_v56 = vpop.f32.mrf.mxu0 }
 0x1d3   : > { %v1928_v61 = vsel %vm1893_vm1, %v1860_v54, 0.0  ;;  %v1854_v50 = vadd.f32 %v8759_v45, %v1843_v55  ;;  %v1833_v2 = vadd.f32 %v1811_v56, %v1702_v53  ;;  %7609 = vmatmul.mubr.msk.f32.vlgmr.msra.gmra.mxu0 %vm1893_vm1, %v1860_v54  ;;  %v5051_v53 = vld [vmem:[%s9908_s3 + $0x188] sm:$0xff]  ;;  %v5036_v54 = vld [vmem:[%s9908_s3 + $0x110] sm:$0xff]  ;;  %v5050_v55 = vld [vmem:[%s9908_s3 + $0x180] sm:$0xff] }
 0x1d4   : > { %1935 = vst [vmem:[#allocation3 + $0x8] sm:$0xff] %v1928_v61  ;;  %v6659_v3 = vpop.f32.mrf.mxu0  ;;  %6793 = vmatpush3.msra.mxu0 %v8715_v58  ;;  %v1574_v58 = vadd.f32 %v1564_v25, %v1443_v7  ;;  %v5035_v56 = vld [vmem:[%s9908_s3 + $0x108] sm:$0xff]  ;;  %v5094_v7 = vld [vmem:[%s9908_s3 + $0x2e0] sm:$0xff] }
 0x1d5   : > { %v1861_v4 = vmax.f32 %v1854_v50, 0.0  ;;  %v1844_v5 = vmul.f32 %v8754_v42, %v1833_v2  ;;  %6794 = vmatprep.subr.mxu0 %v5064_v63  ;;  %v5034_v50 = vld [vmem:[%s9908_s3 + $0x100] sm:$0xff] }
 0x1d6   : > { %v1816_v60 = vpop.f32.mrf.mxu0  ;;  %6795 = vmatpush3.msra.mxu0 %v5064_v63  ;;  %v1705_v15 = vadd.f32 %v8746_v26, %v1574_v58  ;;  %v5046_v26 = vld [vmem:[%s9908_s3 + $0x160] sm:$0xff]  ;;  %v5096_v63 = vld [vmem:[%s9908_s3 + $0x2f0] sm:$0xff] }
 0x1d7   : > { %1936 = vst [vmem:[#allocation3 + $0x10] sm:$0xff] %v1861_v4  ;;  %v1855_v1 = vadd.f32 %v8759_v45, %v1844_v5  ;;  %6745 = vmatprep.mubr.f32.mxu0 %v1861_v4  ;;  %6796 = vmatprep.subr.mxu0 %v5063_v27  ;;  %v5095_v4 = vld [vmem:[%s9908_s3 + $0x2e8] sm:$0xff]  ;;  %v5080_v60 = vld [vmem:[%s9908_s3 + $0x270] sm:$0xff] }
 0x1d8   : > { %v6662_v8 = vpop.f32.mrf.mxu0  ;;  %6797 = vmatpush3.msra.mxu0 %v5063_v27 }
 0x1d9   : > { %v1862_v9 = vmax.f32 %v1855_v1, 0.0  ;;  %6798 = vmatprep.subr.mxu0 %v5062_v14  ;;  %v2307_v1 = vld [vmem:[#allocation3 + $0x23] sm:$0xff] }
 0x1da   : > { %v1821_v62 = vpop.f32.mrf.mxu0  ;;  %6799 = vmatpush3.msra.mxu0 %v5062_v14  ;;  %v2308_v14 = vld [vmem:[#allocation3 + $0x2b] sm:$0x3] }
 0x1db   : > { %v1930_v10 = vsel %vm1902_vm2, %v1862_v9, 0.0  ;;  %v1966_v11 = vld [vmem:[#allocation3 + $0x1] sm:$0xff]  ;;  %6800 = vmatprep.subr.mxu0 %v5061_v6  ;;  %7610 = vmatmul.mubr.msk.f32.gmra.mxu0 %vm1902_vm2, %v1862_v9  ;;  %v5093_v9 = vld [vmem:[%s9908_s3 + $0x2d8] sm:$0xff]  ;;  %v5092_v62 = vld [vmem:[%s9908_s3 + $0x2d0] sm:$0xff] }
 0x1dc   : > { %1937 = vst [vmem:[#allocation3 + $0x18] sm:$0xff] %v1930_v10  ;;  %v6665_v19 = vpop.f32.mrf.mxu0  ;;  %6701 = vmatprep.mubr.f32.mxu1 %v1966_v11  ;;  %6801 = vmatpush3.msra.mxu0 %v5061_v6  ;;  %v2179_v40 = vld [vmem:[#allocation3 + $0x2] sm:$0xff] }
 0x1dd   : > { %6748 = vmatprep.mubr.f32.mxu0 %v8797_v20  ;;  %6802 = vmatprep.subr.mxu0 %v5060_v12  ;;  %v5079_v8 = vld [vmem:[%s9908_s3 + $0x268] sm:$0xff]  ;;  %v5078_v6 = vld [vmem:[%s9908_s3 + $0x260] sm:$0xff] }
 0x1de   : > { %v1826_v59 = vpop.f32.mrf.mxu0  ;;  %v8789_v16 = vld [vmem:[#allocation3 + $0x9] sm:$0xff]  ;;  %6803 = vmatpush3.msra.mxu0 %v5060_v12  ;;  %v5077_v12 = vld [vmem:[%s9908_s3 + $0x258] sm:$0xff] }
 0x1df   : > { %v1836_v21 = vadd.f32 %v1826_v59, %v1705_v15  ;;  %6702 = vmatmul.mubr.f32.vlgmr.msra.gmra.mxu1 %v8789_v16  ;;  %6804 = vmatprep.subr.mxu0 %v5059_v18  ;;  %v2304_v61 = vld [vmem:[#allocation3 + $0xb] sm:$0xff]  ;;  %v8922_v11 = vld [vmem:[#allocation3 + $0x22] sm:$0xff] }
 0x1e0   : > { %6752 = vmatpush3.msra.mxu1 %v8738_v13  ;;  %v6668_v24 = vpop.f32.mrf.mxu0  ;;  %6805 = vmatpush3.msra.mxu0 %v5059_v18  ;;  %v8892_v3 = vld [vmem:[#allocation3 + $0xa] sm:$0xff]  ;;  %v5090_v18 = vld [vmem:[%s9908_s3 + $0x2c0] sm:$0xff] }
 0x1e1   : > { %v1847_v25 = vmul.f32 %v8754_v42, %v1836_v21  ;;  %6753 = vmatprep.subr.mxu1 %v5048_v17  ;;  %6806 = vmatprep.subr.mxu0 %v5058_v23  ;;  %v1971_v42 = vld [vmem:[#allocation3 + $0x29] sm:$0x3]  ;;  %v5076_v59 = vld [vmem:[%s9908_s3 + $0x250] sm:$0xff] }
 0x1e2   : > { %6754 = vmatpush3.msra.mxu1 %v5048_v17  ;;  %6807 = vmatpush3.msra.mxu0 %v5058_v23  ;;  %v2551_v10 = vld [vmem:[#allocation3 + $0x5] sm:$0xff]  ;;  %v5088_v24 = vld [vmem:[%s9908_s3 + $0x2b0] sm:$0xff] }
 0x1e3   : > { %v1858_v13 = vadd.f32 %v8759_v45, %v1847_v25  ;;  %6755 = vmatprep.subr.mxu1 %v5047_v22  ;;  %v8813_v28 = vld [vmem:[#allocation3 + $0x11] sm:$0xff]  ;;  %v8815_v29 = vld [vmem:[#allocation3 + $0x19] sm:$0xff]  ;;  %6808 = vmatprep.subr.mxu0 %v5057_v33  ;;  %v2303_v45 = vld [vmem:[#allocation3 + $0x3] sm:$0xff] }
 0x1e4   : > { %6704 = vmatprep.mubr.f32.mxu1 %v8813_v28  ;;  %6756 = vmatpush3.msra.mxu1 %v5047_v22  ;;  %v2305_v2 = vld [vmem:[#allocation3 + $0x13] sm:$0xff]  ;;  %v2306_v5 = vld [vmem:[#allocation3 + $0x1b] sm:$0xff]  ;;  %v2184_v19 = vld [vmem:[#allocation3 + $0x2a] sm:$0x3] }
 0x1e5   : > { %v1865_v34 = vmax.f32 %v1858_v13, 0.0  ;;  %6757 = vmatprep.subr.mxu1 %v5046_v26  ;;  %6705 = vmatmul.mubr.f32.gmra.mxu1 %v8815_v29  ;;  %v8898_v27 = vld [vmem:[#allocation3 + $0x12] sm:$0xff]  ;;  %v8910_v58 = vld [vmem:[#allocation3 + $0x1a] sm:$0xff]  ;;  %v5091_v15 = vld [vmem:[%s9908_s3 + $0x2c8] sm:$0xff] }
 0x1e6   : > { %6758 = vmatpush3.msra.mxu1 %v5046_v26  ;;  %6707 = vmatprep.mubr.f32.mxu1 %v8825_v36  ;;  %v2427_v17 = vld [vmem:[#allocation3 + $0x4] sm:$0xff]  ;;  %v5089_v22 = vld [vmem:[%s9908_s3 + $0x2b8] sm:$0xff]  ;;  %v5072_v13 = vld [vmem:[%s9908_s3 + $0x230] sm:$0xff] }
 0x1e7   : > { %1872 = vst [vmem:[#allocation3 + $0x30] sm:$0xf] %v1865_v34  ;;  %6759 = vmatprep.subr.mxu1 %v5045_v30  ;;  %6749 = vmatmul.mubr.f32.gmra.mxu0 %v1949_v39  ;;  %v5075_v21 = vld [vmem:[%s9908_s3 + $0x248] sm:$0xff]  ;;  %v5074_v23 = vld [vmem:[%s9908_s3 + $0x240] sm:$0xff]  ;;  %v5073_v25 = vld [vmem:[%s9908_s3 + $0x238] sm:$0xff] }
 0x1e8   : > { %1940 = vst [vmem:[#allocation3 + $0x30] sm:$0xf] %v8797_v20  ;;  %6760 = vmatpush3.msra.mxu1 %v5045_v30  ;;  %6809 = vmatpush3.msra.mxu0 %v5057_v33  ;;  %v5087_v26 = vld [vmem:[%s9908_s3 + $0x2a8] sm:$0xff]  ;;  %v5086_v30 = vld [vmem:[%s9908_s3 + $0x2a0] sm:$0xff]  ;;  %v5085_v34 = vld [vmem:[%s9908_s3 + $0x298] sm:$0xff] }
 0x1e9   : > { %6761 = vmatprep.subr.mxu1 %v5044_v38  ;;  %6708 = vmatmul.mubr.f32.gmra.mxu1 %v1971_v42  ;;  %v5071_v33 = vld [vmem:[%s9908_s3 + $0x228] sm:$0xff]  ;;  %v5084_v39 = vld [vmem:[%s9908_s3 + $0x290] sm:$0xff] }
 0x1ea   : > { %6762 = vmatpush3.msra.mxu1 %v5044_v38  ;;  %6810 = vmatprep.subr.mxu0 %v5056_v31  ;;  %v5070_v38 = vld [vmem:[%s9908_s3 + $0x220] sm:$0xff]  ;;  %v5083_v42 = vld [vmem:[%s9908_s3 + $0x288] sm:$0xff] }
 0x1eb   : > { %6763 = vmatprep.subr.mxu1 %v5043_v41  ;;  %6824 = vmatprep.mubr.f32.mxu0 %v2303_v45  ;;  %v5067_v45 = vld [vmem:[%s9908_s3 + $0x208] sm:$0xff] }
 0x1ec   : > { %6764 = vmatpush3.msra.mxu1 %v5043_v41  ;;  %6783 = vmatprep.mubr.f32.mxu1 %v2179_v40  ;;  %v5069_v41 = vld [vmem:[%s9908_s3 + $0x218] sm:$0xff]  ;;  %v2552_v40 = vld [vmem:[#allocation3 + $0xd] sm:$0xff] }
 0x1ed   : > { %6765 = vmatprep.subr.mxu1 %v5042_v44  ;;  %6811 = vmatpush3.msra.mxu0 %v5056_v31  ;;  %v5068_v31 = vld [vmem:[%s9908_s3 + $0x210] sm:$0xff] }
 0x1ee   : > { %6766 = vmatpush3.msra.mxu1 %v5042_v44  ;;  %6812 = vmatprep.subr.mxu0 %v5055_v46  ;;  %v5082_v44 = vld [vmem:[%s9908_s3 + $0x280] sm:$0xff] }
 0x1ef   : > { %6767 = vmatprep.subr.mxu1 %v5041_v37  ;;  %6813 = vmatpush3.msra.mxu0 %v5055_v46  ;;  %v5066_v46 = vld [vmem:[%s9908_s3 + $0x200] sm:$0xff] }
 0x1f0   : > { %6768 = vmatpush3.msra.mxu1 %v5041_v37  ;;  %6814 = vmatprep.subr.mxu0 %v5054_v43  ;;  %v5129_v37 = vld [vmem:[%s9908_s3 + $0x3f8] sm:$0xff] }
 0x1f1   : > { %6769 = vmatprep.subr.mxu1 %v5040_v47  ;;  %6815 = vmatpush3.msra.mxu0 %v5054_v43  ;;  %v5128_v43 = vld [vmem:[%s9908_s3 + $0x3f0] sm:$0xff] }
 0x1f2   : > { %6770 = vmatpush3.msra.mxu1 %v5040_v47  ;;  %6816 = vmatprep.subr.mxu0 %v5053_v35  ;;  %v2553_v47 = vld [vmem:[#allocation3 + $0x15] sm:$0xff] }
 0x1f3   : > { %6771 = vmatprep.subr.mxu1 %v5039_v48  ;;  %6817 = vmatpush3.msra.mxu0 %v5053_v35  ;;  %v2428_v35 = vld [vmem:[#allocation3 + $0xc] sm:$0xff] }
 0x1f4   : > { %6772 = vmatpush3.msra.mxu1 %v5039_v48  ;;  %6818 = vmatprep.subr.mxu0 %v5052_v49  ;;  %v5113_v48 = vld [vmem:[%s9908_s3 + $0x378] sm:$0xff] }
 0x1f5   : > { %6773 = vmatprep.subr.mxu1 %v5038_v51  ;;  %6819 = vmatpush3.msra.mxu0 %v5052_v49  ;;  %v2554_v49 = vld [vmem:[#allocation3 + $0x1d] sm:$0xff] }
 0x1f6   : > { %6774 = vmatpush3.msra.mxu1 %v5038_v51  ;;  %6820 = vmatprep.subr.mxu0 %v5051_v53  ;;  %v5127_v51 = vld [vmem:[%s9908_s3 + $0x3e8] sm:$0xff] }
 0x1f7   : > { %6775 = vmatprep.subr.mxu1 %v5037_v52  ;;  %6821 = vmatpush3.msra.mxu0 %v5051_v53  ;;  %v5112_v53 = vld [vmem:[%s9908_s3 + $0x370] sm:$0xff] }
 0x1f8   : > { %6776 = vmatpush3.msra.mxu1 %v5037_v52  ;;  %6822 = vmatprep.subr.mxu0 %v5050_v55  ;;  %v2429_v52 = vld [vmem:[#allocation3 + $0x14] sm:$0xff] }
 0x1f9   : > { %6777 = vmatprep.subr.mxu1 %v5036_v54  ;;  %6823 = vmatpush3.msra.mxu0 %v5050_v55  ;;  %v2555_v55 = vld [vmem:[#allocation3 + $0x25] sm:$0xff] }
 0x1fa   : > { %6778 = vmatpush3.msra.mxu1 %v5036_v54  ;;  %6825 = vmatmul.mubr.f32.vlgmr.msra.gmra.mxu0 %v2304_v61  ;;  %v5126_v54 = vld [vmem:[%s9908_s3 + $0x3e0] sm:$0xff] }
 0x1fb   : > { %6779 = vmatprep.subr.mxu1 %v5035_v56  ;;  %6874 = vmatprep.subr.mxu0 %v5097_v57  ;;  %v2430_v61 = vld [vmem:[#allocation3 + $0x1c] sm:$0xff] }
 0x1fc   : > { %6780 = vmatpush3.msra.mxu1 %v5035_v56  ;;  %6827 = vmatprep.mubr.f32.mxu0 %v2305_v2  ;;  %v2556_v56 = vld [vmem:[#allocation3 + $0x2d] sm:$0x3]  ;;  %v5110_v2 = vld [vmem:[%s9908_s3 + $0x360] sm:$0xff] }
 0x1fd   : > { %6875 = vmatpush3.msra.mxu0 %v5097_v57  ;;  %6781 = vmatprep.subr.mxu1 %v5034_v50  ;;  %v5111_v57 = vld [vmem:[%s9908_s3 + $0x368] sm:$0xff] }
 0x1fe   : > { %6876 = vmatprep.subr.mxu0 %v5096_v63  ;;  %6782 = vmatpush3.msra.mxu1 %v5034_v50  ;;  %v5125_v50 = vld [vmem:[%s9908_s3 + $0x3d8] sm:$0xff] }
 0x1ff   : > { %6877 = vmatpush3.msra.mxu0 %v5096_v63  ;;  %6784 = vmatmul.mubr.f32.vlgmr.msra.gmra.mxu1 %v8892_v3  ;;  %v5124_v63 = vld [vmem:[%s9908_s3 + $0x3d0] sm:$0xff] }
 0x200   : > { %6828 = vmatmul.mubr.f32.gmra.mxu0 %v2306_v5  ;;  %6833 = vmatprep.subr.mxu1 %v5081_v0  ;;  %v2432_v5 = vld [vmem:[#allocation3 + $0x2c] sm:$0x3] }
 0x201   : > { %6878 = vmatprep.subr.mxu0 %v5095_v4  ;;  %6786 = vmatprep.mubr.f32.mxu1 %v8898_v27 }
 0x202   : > { %6834 = vmatpush3.msra.mxu1 %v5081_v0  ;;  %6879 = vmatpush3.msra.mxu0 %v5095_v4  ;;  %v2799_v0 = vld [vmem:[#allocation3 + $0x7] sm:$0xff] }
 0x203   : > { %6835 = vmatprep.subr.mxu1 %v5080_v60  ;;  %6880 = vmatprep.subr.mxu0 %v5094_v7  ;;  %v2431_v4 = vld [vmem:[#allocation3 + $0x24] sm:$0xff] }
 0x204   : > { %6830 = vmatprep.mubr.f32.mxu0 %v2307_v1  ;;  %6836 = vmatpush3.msra.mxu1 %v5080_v60  ;;  %v5109_v60 = vld [vmem:[%s9908_s3 + $0x358] sm:$0xff]  ;;  %v5108_v1 = vld [vmem:[%s9908_s3 + $0x350] sm:$0xff] }
 0x205   : > { %6881 = vmatpush3.msra.mxu0 %v5094_v7  ;;  %6787 = vmatmul.mubr.f32.gmra.mxu1 %v8910_v58  ;;  %v5123_v7 = vld [vmem:[%s9908_s3 + $0x3c8] sm:$0xff] }
 0x206   : > { %6831 = vmatmul.mubr.f32.gmra.mxu0 %v2308_v14  ;;  %6837 = vmatprep.subr.mxu1 %v5079_v8  ;;  %v2675_v14 = vld [vmem:[#allocation3 + $0x6] sm:$0xff] }
 0x207   : > { %6882 = vmatprep.subr.mxu0 %v5093_v9  ;;  %6838 = vmatpush3.msra.mxu1 %v5079_v8  ;;  %v5122_v8 = vld [vmem:[%s9908_s3 + $0x3c0] sm:$0xff] }
 0x208   : > { %6883 = vmatpush3.msra.mxu0 %v5093_v9  ;;  %6906 = vmatprep.mubr.f32.mxu0 %v2551_v10  ;;  %v5107_v9 = vld [vmem:[%s9908_s3 + $0x348] sm:$0xff]  ;;  %v5120_v10 = vld [vmem:[%s9908_s3 + $0x3b0] sm:$0xff] }
 0x209   : > { %6839 = vmatprep.subr.mxu1 %v5078_v6  ;;  %6884 = vmatprep.subr.mxu0 %v5092_v62 }
 0x20a   : > { %6789 = vmatprep.mubr.f32.mxu1 %v8922_v11  ;;  %6840 = vmatpush3.msra.mxu1 %v5078_v6  ;;  %v5121_v6 = vld [vmem:[%s9908_s3 + $0x3b8] sm:$0xff] }
 0x20b   : > { %6885 = vmatpush3.msra.mxu0 %v5092_v62  ;;  %6790 = vmatmul.mubr.f32.gmra.mxu1 %v2184_v19  ;;  %v5106_v62 = vld [vmem:[%s9908_s3 + $0x340] sm:$0xff]  ;;  %v5105_v19 = vld [vmem:[%s9908_s3 + $0x338] sm:$0xff] }
 0x20c   : > { %6841 = vmatprep.subr.mxu1 %v5077_v12  ;;  %6886 = vmatprep.subr.mxu0 %v5091_v15 }
 0x20d   : > { %6842 = vmatpush3.msra.mxu1 %v5077_v12  ;;  %6865 = vmatprep.mubr.f32.mxu1 %v2427_v17  ;;  %v5119_v12 = vld [vmem:[%s9908_s3 + $0x3a8] sm:$0xff] }
 0x20e   : > { %6887 = vmatpush3.msra.mxu0 %v5091_v15  ;;  %6843 = vmatprep.subr.mxu1 %v5076_v59  ;;  %v5104_v15 = vld [vmem:[%s9908_s3 + $0x330] sm:$0xff]  ;;  %v5103_v17 = vld [vmem:[%s9908_s3 + $0x328] sm:$0xff] }
 0x20f   : > { %6888 = vmatprep.subr.mxu0 %v5090_v18  ;;  %6844 = vmatpush3.msra.mxu1 %v5076_v59  ;;  %v5118_v59 = vld [vmem:[%s9908_s3 + $0x3a0] sm:$0xff] }
 0x210   : > { %6889 = vmatpush3.msra.mxu0 %v5090_v18  ;;  %6845 = vmatprep.subr.mxu1 %v5075_v21  ;;  %v5117_v18 = vld [vmem:[%s9908_s3 + $0x398] sm:$0xff] }
 0x211   : > { %6890 = vmatprep.subr.mxu0 %v5089_v22  ;;  %6846 = vmatpush3.msra.mxu1 %v5075_v21  ;;  %v5102_v21 = vld [vmem:[%s9908_s3 + $0x320] sm:$0xff] }
 0x212   : > { %6891 = vmatpush3.msra.mxu0 %v5089_v22  ;;  %6847 = vmatprep.subr.mxu1 %v5074_v23  ;;  %v5116_v22 = vld [vmem:[%s9908_s3 + $0x390] sm:$0xff] }
 0x213   : > { %6892 = vmatprep.subr.mxu0 %v5088_v24  ;;  %6848 = vmatpush3.msra.mxu1 %v5074_v23  ;;  %v5101_v23 = vld [vmem:[%s9908_s3 + $0x318] sm:$0xff] }
 0x214   : > { %6893 = vmatpush3.msra.mxu0 %v5088_v24  ;;  %6849 = vmatprep.subr.mxu1 %v5073_v25  ;;  %v5115_v24 = vld [vmem:[%s9908_s3 + $0x388] sm:$0xff] }
 0x215   : > { %6894 = vmatprep.subr.mxu0 %v5087_v26  ;;  %6850 = vmatpush3.msra.mxu1 %v5073_v25  ;;  %v5100_v25 = vld [vmem:[%s9908_s3 + $0x310] sm:$0xff] }
 0x216   : > { %6895 = vmatpush3.msra.mxu0 %v5087_v26  ;;  %6851 = vmatprep.subr.mxu1 %v5072_v13  ;;  %v5114_v26 = vld [vmem:[%s9908_s3 + $0x380] sm:$0xff] }
 0x217   : > { %6896 = vmatprep.subr.mxu0 %v5086_v30  ;;  %6852 = vmatpush3.msra.mxu1 %v5072_v13  ;;  %v5099_v13 = vld [vmem:[%s9908_s3 + $0x308] sm:$0xff] }
 0x218   : > { %6897 = vmatpush3.msra.mxu0 %v5086_v30  ;;  %6853 = vmatprep.subr.mxu1 %v5071_v33  ;;  %v5161_v30 = vld [vmem:[%s9908_s3 + $0x4f8] sm:$0xff] }
 0x219   : > { %6898 = vmatprep.subr.mxu0 %v5085_v34  ;;  %6854 = vmatpush3.msra.mxu1 %v5071_v33  ;;  %v2800_v33 = vld [vmem:[#allocation3 + $0xf] sm:$0xff] }
 0x21a   : > { %6899 = vmatpush3.msra.mxu0 %v5085_v34  ;;  %6855 = vmatprep.subr.mxu1 %v5070_v38  ;;  %v5098_v34 = vld [vmem:[%s9908_s3 + $0x300] sm:$0xff] }
 0x21b   : > { %6900 = vmatprep.subr.mxu0 %v5084_v39  ;;  %6856 = vmatpush3.msra.mxu1 %v5070_v38  ;;  %v2801_v38 = vld [vmem:[#allocation3 + $0x17] sm:$0xff] }
 0x21c   : > { %6901 = vmatpush3.msra.mxu0 %v5084_v39  ;;  %6857 = vmatprep.subr.mxu1 %v5069_v41  ;;  %v5160_v39 = vld [vmem:[%s9908_s3 + $0x4f0] sm:$0xff] }
 0x21d   : > { %6902 = vmatprep.subr.mxu0 %v5083_v42  ;;  %6858 = vmatpush3.msra.mxu1 %v5069_v41  ;;  %v5145_v41 = vld [vmem:[%s9908_s3 + $0x478] sm:$0xff] }
 0x21e   : > { %6903 = vmatpush3.msra.mxu0 %v5083_v42  ;;  %6859 = vmatprep.subr.mxu1 %v5068_v31  ;;  %v2676_v42 = vld [vmem:[#allocation3 + $0xe] sm:$0xff] }
 0x21f   : > { %6904 = vmatprep.subr.mxu0 %v5082_v44  ;;  %6860 = vmatpush3.msra.mxu1 %v5068_v31  ;;  %v5159_v31 = vld [vmem:[%s9908_s3 + $0x4e8] sm:$0xff] }
 0x220   : > { %6905 = vmatpush3.msra.mxu0 %v5082_v44  ;;  %6861 = vmatprep.subr.mxu1 %v5067_v45  ;;  %v2802_v44 = vld [vmem:[#allocation3 + $0x1f] sm:$0xff] }
 0x221   : > { %6907 = vmatmul.mubr.f32.vlgmr.msra.gmra.mxu0 %v2552_v40  ;;  %6956 = vmatprep.subr.mxu0 %v5129_v37  ;;  %v5158_v40 = vld [vmem:[%s9908_s3 + $0x4e0] sm:$0xff] }
 0x222   : > { %6862 = vmatpush3.msra.mxu1 %v5067_v45  ;;  %6909 = vmatprep.mubr.f32.mxu0 %v2553_v47  ;;  %v2677_v45 = vld [vmem:[#allocation3 + $0x16] sm:$0xff]  ;;  %v2804_v47 = vld [vmem:[#allocation3 + $0x2f] sm:$0x3] }
 0x223   : > { %6957 = vmatpush3.msra.mxu0 %v5129_v37  ;;  %6863 = vmatprep.subr.mxu1 %v5066_v46  ;;  %v5144_v37 = vld [vmem:[%s9908_s3 + $0x470] sm:$0xff] }
 0x224   : > { %6958 = vmatprep.subr.mxu0 %v5128_v43  ;;  %6864 = vmatpush3.msra.mxu1 %v5066_v46  ;;  %v2803_v46 = vld [vmem:[#allocation3 + $0x27] sm:$0xff] }
 0x225   : > { %6959 = vmatpush3.msra.mxu0 %v5128_v43  ;;  %6866 = vmatmul.mubr.f32.vlgmr.msra.gmra.mxu1 %v2428_v35  ;;  %v5143_v43 = vld [vmem:[%s9908_s3 + $0x468] sm:$0xff]  ;;  %v5157_v35 = vld [vmem:[%s9908_s3 + $0x4d8] sm:$0xff] }
 0x226   : > { %6910 = vmatmul.mubr.f32.gmra.mxu0 %v2554_v49  ;;  %6915 = vmatprep.subr.mxu1 %v5113_v48  ;;  %v5156_v49 = vld [vmem:[%s9908_s3 + $0x4d0] sm:$0xff] }
 0x227   : > { %6960 = vmatprep.subr.mxu0 %v5127_v51  ;;  %6868 = vmatprep.mubr.f32.mxu1 %v2429_v52  ;;  %v2679_v52 = vld [vmem:[#allocation3 + $0x26] sm:$0xff] }
 0x228   : > { %6916 = vmatpush3.msra.mxu1 %v5113_v48  ;;  %6961 = vmatpush3.msra.mxu0 %v5127_v51  ;;  %v2678_v48 = vld [vmem:[#allocation3 + $0x1e] sm:$0xff] }
 0x229   : > { %6917 = vmatprep.subr.mxu1 %v5112_v53  ;;  %6962 = vmatprep.subr.mxu0 %v5126_v54  ;;  %v5142_v51 = vld [vmem:[%s9908_s3 + $0x460] sm:$0xff] }
 0x22a   : > { %6912 = vmatprep.mubr.f32.mxu0 %v2555_v55  ;;  %6918 = vmatpush3.msra.mxu1 %v5112_v53  ;;  %v2680_v53 = vld [vmem:[#allocation3 + $0x2e] sm:$0x3] }
 0x22b   : > { %6963 = vmatpush3.msra.mxu0 %v5126_v54  ;;  %6869 = vmatmul.mubr.f32.gmra.mxu1 %v2430_v61  ;;  %v5141_v54 = vld [vmem:[%s9908_s3 + $0x458] sm:$0xff]  ;;  %v5155_v55 = vld [vmem:[%s9908_s3 + $0x4c8] sm:$0xff] }
 0x22c   : > { %6913 = vmatmul.mubr.f32.gmra.mxu0 %v2556_v56  ;;  %6919 = vmatprep.subr.mxu1 %v5111_v57  ;;  %v5140_v56 = vld [vmem:[%s9908_s3 + $0x450] sm:$0xff]  ;;  %v5139_v61 = vld [vmem:[%s9908_s3 + $0x448] sm:$0xff] }
 0x22d   : > { %6964 = vmatprep.subr.mxu0 %v5125_v50  ;;  %6920 = vmatpush3.msra.mxu1 %v5111_v57  ;;  %v5154_v57 = vld [vmem:[%s9908_s3 + $0x4c0] sm:$0xff] }
 0x22e   : > { %6965 = vmatpush3.msra.mxu0 %v5125_v50  ;;  %6988 = vmatprep.mubr.f32.mxu0 %v2799_v0  ;;  %v5153_v50 = vld [vmem:[%s9908_s3 + $0x4b8] sm:$0xff] }
 0x22f   : > { %6921 = vmatprep.subr.mxu1 %v5110_v2  ;;  %6966 = vmatprep.subr.mxu0 %v5124_v63  ;;  %v5137_v0 = vld [vmem:[%s9908_s3 + $0x438] sm:$0xff] }
 0x230   : > { %6871 = vmatprep.mubr.f32.mxu1 %v2431_v4  ;;  %6922 = vmatpush3.msra.mxu1 %v5110_v2  ;;  %v5138_v2 = vld [vmem:[%s9908_s3 + $0x440] sm:$0xff]  ;;  %v5151_v4 = vld [vmem:[%s9908_s3 + $0x4a8] sm:$0xff] }
 0x231   : > { %6967 = vmatpush3.msra.mxu0 %v5124_v63  ;;  %6872 = vmatmul.mubr.f32.gmra.mxu1 %v2432_v5  ;;  %v5152_v63 = vld [vmem:[%s9908_s3 + $0x4b0] sm:$0xff] }
 0x232   : > { %6923 = vmatprep.subr.mxu1 %v5109_v60  ;;  %6968 = vmatprep.subr.mxu0 %v5123_v7  ;;  %v5136_v5 = vld [vmem:[%s9908_s3 + $0x430] sm:$0xff] }
 0x233   : > { %6924 = vmatpush3.msra.mxu1 %v5109_v60  ;;  %6947 = vmatprep.mubr.f32.mxu1 %v2675_v14  ;;  %v5150_v60 = vld [vmem:[%s9908_s3 + $0x4a0] sm:$0xff] }
 0x234   : > { %6969 = vmatpush3.msra.mxu0 %v5123_v7  ;;  %6925 = vmatprep.subr.mxu1 %v5108_v1  ;;  %v5135_v7 = vld [vmem:[%s9908_s3 + $0x428] sm:$0xff]  ;;  %v5134_v14 = vld [vmem:[%s9908_s3 + $0x420] sm:$0xff] }
 0x235   : > { %6970 = vmatprep.subr.mxu0 %v5122_v8  ;;  %6926 = vmatpush3.msra.mxu1 %v5108_v1  ;;  %v5149_v1 = vld [vmem:[%s9908_s3 + $0x498] sm:$0xff] }
 0x236   : > { %6971 = vmatpush3.msra.mxu0 %v5122_v8  ;;  %6927 = vmatprep.subr.mxu1 %v5107_v9  ;;  %v5148_v8 = vld [vmem:[%s9908_s3 + $0x490] sm:$0xff] }
 0x237   : > { %6972 = vmatprep.subr.mxu0 %v5121_v6  ;;  %6928 = vmatpush3.msra.mxu1 %v5107_v9  ;;  %v5133_v9 = vld [vmem:[%s9908_s3 + $0x418] sm:$0xff] }
 0x238   : > { %6973 = vmatpush3.msra.mxu0 %v5121_v6  ;;  %6929 = vmatprep.subr.mxu1 %v5106_v62  ;;  %v5147_v6 = vld [vmem:[%s9908_s3 + $0x488] sm:$0xff] }
 0x239   : > { %6974 = vmatprep.subr.mxu0 %v5120_v10  ;;  %6930 = vmatpush3.msra.mxu1 %v5106_v62  ;;  %v5132_v62 = vld [vmem:[%s9908_s3 + $0x410] sm:$0xff] }
 0x23a   : > { %6975 = vmatpush3.msra.mxu0 %v5120_v10  ;;  %6931 = vmatprep.subr.mxu1 %v5105_v19  ;;  %v5146_v10 = vld [vmem:[%s9908_s3 + $0x480] sm:$0xff] }
 0x23b   : > { %6976 = vmatprep.subr.mxu0 %v5119_v12  ;;  %6932 = vmatpush3.msra.mxu1 %v5105_v19  ;;  %v5131_v19 = vld [vmem:[%s9908_s3 + $0x408] sm:$0xff] }
 0x23c   : > { %6977 = vmatpush3.msra.mxu0 %v5119_v12  ;;  %6933 = vmatprep.subr.mxu1 %v5104_v15  ;;  %v5130_v12 = vld [vmem:[%s9908_s3 + $0x400] sm:$0xff] }
 0x23d   : > { %6978 = vmatprep.subr.mxu0 %v5118_v59  ;;  %6934 = vmatpush3.msra.mxu1 %v5104_v15  ;;  %v5177_v15 = vld [vmem:[%s9908_s3 + $0x578] sm:$0xff] }
 0x23e   : > { %6979 = vmatpush3.msra.mxu0 %v5118_v59  ;;  %6935 = vmatprep.subr.mxu1 %v5103_v17  ;;  %v2924_v59 = vld [vmem:[#allocation3 + $0x10] sm:$0xff] }
 0x23f   : > { %6980 = vmatprep.subr.mxu0 %v5117_v18  ;;  %6936 = vmatpush3.msra.mxu1 %v5103_v17  ;;  %v5176_v17 = vld [vmem:[%s9908_s3 + $0x570] sm:$0xff] }
 0x240   : > { %6981 = vmatpush3.msra.mxu0 %v5117_v18  ;;  %6937 = vmatprep.subr.mxu1 %v5102_v21  ;;  %v2925_v18 = vld [vmem:[#allocation3 + $0x18] sm:$0xff] }
 0x241   : > { %6982 = vmatprep.subr.mxu0 %v5116_v22  ;;  %6938 = vmatpush3.msra.mxu1 %v5102_v21  ;;  %v3051_v21 = vld [vmem:[#allocation3 + $0x29] sm:$0xff] }
 0x242   : > { %6983 = vmatpush3.msra.mxu0 %v5116_v22  ;;  %6939 = vmatprep.subr.mxu1 %v5101_v23  ;;  %v3052_v22 = vld [vmem:[#allocation3 + $0x31] sm:$0x3] }
 0x243   : > { %6984 = vmatprep.subr.mxu0 %v5115_v24  ;;  %6940 = vmatpush3.msra.mxu1 %v5101_v23  ;;  %v2928_v23 = vld [vmem:[#allocation3 + $0x30] sm:$0x3] }
 0x244   : > { %6985 = vmatpush3.msra.mxu0 %v5115_v24  ;;  %6941 = vmatprep.subr.mxu1 %v5100_v25  ;;  %v5173_v24 = vld [vmem:[%s9908_s3 + $0x558] sm:$0xff] }
 0x245   : > { %6986 = vmatprep.subr.mxu0 %v5114_v26  ;;  %6942 = vmatpush3.msra.mxu1 %v5100_v25  ;;  %v5170_v25 = vld [vmem:[%s9908_s3 + $0x540] sm:$0xff] }
 0x246   : > { %6987 = vmatpush3.msra.mxu0 %v5114_v26  ;;  %6943 = vmatprep.subr.mxu1 %v5099_v13  ;;  %v5169_v26 = vld [vmem:[%s9908_s3 + $0x538] sm:$0xff] }
 0x247   : > { %6989 = vmatmul.mubr.f32.vlgmr.msra.gmra.mxu0 %v2800_v33  ;;  %7038 = vmatprep.subr.mxu0 %v5161_v30  ;;  %v5165_v33 = vld [vmem:[%s9908_s3 + $0x518] sm:$0xff] }
 0x248   : > { %6944 = vmatpush3.msra.mxu1 %v5099_v13  ;;  %6991 = vmatprep.mubr.f32.mxu0 %v2801_v38  ;;  %v5167_v13 = vld [vmem:[%s9908_s3 + $0x528] sm:$0xff] }
 0x249   : > { %7039 = vmatpush3.msra.mxu0 %v5161_v30  ;;  %6945 = vmatprep.subr.mxu1 %v5098_v34  ;;  %v5166_v30 = vld [vmem:[%s9908_s3 + $0x520] sm:$0xff]  ;;  %v5163_v38 = vld [vmem:[%s9908_s3 + $0x508] sm:$0xff] }
 0x24a   : > { %7040 = vmatprep.subr.mxu0 %v5160_v39  ;;  %6946 = vmatpush3.msra.mxu1 %v5098_v34  ;;  %v5164_v34 = vld [vmem:[%s9908_s3 + $0x510] sm:$0xff] }
 0x24b   : > { %7041 = vmatpush3.msra.mxu0 %v5160_v39  ;;  %6948 = vmatmul.mubr.f32.vlgmr.msra.gmra.mxu1 %v2676_v42  ;;  %v5162_v39 = vld [vmem:[%s9908_s3 + $0x500] sm:$0xff]  ;;  %v3176_v42 = vld [vmem:[#allocation3 + $0x32] sm:$0x3] }
 0x24c   : > { %6992 = vmatmul.mubr.f32.gmra.mxu0 %v2802_v44  ;;  %6997 = vmatprep.subr.mxu1 %v5145_v41 }
 0x24d   : > { %7042 = vmatprep.subr.mxu0 %v5159_v31  ;;  %6950 = vmatprep.mubr.f32.mxu1 %v2677_v45 }
 0x24e   : > { %6998 = vmatpush3.msra.mxu1 %v5145_v41  ;;  %7043 = vmatpush3.msra.mxu0 %v5159_v31  ;;  %v3175_v41 = vld [vmem:[#allocation3 + $0x2a] sm:$0xff] }
 0x24f   : > { %6999 = vmatprep.subr.mxu1 %v5144_v37  ;;  %7044 = vmatprep.subr.mxu0 %v5158_v40 }
 0x250   : > { %6994 = vmatprep.mubr.f32.mxu0 %v2803_v46  ;;  %7000 = vmatpush3.msra.mxu1 %v5144_v37 }
 0x251   : > { %7045 = vmatpush3.msra.mxu0 %v5158_v40  ;;  %6951 = vmatmul.mubr.f32.gmra.mxu1 %v2678_v48 }
 0x252   : > { %6995 = vmatmul.mubr.f32.gmra.mxu0 %v2804_v47  ;;  %7001 = vmatprep.subr.mxu1 %v5143_v43 }
 0x253   : > { %7046 = vmatprep.subr.mxu0 %v5157_v35  ;;  %7002 = vmatpush3.msra.mxu1 %v5143_v43 }
 0x254   : > { %7047 = vmatpush3.msra.mxu0 %v5157_v35  ;;  %7070 = vmatprep.mubr.f32.mxu0 %v8789_v16  ;;  %v2923_v16 = vld [vmem:[#allocation3 + $0x8] sm:$0xff] }
 0x255   : > { %7003 = vmatprep.subr.mxu1 %v5142_v51  ;;  %7048 = vmatprep.subr.mxu0 %v5156_v49 }
 0x256   : > { %6953 = vmatprep.mubr.f32.mxu1 %v2679_v52  ;;  %7004 = vmatpush3.msra.mxu1 %v5142_v51 }
 0x257   : > { %7049 = vmatpush3.msra.mxu0 %v5156_v49  ;;  %6954 = vmatmul.mubr.f32.gmra.mxu1 %v2680_v53 }
 0x258   : > { %7005 = vmatprep.subr.mxu1 %v5141_v54  ;;  %7050 = vmatprep.subr.mxu0 %v5155_v55 }
 0x259   : > { %7006 = vmatpush3.msra.mxu1 %v5141_v54  ;;  %7029 = vmatprep.mubr.f32.mxu1 %v2923_v16  ;;  %v3407_v54 = vld [vmem:[%s9909_s4 + $0x78] sm:$0xff]  ;;  %v5194_v16 = vld [vmem:[%s9909_s4 + $0xf0] sm:$0xff] }
 0x25a   : > { %7051 = vmatpush3.msra.mxu0 %v5155_v55  ;;  %7007 = vmatprep.subr.mxu1 %v5140_v56  ;;  %v3406_v55 = vld [vmem:[%s9909_s4 + $0x70] sm:$0xff] }
 0x25b   : > { %7052 = vmatprep.subr.mxu0 %v5154_v57  ;;  %7008 = vmatpush3.msra.mxu1 %v5140_v56  ;;  %v5195_v56 = vld [vmem:[%s9909_s4 + $0xf8] sm:$0xff] }
 0x25c   : > { %7053 = vmatpush3.msra.mxu0 %v5154_v57  ;;  %7009 = vmatprep.subr.mxu1 %v5139_v61 }
 0x25d   : > { %7054 = vmatprep.subr.mxu0 %v5153_v50  ;;  %7010 = vmatpush3.msra.mxu1 %v5139_v61  ;;  %v3405_v61 = vld [vmem:[%s9909_s4 + $0x68] sm:$0xff] }
 0x25e   : > { %7055 = vmatpush3.msra.mxu0 %v5153_v50  ;;  %7011 = vmatprep.subr.mxu1 %v5138_v2  ;;  %v5193_v50 = vld [vmem:[%s9909_s4 + $0xe8] sm:$0xff] }
 0x25f   : > { %7056 = vmatprep.subr.mxu0 %v5152_v63  ;;  %7012 = vmatpush3.msra.mxu1 %v5138_v2 }
 0x260   : > { %7057 = vmatpush3.msra.mxu0 %v5152_v63  ;;  %7013 = vmatprep.subr.mxu1 %v5137_v0  ;;  %v3404_v63 = vld [vmem:[%s9909_s4 + $0x60] sm:$0xff] }
 0x261   : > { %7058 = vmatprep.subr.mxu0 %v5151_v4  ;;  %7014 = vmatpush3.msra.mxu1 %v5137_v0  ;;  %v5192_v0 = vld [vmem:[%s9909_s4 + $0xe0] sm:$0xff] }
 0x262   : > { %7059 = vmatpush3.msra.mxu0 %v5151_v4  ;;  %7015 = vmatprep.subr.mxu1 %v5136_v5 }
 0x263   : > { %7060 = vmatprep.subr.mxu0 %v5150_v60  ;;  %7016 = vmatpush3.msra.mxu1 %v5136_v5 }
 0x264   : > { %7061 = vmatpush3.msra.mxu0 %v5150_v60  ;;  %7017 = vmatprep.subr.mxu1 %v5135_v7 }
 0x265   : > { %7062 = vmatprep.subr.mxu0 %v5149_v1  ;;  %7018 = vmatpush3.msra.mxu1 %v5135_v7  ;;  %v3403_v7 = vld [vmem:[%s9909_s4 + $0x58] sm:$0xff] }
 0x266   : > { %7063 = vmatpush3.msra.mxu0 %v5149_v1  ;;  %7019 = vmatprep.subr.mxu1 %v5134_v14  ;;  %v5191_v1 = vld [vmem:[%s9909_s4 + $0xd8] sm:$0xff] }
 0x267   : > { %7064 = vmatprep.subr.mxu0 %v5148_v8  ;;  %7020 = vmatpush3.msra.mxu1 %v5134_v14 }
 0x268   : > { %7065 = vmatpush3.msra.mxu0 %v5148_v8  ;;  %7021 = vmatprep.subr.mxu1 %v5133_v9 }
 0x269   : > { %7066 = vmatprep.subr.mxu0 %v5147_v6  ;;  %7022 = vmatpush3.msra.mxu1 %v5133_v9  ;;  %v3402_v9 = vld [vmem:[%s9909_s4 + $0x50] sm:$0xff] }
 0x26a   : > { %7067 = vmatpush3.msra.mxu0 %v5147_v6  ;;  %7023 = vmatprep.subr.mxu1 %v5132_v62 }
 0x26b   : > { %7068 = vmatprep.subr.mxu0 %v5146_v10  ;;  %7024 = vmatpush3.msra.mxu1 %v5132_v62 }
 0x26c   : > { %7069 = vmatpush3.msra.mxu0 %v5146_v10  ;;  %7025 = vmatprep.subr.mxu1 %v5131_v19 }
 0x26d   : > { %7071 = vmatmul.mubr.f32.vlgmr.msra.gmra.mxu0 %v8813_v28  ;;  %7026 = vmatpush3.msra.mxu1 %v5131_v19  ;;  %v5175_v28 = vld [vmem:[%s9908_s3 + $0x568] sm:$0xff] }
 0x26e   : > { %7073 = vmatprep.mubr.f32.mxu0 %v8815_v29  ;;  %7027 = vmatprep.subr.mxu1 %v5130_v12  ;;  %v5174_v29 = vld [vmem:[%s9908_s3 + $0x560] sm:$0xff] }
 0x26f   : > { %7028 = vmatpush3.msra.mxu1 %v5130_v12  ;;  %7120 = vmatprep.subr.mxu0 %v5195_v56 }
 0x270   : > { %7030 = vmatmul.mubr.f32.vlgmr.msra.gmra.mxu1 %v2924_v59  ;;  %7079 = vmatprep.subr.mxu1 %v5177_v15 }
 0x271   : > { %7032 = vmatprep.mubr.f32.mxu1 %v2925_v18  ;;  %7080 = vmatpush3.msra.mxu1 %v5177_v15 }
 0x272   : > { %7081 = vmatprep.subr.mxu1 %v5176_v17  ;;  %7074 = vmatmul.mubr.f32.gmra.mxu0 %v8825_v36  ;;  %v5172_v36 = vld [vmem:[%s9908_s3 + $0x550] sm:$0xff] }
 0x273   : > { %7082 = vmatpush3.msra.mxu1 %v5176_v17  ;;  %7076 = vmatprep.mubr.f32.mxu0 %v3051_v21 }
 0x274   : > { %7033 = vmatmul.mubr.f32.gmra.mxu1 %v8797_v20  ;;  %7083 = vmatprep.subr.mxu1 %v5175_v28 }
 0x275   : > { %7084 = vmatpush3.msra.mxu1 %v5175_v28  ;;  %7035 = vmatprep.mubr.f32.mxu1 %v8797_v20  ;;  %v5171_v20 = vld [vmem:[%s9908_s3 + $0x548] sm:$0xff] }
 0x276   : > { %7085 = vmatprep.subr.mxu1 %v5174_v29  ;;  %7077 = vmatmul.mubr.f32.gmra.mxu0 %v3052_v22  ;;  %v3401_v22 = vld [vmem:[%s9909_s4 + $0x48] sm:$0xff] }
 0x277   : > { %7086 = vmatpush3.msra.mxu1 %v5174_v29  ;;  %7121 = vmatpush3.msra.mxu0 %v5195_v56 }
 0x278   : > { %7036 = vmatmul.mubr.f32.gmra.mxu1 %v2928_v23  ;;  %7087 = vmatprep.subr.mxu1 %v5173_v24  ;;  %v3400_v23 = vld [vmem:[%s9909_s4 + $0x40] sm:$0xff] }
 0x279   : > { %7088 = vmatpush3.msra.mxu1 %v5173_v24  ;;  %7111 = vmatprep.mubr.f32.mxu1 %v8892_v3  ;;  %v5168_v3 = vld [vmem:[%s9908_s3 + $0x530] sm:$0xff]  ;;  %v3399_v24 = vld [vmem:[%s9909_s4 + $0x38] sm:$0xff] }
 0x27a   : > { %7089 = vmatprep.subr.mxu1 %v5172_v36  ;;  %7122 = vmatprep.subr.mxu0 %v5194_v16 }
 0x27b   : > { %7090 = vmatpush3.msra.mxu1 %v5172_v36  ;;  %7123 = vmatpush3.msra.mxu0 %v5194_v16  ;;  %v3398_v36 = vld [vmem:[%s9909_s4 + $0x30] sm:$0xff] }
 0x27c   : > { %7091 = vmatprep.subr.mxu1 %v5171_v20  ;;  %7124 = vmatprep.subr.mxu0 %v5193_v50 }
 0x27d   : > { %7092 = vmatpush3.msra.mxu1 %v5171_v20  ;;  %7125 = vmatpush3.msra.mxu0 %v5193_v50  ;;  %v3397_v20 = vld [vmem:[%s9909_s4 + $0x28] sm:$0xff] }
 0x27e   : > { %7093 = vmatprep.subr.mxu1 %v5170_v25  ;;  %7126 = vmatprep.subr.mxu0 %v5192_v0 }
 0x27f   : > { %7094 = vmatpush3.msra.mxu1 %v5170_v25  ;;  %7127 = vmatpush3.msra.mxu0 %v5192_v0  ;;  %v5190_v25 = vld [vmem:[%s9909_s4 + $0xd0] sm:$0xff] }
 0x280   : > { %7095 = vmatprep.subr.mxu1 %v5169_v26  ;;  %7128 = vmatprep.subr.mxu0 %v5191_v1 }
 0x281   : > { %7096 = vmatpush3.msra.mxu1 %v5169_v26  ;;  %7129 = vmatpush3.msra.mxu0 %v5191_v1  ;;  %v3396_v26 = vld [vmem:[%s9909_s4 + $0x20] sm:$0xff] }
 0x282   : > { %7097 = vmatprep.subr.mxu1 %v5168_v3  ;;  %7130 = vmatprep.subr.mxu0 %v5190_v25 }
 0x283   : > { %7098 = vmatpush3.msra.mxu1 %v5168_v3  ;;  %7131 = vmatpush3.msra.mxu0 %v5190_v25  ;;  %v5189_v3 = vld [vmem:[%s9909_s4 + $0xc8] sm:$0xff] }
 0x284   : > { %7099 = vmatprep.subr.mxu1 %v5167_v13  ;;  %7132 = vmatprep.subr.mxu0 %v5189_v3 }
 0x285   : > { %7100 = vmatpush3.msra.mxu1 %v5167_v13  ;;  %v3395_v13 = vld [vmem:[%s9909_s4 + $0x18] sm:$0xff]  ;;  %7133 = vmatpush3.msra.mxu0 %v5189_v3 }
 0x286   : > { %7101 = vmatprep.subr.mxu1 %v5166_v30 }
 0x287   : > { %7102 = vmatpush3.msra.mxu1 %v5166_v30  ;;  %v5188_v30 = vld [vmem:[%s9909_s4 + $0xc0] sm:$0xff] }
 0x288   : > { %7103 = vmatprep.subr.mxu1 %v5165_v33  ;;  %7134 = vmatprep.subr.mxu0 %v5188_v30 }
 0x289   : > { %7104 = vmatpush3.msra.mxu1 %v5165_v33  ;;  %v3394_v33 = vld [vmem:[%s9909_s4 + $0x10] sm:$0xff]  ;;  %7135 = vmatpush3.msra.mxu0 %v5188_v30 }
 0x28a   : > { %7105 = vmatprep.subr.mxu1 %v5164_v34 }
 0x28b   : > { %7106 = vmatpush3.msra.mxu1 %v5164_v34  ;;  %v5187_v34 = vld [vmem:[%s9909_s4 + $0xb8] sm:$0xff] }
 0x28c   : > { %7107 = vmatprep.subr.mxu1 %v5163_v38  ;;  %7136 = vmatprep.subr.mxu0 %v5187_v34 }
 0x28d   : > { %7108 = vmatpush3.msra.mxu1 %v5163_v38  ;;  %v3393_v38 = vld [vmem:[%s9909_s4 + $0x8] sm:$0xff]  ;;  %7137 = vmatpush3.msra.mxu0 %v5187_v34 }
 0x28e   : > { %7109 = vmatprep.subr.mxu1 %v5162_v39 }
 0x28f   : > { %7110 = vmatpush3.msra.mxu1 %v5162_v39  ;;  %v5186_v39 = vld [vmem:[%s9909_s4 + $0xb0] sm:$0xff] }
 0x290   : > { %7112 = vmatmul.mubr.f32.vlgmr.msra.gmra.mxu1 %v8898_v27  ;;  %7158 = vmatprep.subr.mxu1 %v3407_v54 }
 0x291   : > { %7114 = vmatprep.mubr.f32.mxu1 %v8910_v58  ;;  %7159 = vmatpush3.msra.mxu1 %v3407_v54 }
 0x292   : > { %7160 = vmatprep.subr.mxu1 %v3406_v55  ;;  %7138 = vmatprep.subr.mxu0 %v5186_v39 }
 0x293   : > { %v6744_v31 = vpop.f32.mrf.mxu0  ;;  %7161 = vmatpush3.msra.mxu1 %v3406_v55  ;;  %7139 = vmatpush3.msra.mxu0 %v5186_v39  ;;  %v9356_v55 = vld [vmem:[%s9909_s4 + $0x178] sm:$0xff] }
 0x294   : > { %7115 = vmatmul.mubr.f32.gmra.mxu1 %v8922_v11  ;;  %7162 = vmatprep.subr.mxu1 %v3405_v61 }
 0x295   : > { %7117 = vmatprep.mubr.f32.mxu1 %v3175_v41  ;;  %v2150_v44 = vpop.f32.mrf.mxu0  ;;  %7163 = vmatpush3.msra.mxu1 %v3405_v61 }
 0x296   : > { %7164 = vmatprep.subr.mxu1 %v3404_v63 }
 0x297   : > { %7165 = vmatpush3.msra.mxu1 %v3404_v63 }
 0x298   : > { %7118 = vmatmul.mubr.f32.gmra.mxu1 %v3176_v42  ;;  %7166 = vmatprep.subr.mxu1 %v3403_v7  ;;  %v3392_v42 = vld [vmem:[%s9909_s4] sm:$0xff] }
 0x299   : > { %7167 = vmatpush3.msra.mxu1 %v3403_v7 }
 0x29a   : > { %7168 = vmatprep.subr.mxu1 %v3402_v9 }
 0x29b   : > { %v6747_v45 = vpop.f32.mrf.mxu0  ;;  %7169 = vmatpush3.msra.mxu1 %v3402_v9 }
 0x29c   : > { %7170 = vmatprep.subr.mxu1 %v3401_v22 }
 0x29d   : > { %v2160_v48 = vpop.f32.mrf.mxu0  ;;  %7171 = vmatpush3.msra.mxu1 %v3401_v22 }
 0x29e   : > { %7172 = vmatprep.subr.mxu1 %v3400_v23 }
 0x29f   : > { %v6703_v37 = vpop.f32.mrf.mxu1  ;;  %7173 = vmatpush3.msra.mxu1 %v3400_v23 }
 0x2a0   : > { %v2156_v40 = vadd.f32 %v6744_v31, %v6703_v37  ;;  %7174 = vmatprep.subr.mxu1 %v3399_v24  ;;  %v5185_v31 = vld [vmem:[%s9909_s4 + $0xa8] sm:$0xff]  ;;  %v9336_v37 = vld [vmem:[%s9909_s4 + $0x1f8] sm:$0xff] }
 0x2a1   : > { %v2055_v46 = vpop.f32.mrf.mxu1  ;;  %7175 = vmatpush3.msra.mxu1 %v3399_v24  ;;  %7140 = vmatprep.subr.mxu0 %v5185_v31 }
 0x2a2   : > { %v2151_v47 = vadd.f32 %v2150_v44, %v2055_v46  ;;  %7176 = vmatprep.subr.mxu1 %v3398_v36  ;;  %v5184_v44 = vld [vmem:[%s9909_s4 + $0xa0] sm:$0xff]  ;;  %7141 = vmatpush3.msra.mxu0 %v5185_v31 }
 0x2a3   : > { %7177 = vmatpush3.msra.mxu1 %v3398_v36  ;;  %7142 = vmatprep.subr.mxu0 %v5184_v44 }
 0x2a4   : > { %7178 = vmatprep.subr.mxu1 %v3397_v20  ;;  %7143 = vmatpush3.msra.mxu0 %v5184_v44 }
 0x2a5   : > { %v6706_v43 = vpop.f32.mrf.mxu1  ;;  %7179 = vmatpush3.msra.mxu1 %v3397_v20 }
 0x2a6   : > { %7180 = vmatprep.subr.mxu1 %v3396_v26 }
 0x2a7   : > { %v2065_v35 = vpop.f32.mrf.mxu1  ;;  %v6750_v27 = vpop.f32.mrf.mxu0  ;;  %7181 = vmatpush3.msra.mxu1 %v3396_v26 }
 0x2a8   : > { %v2161_v51 = vadd.f32 %v2160_v48, %v2065_v35  ;;  %7182 = vmatprep.subr.mxu1 %v3395_v13  ;;  %v5182_v48 = vld [vmem:[%s9909_s4 + $0x90] sm:$0xff] }
 0x2a9   : > { %v2170_v49 = vpop.f32.mrf.mxu0  ;;  %v6709_v58 = vpop.f32.mrf.mxu1  ;;  %7183 = vmatpush3.msra.mxu1 %v3395_v13 }
 0x2aa   : > { %v2176_v52 = vadd.f32 %v6750_v27, %v6709_v58  ;;  %7184 = vmatprep.subr.mxu1 %v3394_v33  ;;  %v5181_v49 = vld [vmem:[%s9909_s4 + $0x88] sm:$0xff] }
 0x2ab   : > { %v2075_v53 = vpop.f32.mrf.mxu1  ;;  %7185 = vmatpush3.msra.mxu1 %v3394_v33 }
 0x2ac   : > { %7186 = vmatprep.subr.mxu1 %v3393_v38  ;;  %v5180_v53 = vld [vmem:[%s9909_s4 + $0x80] sm:$0xff] }
 0x2ad   : > { %7187 = vmatpush3.msra.mxu1 %v3393_v38 }
 0x2ae   : > { %7188 = vmatprep.subr.mxu1 %v3392_v42 }
 0x2af   : > { %7189 = vmatpush3.msra.mxu1 %v3392_v42  ;;  %v5178_v42 = vld [vmem:[%s9911_s6 + $0x1] ss:$0 sm:$0xff] }
 0x2b0   : > { %7234 = vmatprep.subr.mxu1 %v9336_v37 }
 0x2ba   : > { %v6826_v11 = vpop.f32.mrf.mxu0 }
 0x2bc   : > { %v2392_v57 = vpop.f32.mrf.mxu0 }
 0x2bf   : > { %v6785_v2 = vpop.f32.mrf.mxu1 }
 0x2c0   : > { %v2298_v4 = vadd.f32 %v6785_v2, %v2156_v40  ;;  %v6829_v5 = vpop.f32.mrf.mxu0  ;;  %v5183_v40 = vld [vmem:[%s9909_s4 + $0x98] sm:$0xff] }
 0x2c1   : > { %v2268_v60 = vpop.f32.mrf.mxu1  ;;  %7144 = vmatprep.subr.mxu0 %v5183_v40 }
 0x2c2   : > { %v2297_v14 = vadd.f32 %v2268_v60, %v2151_v47  ;;  %v9271_v8 = vadd.f32 %v6826_v11, %v2298_v4  ;;  %v2402_v6 = vpop.f32.mrf.mxu0  ;;  %7145 = vmatpush3.msra.mxu0 %v5183_v40 }
 0x2c3   : > { %7146 = vmatprep.subr.mxu0 %v5182_v48 }
 0x2c4   : > { %v9276_v62 = vadd.f32 %v2392_v57, %v2297_v14  ;;  %7147 = vmatpush3.msra.mxu0 %v5182_v48 }
 0x2c5   : > { %v6788_v10 = vpop.f32.mrf.mxu1  ;;  %7148 = vmatprep.subr.mxu0 %v5181_v49 }
 0x2c6   : > { %v6832_v19 = vpop.f32.mrf.mxu0  ;;  %7149 = vmatpush3.msra.mxu0 %v5181_v49  ;;  %v3333_v49 = vadd.s32 16, %v8748_v32 }
 0x2c7   : > { %v2278_v12 = vpop.f32.mrf.mxu1  ;;  %7150 = vmatprep.subr.mxu0 %v5180_v53 }
 0x2c8   : > { %v2299_v15 = vadd.f32 %v2278_v12, %v2161_v51  ;;  %v2412_v59 = vpop.f32.mrf.mxu0  ;;  %7151 = vmatpush3.msra.mxu0 %v5180_v53 }
 0x2c9   : > { %7196 = vmatprep.subr.mxu0 %v9356_v55 }
 0x2ca   : > { %v9278_v17 = vadd.f32 %v2402_v6, %v2299_v15 }
 0x2cb   : > { %v6791_v18 = vpop.f32.mrf.mxu1 }
 0x2cc   : > { %v2302_v21 = vadd.f32 %v6791_v18, %v2176_v52 }
 0x2cd   : > { %v2288_v28 = vpop.f32.mrf.mxu1 }
 0x2ce   : > { %v9280_v29 = vadd.f32 %v6832_v19, %v2302_v21 }
 0x2e1   : > { %v6908_v41 = vpop.f32.mrf.mxu0 }
 0x2e3   : > { %v2640_v45 = vpop.f32.mrf.mxu0 }
 0x2e5   : > { %v6867_v46 = vpop.f32.mrf.mxu1 }
 0x2e6   : > { %v2546_v47 = vadd.f32 %v6867_v46, %v9271_v8  ;;  %v6911_v43 = vpop.f32.mrf.mxu0  ;;  %v5179_v46 = vld [vmem:[%s9912_s7 + $0x1] ss:$0 sm:$0xff] }
 0x2e7   : > { %v2516_v35 = vpop.f32.mrf.mxu1 }
 0x2e8   : > { %v2545_v51 = vadd.f32 %v2516_v35, %v9276_v62  ;;  %v2670_v27 = vadd.f32 %v6908_v41, %v2546_v47  ;;  %v2650_v58 = vpop.f32.mrf.mxu0 }
 0x2ea   : > { %v2669_v52 = vadd.f32 %v2640_v45, %v2545_v51  ;;  %v3338_v51 = vadd.s32 4294967291, %v8748_v32 }
 0x2eb   : > { %v6870_v11 = vpop.f32.mrf.mxu1 }
 0x2ec   : > { %v6914_v54 = vpop.f32.mrf.mxu0  ;;  %vm3344_vm3 = vcmp.ge.s32.totalorder %v3338_v51, 0  ;;  %v5196_v51 = vld [vmem:[%s9909_s4 + $0x100] sm:$0xff] }
 0x2ed   : > { %v2526_v56 = vpop.f32.mrf.mxu1 }
 0x2ee   : > { %v2547_v16 = vadd.f32 %v2526_v56, %v9278_v17  ;;  %v2660_v57 = vpop.f32.mrf.mxu0 }
 0x2f0   : > { %v2671_v61 = vadd.f32 %v2650_v58, %v2547_v16 }
 0x2f1   : > { %v6873_v50 = vpop.f32.mrf.mxu1 }
 0x2f2   : > { %v2550_v2 = vadd.f32 %v6873_v50, %v9280_v29 }
 0x2f3   : > { %v2536_v63 = vpop.f32.mrf.mxu1 }
 0x2f4   : > { %v2674_v0 = vadd.f32 %v6914_v54, %v2550_v2 }
 0x307   : > { %v6990_v4 = vpop.f32.mrf.mxu0 }
 0x309   : > { %v2888_v5 = vpop.f32.mrf.mxu0 }
 0x30b   : > { %v6949_v60 = vpop.f32.mrf.mxu1 }
 0x30c   : > { %v2794_v7 = vadd.f32 %v6949_v60, %v2670_v27  ;;  %v6993_v1 = vpop.f32.mrf.mxu0 }
 0x30d   : > { %v2764_v14 = vpop.f32.mrf.mxu1 }
 0x30e   : > { %v2793_v8 = vadd.f32 %v2764_v14, %v2669_v52  ;;  %v2918_v9 = vadd.f32 %v6990_v4, %v2794_v7  ;;  %v2898_v6 = vpop.f32.mrf.mxu0  ;;  %v5226_v7 = vld [vmem:[%s9909_s4 + $0x1f0] sm:$0xff] }
 0x310   : > { %v2917_v62 = vadd.f32 %v2888_v5, %v2793_v8  ;;  %v5225_v8 = vld [vmem:[%s9909_s4 + $0x1e8] sm:$0xff] }
 0x311   : > { %v6952_v10 = vpop.f32.mrf.mxu1 }
 0x312   : > { %v6996_v19 = vpop.f32.mrf.mxu0  ;;  %v9383_v10 = vld [vmem:[#allocation3] sm:$0xff] }
 0x313   : > { %v2774_v12 = vpop.f32.mrf.mxu1 }
 0x314   : > { %v2795_v15 = vadd.f32 %v2774_v12, %v2671_v61  ;;  %v2908_v59 = vpop.f32.mrf.mxu0  ;;  %v3340_v61 = vadd.s32 4294967291, %v3333_v49  ;;  %v5223_v12 = vld [vmem:[%s9909_s4 + $0x1d8] sm:$0xff] }
 0x315   : > { %v5243_v49 = vld [vmem:[%s9909_s4 + $0x278] sm:$0xff] }
 0x316   : > { %v2919_v17 = vadd.f32 %v2898_v6, %v2795_v15  ;;  %vm3352_vm4 = vcmp.lt.s32.totalorder %v3340_v61, 16  ;;  %v5222_v15 = vld [vmem:[%s9909_s4 + $0x1d0] sm:$0xff]  ;;  %v5241_v61 = vld [vmem:[%s9909_s4 + $0x268] sm:$0xff] }
 0x317   : > { %v6955_v18 = vpop.f32.mrf.mxu1 }
 0x318   : > { %v2798_v21 = vadd.f32 %v6955_v18, %v2674_v0  ;;  %v5210_v18 = vld [vmem:[%s9909_s4 + $0x170] sm:$0xff] }
 0x319   : > { %v2784_v28 = vpop.f32.mrf.mxu1 }
 0x31a   : > { %v2922_v29 = vadd.f32 %v6996_v19, %v2798_v21  ;;  %v5221_v21 = vld [vmem:[%s9909_s4 + $0x1c8] sm:$0xff] }
 0x31b   : > { %v5209_v28 = vld [vmem:[%s9909_s4 + $0x168] sm:$0xff] }
 0x32d   : > { %v7072_v22 = vpop.f32.mrf.mxu0 }
 0x32f   : > { %v3136_v23 = vpop.f32.mrf.mxu0 }
 0x330   : > { %v7031_v24 = vpop.f32.mrf.mxu1 }
 0x331   : > { %v3042_v38 = vadd.f32 %v7031_v24, %v2918_v9  ;;  %v5207_v24 = vld [vmem:[%s9909_s4 + $0x158] sm:$0xff] }
 0x332   : > { %v3012_v36 = vpop.f32.mrf.mxu1  ;;  %v7075_v20 = vpop.f32.mrf.mxu0 }
 0x333   : > { %v3041_v39 = vadd.f32 %v3012_v36, %v2917_v62  ;;  %v3166_v41 = vadd.f32 %v7072_v22, %v3042_v38  ;;  %v5224_v62 = vld [vmem:[%s9909_s4 + $0x1e0] sm:$0xff]  ;;  %v5219_v36 = vld [vmem:[%s9909_s4 + $0x1b8] sm:$0xff]  ;;  %v5206_v20 = vld [vmem:[%s9909_s4 + $0x150] sm:$0xff] }
 0x334   : > { %v7034_v25 = vpop.f32.mrf.mxu1  ;;  %v3146_v26 = vpop.f32.mrf.mxu0  ;;  %v5208_v22 = vld [vmem:[%s9909_s4 + $0x160] sm:$0xff]  ;;  %v5202_v38 = vld [vmem:[%s9909_s4 + $0x130] sm:$0xff] }
 0x335   : > { %v3165_v40 = vadd.f32 %v3136_v23, %v3041_v39  ;;  %v5220_v23 = vld [vmem:[%s9909_s4 + $0x1c0] sm:$0xff]  ;;  %v5218_v25 = vld [vmem:[%s9909_s4 + $0x1b0] sm:$0xff] }
 0x336   : > { %v3022_v3 = vpop.f32.mrf.mxu1  ;;  %v7078_v13 = vpop.f32.mrf.mxu0  ;;  %v5214_v39 = vld [vmem:[%s9909_s4 + $0x190] sm:$0xff] }
 0x337   : > { %v3043_v44 = vadd.f32 %v3022_v3, %v2919_v17  ;;  %v5217_v3 = vld [vmem:[%s9909_s4 + $0x1a8] sm:$0xff] }
 0x338   : > { %v7037_v30 = vpop.f32.mrf.mxu1  ;;  %v3156_v33 = vpop.f32.mrf.mxu0 }
 0x339   : > { %v3046_v43 = vadd.f32 %v7037_v30, %v2922_v29  ;;  %v3167_v58 = vadd.f32 %v3146_v26, %v3043_v44  ;;  %v9409_v29 = vld [vmem:[#allocation4 + $0x19] sm:$0xff]  ;;  %v5205_v26 = vld [vmem:[%s9909_s4 + $0x148] sm:$0xff]  ;;  %v5216_v30 = vld [vmem:[%s9909_s4 + $0x1a0] sm:$0xff] }
 0x33a   : > { %v3032_v34 = vpop.f32.mrf.mxu1  ;;  %v5203_v33 = vld [vmem:[%s9909_s4 + $0x138] sm:$0xff]  ;;  %v5212_v44 = vld [vmem:[%s9909_s4 + $0x180] sm:$0xff] }
 0x33b   : > { %v3170_v54 = vadd.f32 %v7078_v13, %v3046_v43  ;;  %v5204_v13 = vld [vmem:[%s9909_s4 + $0x140] sm:$0xff]  ;;  %v5215_v34 = vld [vmem:[%s9909_s4 + $0x198] sm:$0xff]  ;;  %v5197_v43 = vld [vmem:[%s9909_s4 + $0x108] sm:$0xff] }
 0x350   : > { %v7113_v31 = vpop.f32.mrf.mxu1 }
 0x351   : > { %v3290_v45 = vadd.f32 %v7113_v31, %v3166_v41  ;;  %v5201_v41 = vld [vmem:[%s9909_s4 + $0x128] sm:$0xff]  ;;  %v5200_v31 = vld [vmem:[%s9909_s4 + $0x120] sm:$0xff] }
 0x352   : > { %v3260_v47 = vpop.f32.mrf.mxu1 }
 0x353   : > { %v3300_v48 = vmul.f32 %v5178_v42, %v3290_v45  ;;  %v3289_v35 = vadd.f32 %v3260_v47, %v3165_v40  ;;  %v5199_v45 = vld [vmem:[%s9909_s4 + $0x118] sm:$0xff]  ;;  %v5198_v40 = vld [vmem:[%s9909_s4 + $0x110] sm:$0xff] }
 0x354   : > { %v7116_v27 = vpop.f32.mrf.mxu1 }
 0x355   : > { %v3310_v52 = vadd.f32 %v5179_v46, %v3300_v48  ;;  %v3299_v53 = vmul.f32 %v5178_v42, %v3289_v35  ;;  %v5258_v35 = vld [vmem:[%s9909_s4 + $0x2f0] sm:$0xff] }
 0x356   : > { %v3270_v11 = vpop.f32.mrf.mxu1  ;;  %v3712_v27 = vld [vmem:[#allocation4 + $0x1b] sm:$0xff] }
 0x357   : > { %v9369_v56 = vmax.f32 %v3310_v52, 0.0  ;;  %v3309_v16 = vadd.f32 %v5179_v46, %v3299_v53  ;;  %v3291_v57 = vadd.f32 %v3270_v11, %v3167_v58  ;;  %v5257_v52 = vld [vmem:[%s9909_s4 + $0x2e8] sm:$0xff]  ;;  %v5242_v53 = vld [vmem:[%s9909_s4 + $0x270] sm:$0xff] }
 0x358   : > { %v7119_v50 = vpop.f32.mrf.mxu1 }
 0x359   : > { %3381 = vst [vmem:[#allocation4 + $0x8] sm:$0xff] %v9369_v56  ;;  %v3315_v2 = vmax.f32 %v3309_v16, 0.0  ;;  %v3301_v63 = vmul.f32 %v5178_v42, %v3291_v57  ;;  %v3294_v0 = vadd.f32 %v7119_v50, %v3170_v54  ;;  %v5256_v54 = vld [vmem:[%s9909_s4 + $0x2e0] sm:$0xff]  ;;  %v9502_v57 = vld [vmem:[#allocation4 + $0x1a] sm:$0xff] }
 0x35a   : > { %v3280_v4 = vpop.f32.mrf.mxu1  ;;  %v5255_v50 = vld [vmem:[%s9909_s4 + $0x2d8] sm:$0xff] }
 0x35b   : > { %v3374_v5 = vsel %vm3344_vm3, %v3315_v2, 0.0  ;;  %v3311_v32 = vadd.f32 %v5179_v46, %v3301_v63  ;;  %v3304_v60 = vmul.f32 %v5178_v42, %v3294_v0  ;;  %7611 = vmatprep.mubr.msk.f32.mxu1 %vm3344_vm3, %v3315_v2  ;;  %v5213_v42 = vld [vmem:[%s9909_s4 + $0x188] sm:$0xff]  ;;  %v5240_v2 = vld [vmem:[%s9909_s4 + $0x260] sm:$0xff]  ;;  %v5254_v0 = vld [vmem:[%s9909_s4 + $0x2d0] sm:$0xff] }
 0x35c   : > { %3380 = vst [vmem:[#allocation4] sm:$0xff] %v3374_v5  ;;  %7191 = vmatmul.mubr.f32.vlgmr.msra.gmra.mxu1 %v9369_v56  ;;  %v5239_v4 = vld [vmem:[%s9909_s4 + $0x258] sm:$0xff]  ;;  %v5253_v5 = vld [vmem:[%s9909_s4 + $0x2c8] sm:$0xff] }
 0x35d   : > { %v3317_v1 = vmax.f32 %v3311_v32, 0.0  ;;  %v3314_v14 = vadd.f32 %v5179_v46, %v3304_v60  ;;  %7235 = vmatpush3.msra.mxu1 %v9336_v37  ;;  %v5259_v46 = vld [vmem:[%s9909_s4 + $0x2f8] sm:$0xff]  ;;  %v5238_v32 = vld [vmem:[%s9909_s4 + $0x250] sm:$0xff]  ;;  %v5252_v60 = vld [vmem:[%s9909_s4 + $0x2c0] sm:$0xff] }
 0x35e   : > { %7236 = vmatprep.subr.mxu1 %v5226_v7 }
 0x35f   : > { %v3376_v9 = vsel %vm3352_vm4, %v3317_v1, 0.0  ;;  %v3320_v6 = vmax.f32 %v3314_v14, 0.0  ;;  %7237 = vmatpush3.msra.mxu1 %v5226_v7  ;;  %7612 = vmatprep.mubr.msk.f32.mxu1 %vm3352_vm4, %v3317_v1  ;;  %v5237_v7 = vld [vmem:[%s9909_s4 + $0x248] sm:$0xff]  ;;  %v5251_v1 = vld [vmem:[%s9909_s4 + $0x2b8] sm:$0xff]  ;;  %v5236_v14 = vld [vmem:[%s9909_s4 + $0x240] sm:$0xff] }
 0x360   : > { %3382 = vst [vmem:[#allocation4 + $0x10] sm:$0xff] %v3376_v9  ;;  %7238 = vmatprep.subr.mxu1 %v5225_v8  ;;  %7194 = vmatmul.mubr.f32.gmra.mxu1 %v9383_v10  ;;  %v5235_v9 = vld [vmem:[%s9909_s4 + $0x238] sm:$0xff] }
 0x361   : > { %3326 = vst [vmem:[#allocation4 + $0x28] sm:$0x3] %v3320_v6  ;;  %7239 = vmatpush3.msra.mxu1 %v5225_v8  ;;  %v5250_v8 = vld [vmem:[%s9909_s4 + $0x2b0] sm:$0xff]  ;;  %v5249_v6 = vld [vmem:[%s9909_s4 + $0x2a8] sm:$0xff] }
 0x362   : > { %3385 = vst [vmem:[#allocation4 + $0x28] sm:$0x3] %v9383_v10  ;;  %7240 = vmatprep.subr.mxu1 %v5224_v62 }
 0x363   : > { %v3408_v37 = vld [vmem:[#allocation4 + $0x1] sm:$0xff]  ;;  %7241 = vmatpush3.msra.mxu1 %v5224_v62  ;;  %v5234_v62 = vld [vmem:[%s9909_s4 + $0x230] sm:$0xff] }
 0x364   : > { %v3709_v19 = vld [vmem:[#allocation4 + $0x3] sm:$0xff]  ;;  %7152 = vmatprep.mubr.f32.mxu0 %v3408_v37  ;;  %7242 = vmatprep.subr.mxu1 %v5223_v12 }
 0x365   : > { %7266 = vmatprep.mubr.f32.mxu1 %v3709_v19  ;;  %7243 = vmatpush3.msra.mxu1 %v5223_v12  ;;  %v3929_v16 = vld [vmem:[#allocation4 + $0x5] sm:$0xff]  ;;  %v5233_v19 = vld [vmem:[%s9909_s4 + $0x228] sm:$0xff] }
 0x366   : > { %7244 = vmatprep.subr.mxu1 %v5222_v15  ;;  %v3819_v63 = vld [vmem:[#allocation4 + $0x4] sm:$0xff] }
 0x367   : > { %v9393_v59 = vld [vmem:[#allocation4 + $0x9] sm:$0xff]  ;;  %v9395_v17 = vld [vmem:[#allocation4 + $0x11] sm:$0xff]  ;;  %7245 = vmatpush3.msra.mxu1 %v5222_v15  ;;  %v5247_v12 = vld [vmem:[%s9909_s4 + $0x298] sm:$0xff] }
 0x368   : > { %7153 = vmatmul.mubr.f32.vlgmr.msra.gmra.mxu0 %v9393_v59  ;;  %7246 = vmatprep.subr.mxu1 %v5221_v21  ;;  %v3710_v47 = vld [vmem:[#allocation4 + $0xb] sm:$0xff]  ;;  %v3711_v48 = vld [vmem:[#allocation4 + $0x13] sm:$0xff] }
 0x369   : > { %7197 = vmatpush3.msra.mxu0 %v9356_v55  ;;  %7155 = vmatprep.mubr.f32.mxu0 %v9395_v17  ;;  %v3599_v55 = vld [vmem:[#allocation4 + $0x2] sm:$0xff]  ;;  %v9487_v58 = vld [vmem:[#allocation4 + $0xa] sm:$0xff]  ;;  %v9496_v11 = vld [vmem:[#allocation4 + $0x12] sm:$0xff] }
 0x36a   : > { %7198 = vmatprep.subr.mxu0 %v5210_v18  ;;  %7247 = vmatpush3.msra.mxu1 %v5221_v21  ;;  %v5248_v37 = vld [vmem:[%s9909_s4 + $0x2a0] sm:$0xff]  ;;  %v5231_v21 = vld [vmem:[%s9909_s4 + $0x218] sm:$0xff] }
 0x36b   : > { %7199 = vmatpush3.msra.mxu0 %v5210_v18  ;;  %7248 = vmatprep.subr.mxu1 %v5220_v23  ;;  %v5232_v15 = vld [vmem:[%s9909_s4 + $0x220] sm:$0xff]  ;;  %v5246_v18 = vld [vmem:[%s9909_s4 + $0x290] sm:$0xff] }
 0x36c   : > { %7200 = vmatprep.subr.mxu0 %v5209_v28  ;;  %7156 = vmatmul.mubr.f32.gmra.mxu0 %v9409_v29 }
 0x36d   : > { %7201 = vmatpush3.msra.mxu0 %v5209_v28  ;;  %7228 = vmatprep.mubr.f32.mxu0 %v3599_v55  ;;  %v5245_v28 = vld [vmem:[%s9909_s4 + $0x288] sm:$0xff]  ;;  %v5244_v55 = vld [vmem:[%s9909_s4 + $0x280] sm:$0xff] }
 0x36e   : > { %7202 = vmatprep.subr.mxu0 %v5208_v22  ;;  %7249 = vmatpush3.msra.mxu1 %v5220_v23  ;;  %v5229_v23 = vld [vmem:[%s9909_s4 + $0x208] sm:$0xff] }
 0x36f   : > { %7203 = vmatpush3.msra.mxu0 %v5208_v22  ;;  %7250 = vmatprep.subr.mxu1 %v5219_v36  ;;  %v5230_v22 = vld [vmem:[%s9909_s4 + $0x210] sm:$0xff] }
 0x370   : > { %7204 = vmatprep.subr.mxu0 %v5207_v24  ;;  %7251 = vmatpush3.msra.mxu1 %v5219_v36  ;;  %v5228_v36 = vld [vmem:[%s9909_s4 + $0x200] sm:$0xff] }
 0x371   : > { %7205 = vmatpush3.msra.mxu0 %v5207_v24  ;;  %7252 = vmatprep.subr.mxu1 %v5218_v25  ;;  %v5291_v24 = vld [vmem:[%s9909_s4 + $0x3f8] sm:$0xff] }
 0x372   : > { %7206 = vmatprep.subr.mxu0 %v5206_v20  ;;  %7253 = vmatpush3.msra.mxu1 %v5218_v25  ;;  %v5290_v25 = vld [vmem:[%s9909_s4 + $0x3f0] sm:$0xff] }
 0x373   : > { %7207 = vmatpush3.msra.mxu0 %v5206_v20  ;;  %7254 = vmatprep.subr.mxu1 %v5217_v3  ;;  %v3930_v20 = vld [vmem:[#allocation4 + $0xd] sm:$0xff] }
 0x374   : > { %7208 = vmatprep.subr.mxu0 %v5205_v26  ;;  %7255 = vmatpush3.msra.mxu1 %v5217_v3  ;;  %v5275_v3 = vld [vmem:[%s9909_s4 + $0x378] sm:$0xff] }
 0x375   : > { %7209 = vmatpush3.msra.mxu0 %v5205_v26  ;;  %7256 = vmatprep.subr.mxu1 %v5216_v30  ;;  %v3931_v26 = vld [vmem:[#allocation4 + $0x15] sm:$0xff] }
 0x376   : > { %7210 = vmatprep.subr.mxu0 %v5204_v13  ;;  %7257 = vmatpush3.msra.mxu1 %v5216_v30  ;;  %v3932_v30 = vld [vmem:[#allocation4 + $0x1d] sm:$0xff] }
 0x377   : > { %7211 = vmatpush3.msra.mxu0 %v5204_v13  ;;  %7258 = vmatprep.subr.mxu1 %v5215_v34  ;;  %v3820_v13 = vld [vmem:[#allocation4 + $0xc] sm:$0xff] }
 0x378   : > { %7212 = vmatprep.subr.mxu0 %v5203_v33  ;;  %7259 = vmatpush3.msra.mxu1 %v5215_v34  ;;  %v5289_v34 = vld [vmem:[%s9909_s4 + $0x3e8] sm:$0xff] }
 0x379   : > { %7213 = vmatpush3.msra.mxu0 %v5203_v33  ;;  %7260 = vmatprep.subr.mxu1 %v5214_v39  ;;  %v3821_v33 = vld [vmem:[#allocation4 + $0x14] sm:$0xff] }
 0x37a   : > { %7214 = vmatprep.subr.mxu0 %v5202_v38  ;;  %7261 = vmatpush3.msra.mxu1 %v5214_v39  ;;  %v5288_v39 = vld [vmem:[%s9909_s4 + $0x3e0] sm:$0xff] }
 0x37b   : > { %7215 = vmatpush3.msra.mxu0 %v5202_v38  ;;  %7262 = vmatprep.subr.mxu1 %v5213_v42  ;;  %v5274_v38 = vld [vmem:[%s9909_s4 + $0x370] sm:$0xff] }
 0x37c   : > { %7216 = vmatprep.subr.mxu0 %v5201_v41  ;;  %7263 = vmatpush3.msra.mxu1 %v5213_v42  ;;  %v3822_v42 = vld [vmem:[#allocation4 + $0x1c] sm:$0xff] }
 0x37d   : > { %7217 = vmatpush3.msra.mxu0 %v5201_v41  ;;  %7264 = vmatprep.subr.mxu1 %v5212_v44  ;;  %v4149_v41 = vld [vmem:[#allocation4 + $0x7] sm:$0xff] }
 0x37e   : > { %7218 = vmatprep.subr.mxu0 %v5200_v31  ;;  %7265 = vmatpush3.msra.mxu1 %v5212_v44  ;;  %v5287_v44 = vld [vmem:[%s9909_s4 + $0x3d8] sm:$0xff] }
 0x37f   : > { %7219 = vmatpush3.msra.mxu0 %v5200_v31  ;;  %7267 = vmatmul.mubr.f32.vlgmr.msra.gmra.mxu1 %v3710_v47  ;;  %v5273_v31 = vld [vmem:[%s9909_s4 + $0x368] sm:$0xff]  ;;  %v5271_v47 = vld [vmem:[%s9909_s4 + $0x358] sm:$0xff] }
 0x380   : > { %7220 = vmatprep.subr.mxu0 %v5199_v45  ;;  %7310 = vmatprep.subr.mxu1 %v5259_v46 }
 0x381   : > { %7221 = vmatpush3.msra.mxu0 %v5199_v45  ;;  %7269 = vmatprep.mubr.f32.mxu1 %v3711_v48  ;;  %v5272_v45 = vld [vmem:[%s9909_s4 + $0x360] sm:$0xff]  ;;  %v5270_v48 = vld [vmem:[%s9909_s4 + $0x350] sm:$0xff] }
 0x382   : > { %7222 = vmatprep.subr.mxu0 %v5198_v40  ;;  %7311 = vmatpush3.msra.mxu1 %v5259_v46  ;;  %v5286_v46 = vld [vmem:[%s9909_s4 + $0x3d0] sm:$0xff] }
 0x383   : > { %7223 = vmatpush3.msra.mxu0 %v5198_v40  ;;  %7312 = vmatprep.subr.mxu1 %v5258_v35  ;;  %v4039_v40 = vld [vmem:[#allocation4 + $0x6] sm:$0xff] }
 0x384   : > { %7224 = vmatprep.subr.mxu0 %v5197_v43  ;;  %7313 = vmatpush3.msra.mxu1 %v5258_v35  ;;  %v5284_v35 = vld [vmem:[%s9909_s4 + $0x3c0] sm:$0xff] }
 0x385   : > { %7225 = vmatpush3.msra.mxu0 %v5197_v43  ;;  %7270 = vmatmul.mubr.f32.gmra.mxu1 %v3712_v27  ;;  %v5285_v43 = vld [vmem:[%s9909_s4 + $0x3c8] sm:$0xff]  ;;  %v5283_v27 = vld [vmem:[%s9909_s4 + $0x3b8] sm:$0xff] }
 0x386   : > { %7226 = vmatprep.subr.mxu0 %v5196_v51  ;;  %7314 = vmatprep.subr.mxu1 %v5257_v52 }
 0x387   : > { %7227 = vmatpush3.msra.mxu0 %v5196_v51  ;;  %7315 = vmatpush3.msra.mxu1 %v5257_v52  ;;  %v5269_v51 = vld [vmem:[%s9909_s4 + $0x348] sm:$0xff]  ;;  %v5282_v52 = vld [vmem:[%s9909_s4 + $0x3b0] sm:$0xff] }
 0x388   : > { %7229 = vmatmul.mubr.f32.vlgmr.msra.gmra.mxu0 %v9487_v58  ;;  %7272 = vmatprep.subr.mxu0 %v5243_v49 }
 0x389   : > { %7231 = vmatprep.mubr.f32.mxu0 %v9496_v11  ;;  %7273 = vmatpush3.msra.mxu0 %v5243_v49  ;;  %v5268_v49 = vld [vmem:[%s9909_s4 + $0x340] sm:$0xff] }
 0x38a   : > { %7274 = vmatprep.subr.mxu0 %v5242_v53  ;;  %7342 = vmatprep.mubr.f32.mxu1 %v3929_v16  ;;  %v5266_v16 = vld [vmem:[%s9909_s4 + $0x330] sm:$0xff] }
 0x38b   : > { %7275 = vmatpush3.msra.mxu0 %v5242_v53  ;;  %7316 = vmatprep.subr.mxu1 %v5256_v54  ;;  %v5267_v53 = vld [vmem:[%s9909_s4 + $0x338] sm:$0xff] }
 0x38c   : > { %7232 = vmatmul.mubr.f32.gmra.mxu0 %v9502_v57  ;;  %7276 = vmatprep.subr.mxu0 %v5241_v61 }
 0x38d   : > { %7317 = vmatpush3.msra.mxu1 %v5256_v54  ;;  %7277 = vmatpush3.msra.mxu0 %v5241_v61  ;;  %v5281_v54 = vld [vmem:[%s9909_s4 + $0x3a8] sm:$0xff]  ;;  %v5280_v61 = vld [vmem:[%s9909_s4 + $0x3a0] sm:$0xff] }
 0x38e   : > { %7304 = vmatprep.mubr.f32.mxu0 %v3819_v63  ;;  %7318 = vmatprep.subr.mxu1 %v5255_v50  ;;  %v5264_v63 = vld [vmem:[%s9909_s4 + $0x320] sm:$0xff] }
 0x38f   : > { %7278 = vmatprep.subr.mxu0 %v5240_v2  ;;  %7319 = vmatpush3.msra.mxu1 %v5255_v50  ;;  %v5265_v50 = vld [vmem:[%s9909_s4 + $0x328] sm:$0xff] }
 0x390   : > { %7279 = vmatpush3.msra.mxu0 %v5240_v2  ;;  %7320 = vmatprep.subr.mxu1 %v5254_v0  ;;  %v5279_v2 = vld [vmem:[%s9909_s4 + $0x398] sm:$0xff] }
 0x391   : > { %7280 = vmatprep.subr.mxu0 %v5239_v4  ;;  %7321 = vmatpush3.msra.mxu1 %v5254_v0  ;;  %v5278_v0 = vld [vmem:[%s9909_s4 + $0x390] sm:$0xff] }
 0x392   : > { %7281 = vmatpush3.msra.mxu0 %v5239_v4  ;;  %7322 = vmatprep.subr.mxu1 %v5253_v5  ;;  %v5263_v4 = vld [vmem:[%s9909_s4 + $0x318] sm:$0xff] }
 0x393   : > { %7282 = vmatprep.subr.mxu0 %v5238_v32  ;;  %7323 = vmatpush3.msra.mxu1 %v5253_v5  ;;  %v5277_v5 = vld [vmem:[%s9909_s4 + $0x388] sm:$0xff] }
 0x394   : > { %7283 = vmatpush3.msra.mxu0 %v5238_v32  ;;  %7324 = vmatprep.subr.mxu1 %v5252_v60  ;;  %v5262_v32 = vld [vmem:[%s9909_s4 + $0x310] sm:$0xff] }
 0x395   : > { %7284 = vmatprep.subr.mxu0 %v5237_v7  ;;  %7325 = vmatpush3.msra.mxu1 %v5252_v60  ;;  %v5276_v60 = vld [vmem:[%s9909_s4 + $0x380] sm:$0xff] }
 0x396   : > { %7285 = vmatpush3.msra.mxu0 %v5237_v7  ;;  %7326 = vmatprep.subr.mxu1 %v5251_v1  ;;  %v5261_v7 = vld [vmem:[%s9909_s4 + $0x308] sm:$0xff] }
 0x397   : > { %7286 = vmatprep.subr.mxu0 %v5236_v14  ;;  %7327 = vmatpush3.msra.mxu1 %v5251_v1  ;;  %v5323_v1 = vld [vmem:[%s9909_s4 + $0x4f8] sm:$0xff] }
 0x398   : > { %7287 = vmatpush3.msra.mxu0 %v5236_v14  ;;  %7328 = vmatprep.subr.mxu1 %v5250_v8  ;;  %v5260_v14 = vld [vmem:[%s9909_s4 + $0x300] sm:$0xff] }
 0x399   : > { %7288 = vmatprep.subr.mxu0 %v5235_v9  ;;  %7329 = vmatpush3.msra.mxu1 %v5250_v8  ;;  %v4150_v8 = vld [vmem:[#allocation4 + $0xf] sm:$0xff] }
 0x39a   : > { %7289 = vmatpush3.msra.mxu0 %v5235_v9  ;;  %7330 = vmatprep.subr.mxu1 %v5249_v6  ;;  %v5322_v9 = vld [vmem:[%s9909_s4 + $0x4f0] sm:$0xff] }
 0x39b   : > { %7290 = vmatprep.subr.mxu0 %v5234_v62  ;;  %7331 = vmatpush3.msra.mxu1 %v5249_v6  ;;  %v4151_v6 = vld [vmem:[#allocation4 + $0x17] sm:$0xff] }
 0x39c   : > { %7291 = vmatpush3.msra.mxu0 %v5234_v62  ;;  %7332 = vmatprep.subr.mxu1 %v5248_v37  ;;  %v5307_v62 = vld [vmem:[%s9909_s4 + $0x478] sm:$0xff] }
 0x39d   : > { %7292 = vmatprep.subr.mxu0 %v5233_v19  ;;  %7333 = vmatpush3.msra.mxu1 %v5248_v37  ;;  %v4040_v37 = vld [vmem:[#allocation4 + $0xe] sm:$0xff] }
 0x39e   : > { %7293 = vmatpush3.msra.mxu0 %v5233_v19  ;;  %7334 = vmatprep.subr.mxu1 %v5247_v12  ;;  %v4152_v19 = vld [vmem:[#allocation4 + $0x1f] sm:$0xff] }
 0x39f   : > { %7294 = vmatprep.subr.mxu0 %v5232_v15  ;;  %7335 = vmatpush3.msra.mxu1 %v5247_v12  ;;  %v4041_v12 = vld [vmem:[#allocation4 + $0x16] sm:$0xff] }
 0x3a0   : > { %7295 = vmatpush3.msra.mxu0 %v5232_v15  ;;  %7336 = vmatprep.subr.mxu1 %v5246_v18  ;;  %v5321_v15 = vld [vmem:[%s9909_s4 + $0x4e8] sm:$0xff] }
 0x3a1   : > { %7296 = vmatprep.subr.mxu0 %v5231_v21  ;;  %7337 = vmatpush3.msra.mxu1 %v5246_v18  ;;  %v5306_v18 = vld [vmem:[%s9909_s4 + $0x470] sm:$0xff] }
 0x3a2   : > { %7297 = vmatpush3.msra.mxu0 %v5231_v21  ;;  %7338 = vmatprep.subr.mxu1 %v5245_v28  ;;  %v5320_v21 = vld [vmem:[%s9909_s4 + $0x4e0] sm:$0xff] }
 0x3a3   : > { %7298 = vmatprep.subr.mxu0 %v5230_v22  ;;  %7339 = vmatpush3.msra.mxu1 %v5245_v28  ;;  %v4042_v28 = vld [vmem:[#allocation4 + $0x1e] sm:$0xff] }
 0x3a4   : > { %7299 = vmatpush3.msra.mxu0 %v5230_v22  ;;  %7340 = vmatprep.subr.mxu1 %v5244_v55  ;;  %v5305_v22 = vld [vmem:[%s9909_s4 + $0x468] sm:$0xff] }
 0x3a5   : > { %7300 = vmatprep.subr.mxu0 %v5229_v23  ;;  %7341 = vmatpush3.msra.mxu1 %v5244_v55  ;;  %v5319_v55 = vld [vmem:[%s9909_s4 + $0x4d8] sm:$0xff] }
 0x3a6   : > { %7301 = vmatpush3.msra.mxu0 %v5229_v23  ;;  %7343 = vmatmul.mubr.f32.vlgmr.msra.gmra.mxu1 %v3930_v20  ;;  %v5304_v23 = vld [vmem:[%s9909_s4 + $0x460] sm:$0xff]  ;;  %v5302_v20 = vld [vmem:[%s9909_s4 + $0x450] sm:$0xff] }
 0x3a7   : > { %7386 = vmatprep.subr.mxu1 %v5291_v24  ;;  %7302 = vmatprep.subr.mxu0 %v5228_v36 }
 0x3a8   : > { %7345 = vmatprep.mubr.f32.mxu1 %v3931_v26  ;;  %7387 = vmatpush3.msra.mxu1 %v5291_v24  ;;  %v5318_v24 = vld [vmem:[%s9909_s4 + $0x4d0] sm:$0xff]  ;;  %v5315_v26 = vld [vmem:[%s9909_s4 + $0x4b8] sm:$0xff] }
 0x3a9   : > { %7303 = vmatpush3.msra.mxu0 %v5228_v36  ;;  %7388 = vmatprep.subr.mxu1 %v5290_v25  ;;  %v5317_v36 = vld [vmem:[%s9909_s4 + $0x4c8] sm:$0xff] }
 0x3aa   : > { %7305 = vmatmul.mubr.f32.vlgmr.msra.gmra.mxu0 %v3820_v13  ;;  %7348 = vmatprep.subr.mxu0 %v5275_v3  ;;  %v5314_v13 = vld [vmem:[%s9909_s4 + $0x4b0] sm:$0xff] }
 0x3ab   : > { %7389 = vmatpush3.msra.mxu1 %v5290_v25  ;;  %7307 = vmatprep.mubr.f32.mxu0 %v3821_v33  ;;  %v5301_v25 = vld [vmem:[%s9909_s4 + $0x448] sm:$0xff] }
 0x3ac   : > { %7346 = vmatmul.mubr.f32.gmra.mxu1 %v3932_v30  ;;  %7349 = vmatpush3.msra.mxu0 %v5275_v3  ;;  %v5300_v3 = vld [vmem:[%s9909_s4 + $0x440] sm:$0xff]  ;;  %v5299_v30 = vld [vmem:[%s9909_s4 + $0x438] sm:$0xff]  ;;  %v5313_v33 = vld [vmem:[%s9909_s4 + $0x4a8] sm:$0xff] }
 0x3ad   : > { %7390 = vmatprep.subr.mxu1 %v5289_v34  ;;  %7350 = vmatprep.subr.mxu0 %v5274_v38 }
 0x3ae   : > { %7391 = vmatpush3.msra.mxu1 %v5289_v34  ;;  %7418 = vmatprep.mubr.f32.mxu1 %v4149_v41  ;;  %v5298_v34 = vld [vmem:[%s9909_s4 + $0x430] sm:$0xff]  ;;  %v5311_v41 = vld [vmem:[%s9909_s4 + $0x498] sm:$0xff] }
 0x3af   : > { %7351 = vmatpush3.msra.mxu0 %v5274_v38  ;;  %7392 = vmatprep.subr.mxu1 %v5288_v39  ;;  %v5312_v38 = vld [vmem:[%s9909_s4 + $0x4a0] sm:$0xff] }
 0x3b0   : > { %7308 = vmatmul.mubr.f32.gmra.mxu0 %v3822_v42  ;;  %7352 = vmatprep.subr.mxu0 %v5273_v31  ;;  %v5296_v42 = vld [vmem:[%s9909_s4 + $0x420] sm:$0xff] }
 0x3b1   : > { %7393 = vmatpush3.msra.mxu1 %v5288_v39  ;;  %7353 = vmatpush3.msra.mxu0 %v5273_v31  ;;  %v5297_v39 = vld [vmem:[%s9909_s4 + $0x428] sm:$0xff]  ;;  %v5310_v31 = vld [vmem:[%s9909_s4 + $0x490] sm:$0xff] }
 0x3b2   : > { %7380 = vmatprep.mubr.f32.mxu0 %v4039_v40  ;;  %7394 = vmatprep.subr.mxu1 %v5287_v44  ;;  %v5294_v40 = vld [vmem:[%s9909_s4 + $0x410] sm:$0xff] }
 0x3b3   : > { %7354 = vmatprep.subr.mxu0 %v5272_v45  ;;  %7395 = vmatpush3.msra.mxu1 %v5287_v44  ;;  %v5295_v44 = vld [vmem:[%s9909_s4 + $0x418] sm:$0xff] }
 0x3b4   : > { %7355 = vmatpush3.msra.mxu0 %v5272_v45  ;;  %7396 = vmatprep.subr.mxu1 %v5286_v46  ;;  %v5309_v45 = vld [vmem:[%s9909_s4 + $0x488] sm:$0xff] }
 0x3b5   : > { %7356 = vmatprep.subr.mxu0 %v5271_v47  ;;  %7397 = vmatpush3.msra.mxu1 %v5286_v46  ;;  %v5308_v46 = vld [vmem:[%s9909_s4 + $0x480] sm:$0xff] }
 0x3b6   : > { %7357 = vmatpush3.msra.mxu0 %v5271_v47  ;;  %7398 = vmatprep.subr.mxu1 %v5285_v43  ;;  %v5293_v47 = vld [vmem:[%s9909_s4 + $0x408] sm:$0xff] }
 0x3b7   : > { %7358 = vmatprep.subr.mxu0 %v5270_v48  ;;  %7399 = vmatpush3.msra.mxu1 %v5285_v43  ;;  %v5292_v43 = vld [vmem:[%s9909_s4 + $0x400] sm:$0xff] }
 0x3b8   : > { %7359 = vmatpush3.msra.mxu0 %v5270_v48  ;;  %7400 = vmatprep.subr.mxu1 %v5284_v35  ;;  %v4624_v48 = vld [vmem:[%s9910_s5 + $0x78] sm:$0xff] }
 0x3b9   : > { %7360 = vmatprep.subr.mxu0 %v5269_v51  ;;  %7401 = vmatpush3.msra.mxu1 %v5284_v35  ;;  %v5339_v35 = vld [vmem:[%s9909_s4 + $0x578] sm:$0xff] }
 0x3ba   : > { %7361 = vmatpush3.msra.mxu0 %v5269_v51  ;;  %7402 = vmatprep.subr.mxu1 %v5283_v27  ;;  %v4623_v51 = vld [vmem:[%s9910_s5 + $0x70] sm:$0xff] }
 0x3bb   : > { %7362 = vmatprep.subr.mxu0 %v5268_v49  ;;  %7403 = vmatpush3.msra.mxu1 %v5283_v27  ;;  %v4260_v27 = vld [vmem:[#allocation4 + $0x10] sm:$0xff] }
 0x3bc   : > { %7363 = vmatpush3.msra.mxu0 %v5268_v49  ;;  %7404 = vmatprep.subr.mxu1 %v5282_v52  ;;  %v5338_v49 = vld [vmem:[%s9909_s4 + $0x570] sm:$0xff] }
 0x3bd   : > { %7364 = vmatprep.subr.mxu0 %v5267_v53  ;;  %7405 = vmatpush3.msra.mxu1 %v5282_v52  ;;  %v4622_v52 = vld [vmem:[%s9910_s5 + $0x68] sm:$0xff] }
 0x3be   : > { %7365 = vmatpush3.msra.mxu0 %v5267_v53  ;;  %7406 = vmatprep.subr.mxu1 %v5281_v54  ;;  %v5336_v53 = vld [vmem:[%s9909_s4 + $0x560] sm:$0xff] }
 0x3bf   : > { %7366 = vmatprep.subr.mxu0 %v5266_v16  ;;  %7407 = vmatpush3.msra.mxu1 %v5281_v54  ;;  %v4372_v54 = vld [vmem:[#allocation4 + $0x21] sm:$0xff] }
 0x3c0   : > { %7367 = vmatpush3.msra.mxu0 %v5266_v16  ;;  %7408 = vmatprep.subr.mxu1 %v5280_v61  ;;  %v4621_v16 = vld [vmem:[%s9910_s5 + $0x60] sm:$0xff] }
 0x3c1   : > { %7368 = vmatprep.subr.mxu0 %v5265_v50  ;;  %7409 = vmatpush3.msra.mxu1 %v5280_v61  ;;  %v4620_v61 = vld [vmem:[%s9910_s5 + $0x58] sm:$0xff] }
 0x3c2   : > { %7369 = vmatpush3.msra.mxu0 %v5265_v50  ;;  %7410 = vmatprep.subr.mxu1 %v5279_v2  ;;  %v5333_v50 = vld [vmem:[%s9909_s4 + $0x548] sm:$0xff] }
 0x3c3   : > { %7370 = vmatprep.subr.mxu0 %v5264_v63  ;;  %7411 = vmatpush3.msra.mxu1 %v5279_v2  ;;  %v4618_v2 = vld [vmem:[%s9910_s5 + $0x48] sm:$0xff] }
 0x3c4   : > { %7371 = vmatpush3.msra.mxu0 %v5264_v63  ;;  %7412 = vmatprep.subr.mxu1 %v5278_v0  ;;  %v5332_v63 = vld [vmem:[%s9909_s4 + $0x540] sm:$0xff] }
 0x3c5   : > { %7372 = vmatprep.subr.mxu0 %v5263_v4  ;;  %7413 = vmatpush3.msra.mxu1 %v5278_v0  ;;  %v4617_v0 = vld [vmem:[%s9910_s5 + $0x40] sm:$0xff] }
 0x3c6   : > { %7373 = vmatpush3.msra.mxu0 %v5263_v4  ;;  %7414 = vmatprep.subr.mxu1 %v5277_v5  ;;  %v5331_v4 = vld [vmem:[%s9909_s4 + $0x538] sm:$0xff] }
 0x3c7   : > { %7374 = vmatprep.subr.mxu0 %v5262_v32  ;;  %7415 = vmatpush3.msra.mxu1 %v5277_v5  ;;  %v4616_v5 = vld [vmem:[%s9910_s5 + $0x38] sm:$0xff] }
 0x3c8   : > { %7375 = vmatpush3.msra.mxu0 %v5262_v32  ;;  %7416 = vmatprep.subr.mxu1 %v5276_v60  ;;  %v5330_v32 = vld [vmem:[%s9909_s4 + $0x530] sm:$0xff] }
 0x3c9   : > { %7376 = vmatprep.subr.mxu0 %v5261_v7  ;;  %7417 = vmatpush3.msra.mxu1 %v5276_v60  ;;  %v4615_v60 = vld [vmem:[%s9910_s5 + $0x30] sm:$0xff] }
 0x3ca   : > { %7377 = vmatpush3.msra.mxu0 %v5261_v7  ;;  %7419 = vmatmul.mubr.f32.vlgmr.msra.gmra.mxu1 %v4150_v8  ;;  %v5329_v7 = vld [vmem:[%s9909_s4 + $0x528] sm:$0xff]  ;;  %v4613_v8 = vld [vmem:[%s9910_s5 + $0x20] sm:$0xff] }
 0x3cb   : > { %7462 = vmatprep.subr.mxu1 %v5323_v1  ;;  %7378 = vmatprep.subr.mxu0 %v5260_v14 }
 0x3cc   : > { %7421 = vmatprep.mubr.f32.mxu1 %v4151_v6  ;;  %7463 = vmatpush3.msra.mxu1 %v5323_v1  ;;  %v4614_v1 = vld [vmem:[%s9910_s5 + $0x28] sm:$0xff]  ;;  %v4612_v6 = vld [vmem:[%s9910_s5 + $0x18] sm:$0xff] }
 0x3cd   : > { %7379 = vmatpush3.msra.mxu0 %v5260_v14  ;;  %7464 = vmatprep.subr.mxu1 %v5322_v9  ;;  %v5328_v14 = vld [vmem:[%s9909_s4 + $0x520] sm:$0xff] }
 0x3ce   : > { %7381 = vmatmul.mubr.f32.vlgmr.msra.gmra.mxu0 %v4040_v37  ;;  %7424 = vmatprep.subr.mxu0 %v5307_v62  ;;  %v4611_v37 = vld [vmem:[%s9910_s5 + $0x10] sm:$0xff] }
 0x3cf   : > { %7465 = vmatpush3.msra.mxu1 %v5322_v9  ;;  %7383 = vmatprep.mubr.f32.mxu0 %v4041_v12  ;;  %v5327_v9 = vld [vmem:[%s9909_s4 + $0x518] sm:$0xff]  ;;  %v4610_v12 = vld [vmem:[%s9910_s5 + $0x8] sm:$0xff] }
 0x3d0   : > { %7422 = vmatmul.mubr.f32.gmra.mxu1 %v4152_v19  ;;  %7425 = vmatpush3.msra.mxu0 %v5307_v62  ;;  %v5326_v62 = vld [vmem:[%s9909_s4 + $0x510] sm:$0xff]  ;;  %v5325_v19 = vld [vmem:[%s9909_s4 + $0x508] sm:$0xff] }
 0x3d1   : > { %7466 = vmatprep.subr.mxu1 %v5321_v15  ;;  %7426 = vmatprep.subr.mxu0 %v5306_v18 }
 0x3d2   : > { %7467 = vmatpush3.msra.mxu1 %v5321_v15  ;;  %7494 = vmatprep.mubr.f32.mxu1 %v9393_v59  ;;  %v5303_v59 = vld [vmem:[%s9909_s4 + $0x458] sm:$0xff]  ;;  %v5324_v15 = vld [vmem:[%s9909_s4 + $0x500] sm:$0xff] }
 0x3d3   : > { %7427 = vmatpush3.msra.mxu0 %v5306_v18  ;;  %7468 = vmatprep.subr.mxu1 %v5320_v21  ;;  %v4609_v18 = vld [vmem:[%s9910_s5] sm:$0xff] }
 0x3d4   : > { %7384 = vmatmul.mubr.f32.gmra.mxu0 %v4042_v28  ;;  %7428 = vmatprep.subr.mxu0 %v5305_v22  ;;  %v4606_v28 = vld [vmem:[#allocation2 + $0x18] sm:$0xff] }
 0x3d5   : > { %7469 = vmatpush3.msra.mxu1 %v5320_v21  ;;  %7429 = vmatpush3.msra.mxu0 %v5305_v22  ;;  %v4605_v21 = vld [vmem:[#allocation2 + $0x10] sm:$0xff]  ;;  %v4607_v22 = vld [vmem:[#allocation2 + $0x20] sm:$0xff] }
 0x3d6   : > { %7456 = vmatprep.mubr.f32.mxu0 %v9369_v56  ;;  %7470 = vmatprep.subr.mxu1 %v5319_v55  ;;  %v5316_v56 = vld [vmem:[%s9909_s4 + $0x4c0] sm:$0xff] }
 0x3d7   : > { %7430 = vmatprep.subr.mxu0 %v5304_v23  ;;  %7471 = vmatpush3.msra.mxu1 %v5319_v55  ;;  %v4482_v55 = vld [vmem:[#allocation4 + $0x22] sm:$0xff] }
 0x3d8   : > { %7431 = vmatpush3.msra.mxu0 %v5304_v23  ;;  %7472 = vmatprep.subr.mxu1 %v5318_v24  ;;  %v4608_v23 = vld [vmem:[#allocation2 + $0x28] sm:$0xff] }
 0x3d9   : > { %7432 = vmatprep.subr.mxu0 %v5303_v59  ;;  %7473 = vmatpush3.msra.mxu1 %v5318_v24 }
 0x3da   : > { %7433 = vmatpush3.msra.mxu0 %v5303_v59  ;;  %7474 = vmatprep.subr.mxu1 %v5317_v36 }
 0x3db   : > { %7434 = vmatprep.subr.mxu0 %v5302_v20  ;;  %7475 = vmatpush3.msra.mxu1 %v5317_v36 }
 0x3dc   : > { %7435 = vmatpush3.msra.mxu0 %v5302_v20  ;;  %7476 = vmatprep.subr.mxu1 %v5316_v56 }
 0x3dd   : > { %7436 = vmatprep.subr.mxu0 %v5301_v25  ;;  %7477 = vmatpush3.msra.mxu1 %v5316_v56 }
 0x3de   : > { %7437 = vmatpush3.msra.mxu0 %v5301_v25  ;;  %7478 = vmatprep.subr.mxu1 %v5315_v26 }
 0x3df   : > { %7438 = vmatprep.subr.mxu0 %v5300_v3  ;;  %7479 = vmatpush3.msra.mxu1 %v5315_v26 }
 0x3e0   : > { %7439 = vmatpush3.msra.mxu0 %v5300_v3  ;;  %7480 = vmatprep.subr.mxu1 %v5314_v13 }
 0x3e1   : > { %7440 = vmatprep.subr.mxu0 %v5299_v30  ;;  %7481 = vmatpush3.msra.mxu1 %v5314_v13 }
 0x3e2   : > { %7441 = vmatpush3.msra.mxu0 %v5299_v30  ;;  %7482 = vmatprep.subr.mxu1 %v5313_v33 }
 0x3e3   : > { %7442 = vmatprep.subr.mxu0 %v5298_v34  ;;  %7483 = vmatpush3.msra.mxu1 %v5313_v33 }
 0x3e4   : > { %7443 = vmatpush3.msra.mxu0 %v5298_v34  ;;  %7484 = vmatprep.subr.mxu1 %v5312_v38 }
 0x3e5   : > { %7444 = vmatprep.subr.mxu0 %v5297_v39  ;;  %7485 = vmatpush3.msra.mxu1 %v5312_v38 }
 0x3e6   : > { %7445 = vmatpush3.msra.mxu0 %v5297_v39  ;;  %7486 = vmatprep.subr.mxu1 %v5311_v41 }
 0x3e7   : > { %7446 = vmatprep.subr.mxu0 %v5296_v42  ;;  %7487 = vmatpush3.msra.mxu1 %v5311_v41 }
 0x3e8   : > { %7447 = vmatpush3.msra.mxu0 %v5296_v42  ;;  %7488 = vmatprep.subr.mxu1 %v5310_v31 }
 0x3e9   : > { %7448 = vmatprep.subr.mxu0 %v5295_v44  ;;  %7489 = vmatpush3.msra.mxu1 %v5310_v31 }
 0x3ea   : > { %7449 = vmatpush3.msra.mxu0 %v5295_v44  ;;  %7490 = vmatprep.subr.mxu1 %v5309_v45 }
 0x3eb   : > { %7450 = vmatprep.subr.mxu0 %v5294_v40  ;;  %7491 = vmatpush3.msra.mxu1 %v5309_v45 }
 0x3ec   : > { %7451 = vmatpush3.msra.mxu0 %v5294_v40  ;;  %7492 = vmatprep.subr.mxu1 %v5308_v46 }
 0x3ed   : > { %7452 = vmatprep.subr.mxu0 %v5293_v47  ;;  %7493 = vmatpush3.msra.mxu1 %v5308_v46 }
 0x3ee   : > { %7453 = vmatpush3.msra.mxu0 %v5293_v47  ;;  %7495 = vmatmul.mubr.f32.vlgmr.msra.gmra.mxu1 %v9395_v17  ;;  %v5337_v17 = vld [vmem:[%s9909_s4 + $0x568] sm:$0xff] }
 0x3ef   : > { %7454 = vmatprep.subr.mxu0 %v5292_v43  ;;  %7538 = vmatprep.subr.mxu1 %v4624_v48 }
 0x3f0   : > { %7455 = vmatpush3.msra.mxu0 %v5292_v43  ;;  %7539 = vmatpush3.msra.mxu1 %v4624_v48 }
 0x3f1   : > { %7457 = vmatmul.mubr.f32.vlgmr.msra.gmra.mxu0 %v4260_v27  ;;  %7500 = vmatprep.subr.mxu0 %v5339_v35 }
 0x3f2   : > { %7501 = vmatpush3.msra.mxu0 %v5339_v35  ;;  %7540 = vmatprep.subr.mxu1 %v4623_v51 }
 0x3f3   : > { %7502 = vmatprep.subr.mxu0 %v5338_v49  ;;  %7459 = vmatprep.mubr.f32.mxu0 %v9383_v10 }
 0x3f4   : > { %7503 = vmatpush3.msra.mxu0 %v5338_v49  ;;  %7541 = vmatpush3.msra.mxu1 %v4623_v51 }
 0x3f5   : > { %7460 = vmatmul.mubr.f32.gmra.mxu0 %v9383_v10  ;;  %7504 = vmatprep.subr.mxu0 %v5337_v17  ;;  %v5335_v10 = vld [vmem:[%s9909_s4 + $0x558] sm:$0xff] }
 0x3f6   : > { %7542 = vmatprep.subr.mxu1 %v4622_v52  ;;  %7497 = vmatprep.mubr.f32.mxu1 %v9409_v29  ;;  %v5334_v29 = vld [vmem:[%s9909_s4 + $0x550] sm:$0xff] }
 0x3f7   : > { %7505 = vmatpush3.msra.mxu0 %v5337_v17  ;;  %7532 = vmatprep.mubr.f32.mxu0 %v9487_v58  ;;  %v4619_v58 = vld [vmem:[%s9910_s5 + $0x50] sm:$0xff] }
 0x3f8   : > { %7543 = vmatpush3.msra.mxu1 %v4622_v52  ;;  %7506 = vmatprep.subr.mxu0 %v5336_v53 }
 0x3f9   : > { %7498 = vmatmul.mubr.f32.gmra.mxu1 %v4372_v54  ;;  %7544 = vmatprep.subr.mxu1 %v4621_v16 }
 0x3fa   : > { %7507 = vmatpush3.msra.mxu0 %v5336_v53  ;;  %7545 = vmatpush3.msra.mxu1 %v4621_v16 }
 0x3fb   : > { %7508 = vmatprep.subr.mxu0 %v5335_v10  ;;  %7546 = vmatprep.subr.mxu1 %v4620_v61 }
 0x3fc   : > { %7509 = vmatpush3.msra.mxu0 %v5335_v10  ;;  %7547 = vmatpush3.msra.mxu1 %v4620_v61 }
 0x3fd   : > { %7510 = vmatprep.subr.mxu0 %v5334_v29  ;;  %7548 = vmatprep.subr.mxu1 %v4619_v58 }
 0x3fe   : > { %7511 = vmatpush3.msra.mxu0 %v5334_v29  ;;  %7549 = vmatpush3.msra.mxu1 %v4619_v58 }
 0x3ff   : > { %7512 = vmatprep.subr.mxu0 %v5333_v50  ;;  %7550 = vmatprep.subr.mxu1 %v4618_v2 }
 0x400   : > { %7513 = vmatpush3.msra.mxu0 %v5333_v50  ;;  %7551 = vmatpush3.msra.mxu1 %v4618_v2 }
 0x401   : > { %7514 = vmatprep.subr.mxu0 %v5332_v63  ;;  %7552 = vmatprep.subr.mxu1 %v4617_v0 }
 0x402   : > { %7515 = vmatpush3.msra.mxu0 %v5332_v63  ;;  %7553 = vmatpush3.msra.mxu1 %v4617_v0 }
 0x403   : > { %7516 = vmatprep.subr.mxu0 %v5331_v4  ;;  %7554 = vmatprep.subr.mxu1 %v4616_v5 }
 0x404   : > { %7517 = vmatpush3.msra.mxu0 %v5331_v4  ;;  %7555 = vmatpush3.msra.mxu1 %v4616_v5 }
 0x405   : > { %7518 = vmatprep.subr.mxu0 %v5330_v32  ;;  %7556 = vmatprep.subr.mxu1 %v4615_v60 }
 0x406   : > { %7519 = vmatpush3.msra.mxu0 %v5330_v32  ;;  %7557 = vmatpush3.msra.mxu1 %v4615_v60 }
 0x407   : > { %7520 = vmatprep.subr.mxu0 %v5329_v7  ;;  %7558 = vmatprep.subr.mxu1 %v4614_v1 }
 0x408   : > { %7521 = vmatpush3.msra.mxu0 %v5329_v7  ;;  %7559 = vmatpush3.msra.mxu1 %v4614_v1 }
 0x409   : > { %7522 = vmatprep.subr.mxu0 %v5328_v14  ;;  %7560 = vmatprep.subr.mxu1 %v4613_v8 }
 0x40a   : > { %7523 = vmatpush3.msra.mxu0 %v5328_v14  ;;  %7561 = vmatpush3.msra.mxu1 %v4613_v8 }
 0x40b   : > { %7524 = vmatprep.subr.mxu0 %v5327_v9  ;;  %7562 = vmatprep.subr.mxu1 %v4612_v6 }
 0x40c   : > { %7525 = vmatpush3.msra.mxu0 %v5327_v9  ;;  %7563 = vmatpush3.msra.mxu1 %v4612_v6 }
 0x40d   : > { %7526 = vmatprep.subr.mxu0 %v5326_v62  ;;  %7564 = vmatprep.subr.mxu1 %v4611_v37 }
 0x40e   : > { %7527 = vmatpush3.msra.mxu0 %v5326_v62  ;;  %7565 = vmatpush3.msra.mxu1 %v4611_v37 }
 0x40f   : > { %7528 = vmatprep.subr.mxu0 %v5325_v19  ;;  %7566 = vmatprep.subr.mxu1 %v4610_v12 }
 0x410   : > { %7529 = vmatpush3.msra.mxu0 %v5325_v19  ;;  %7567 = vmatpush3.msra.mxu1 %v4610_v12 }
 0x411   : > { %7530 = vmatprep.subr.mxu0 %v5324_v15  ;;  %7568 = vmatprep.subr.mxu1 %v4609_v18 }
 0x412   : > { %7531 = vmatpush3.msra.mxu0 %v5324_v15  ;;  %7569 = vmatpush3.msra.mxu1 %v4609_v18 }
 0x413   : > { %7570 = vmatprep.mubr.f32.mxu1 %v4605_v21  ;;  %7533 = vmatmul.mubr.f32.vlgmr.msra.gmra.mxu0 %v9496_v11 }
 0x414   : > { %7571 = vmatmul.mubr.f32.vlgmr.msra.gmra.mxu1 %v4606_v28  ;;  %7535 = vmatprep.mubr.f32.mxu0 %v9502_v57 }
 0x415   : > { %7573 = vmatprep.mubr.f32.mxu1 %v4607_v22 }
 0x417   : > { %7536 = vmatmul.mubr.f32.gmra.mxu0 %v4482_v55 }
 0x418   : > { %7574 = vmatmul.mubr.f32.gmra.mxu1 %v4608_v23 }
 0x41c   : > { %v7192_v20 = vpop.f32.mrf.mxu1 }
 0x41e   : > { %v3580_v25 = vpop.f32.mrf.mxu1 }
 0x420   : > { %v7195_v3 = vpop.f32.mrf.mxu1 }
 0x422   : > { %v3590_v30 = vpop.f32.mrf.mxu1 }
 0x428   : > { %v7154_v24 = vpop.f32.mrf.mxu0 }
 0x429   : > { %v3586_v43 = vadd.f32 %v7192_v20, %v7154_v24 }
 0x42a   : > { %v3495_v59 = vpop.f32.mrf.mxu0 }
 0x42b   : > { %v3581_v51 = vadd.f32 %v3580_v25, %v3495_v59 }
 0x42c   : > { %v7157_v36 = vpop.f32.mrf.mxu0 }
 0x42d   : > { %v3596_v17 = vadd.f32 %v7195_v3, %v7157_v36 }
 0x42e   : > { %v3505_v56 = vpop.f32.mrf.mxu0 }
 0x42f   : > { %v3591_v54 = vadd.f32 %v3590_v30, %v3505_v56  ;;  %v5340_v30 = vld [vmem:[%s9911_s6 + $0x2] ss:$0 sm:$0xff] }
 0x43f   : > { %v7268_v11 = vpop.f32.mrf.mxu1 }
 0x441   : > { %v3796_v38 = vpop.f32.mrf.mxu1 }
 0x445   : > { %v7271_v39 = vpop.f32.mrf.mxu1 }
 0x447   : > { %v3806_v42 = vpop.f32.mrf.mxu1 }
 0x448   : > { %v7230_v26 = vpop.f32.mrf.mxu0 }
 0x449   : > { %v3706_v27 = vadd.f32 %v7230_v26, %v3586_v43 }
 0x44a   : > { %v3686_v13 = vpop.f32.mrf.mxu0 }
 0x44b   : > { %v3705_v52 = vadd.f32 %v3686_v13, %v3581_v51  ;;  %v3816_v10 = vadd.f32 %v7268_v11, %v3706_v27  ;;  %v5342_v13 = vld [vmem:[%s9911_s6 + $0x3] ss:$0 sm:$0xff] }
 0x44c   : > { %v7233_v33 = vpop.f32.mrf.mxu0 }
 0x44d   : > { %v3708_v16 = vadd.f32 %v7233_v33, %v3596_v17  ;;  %v3815_v50 = vadd.f32 %v3796_v38, %v3705_v52 }
 0x44e   : > { %v3696_v34 = vpop.f32.mrf.mxu0 }
 0x44f   : > { %v3707_v29 = vadd.f32 %v3696_v34, %v3591_v54  ;;  %v3818_v0 = vadd.f32 %v7271_v39, %v3708_v16 }
 0x451   : > { %v3817_v32 = vadd.f32 %v3806_v42, %v3707_v29 }
 0x466   : > { %v7344_v31 = vpop.f32.mrf.mxu1 }
 0x468   : > { %v4016_v45 = vpop.f32.mrf.mxu1 }
 0x46a   : > { %v7306_v57 = vpop.f32.mrf.mxu0 }
 0x46b   : > { %v3926_v58 = vadd.f32 %v7306_v57, %v3816_v10  ;;  %v5343_v57 = vld [vmem:[%s9912_s7 + $0x3] ss:$0 sm:$0xff] }
 0x46c   : > { %v3906_v41 = vpop.f32.mrf.mxu0  ;;  %v7347_v46 = vpop.f32.mrf.mxu1 }
 0x46d   : > { %v3925_v4 = vadd.f32 %v3906_v41, %v3815_v50  ;;  %v4036_v7 = vadd.f32 %v7344_v31, %v3926_v58  ;;  %v5341_v41 = vld [vmem:[%s9912_s7 + $0x2] ss:$0 sm:$0xff] }
 0x46e   : > { %v4026_v48 = vpop.f32.mrf.mxu1 }
 0x46f   : > { %v4035_v9 = vadd.f32 %v4016_v45, %v3925_v4 }
 0x470   : > { %v7309_v44 = vpop.f32.mrf.mxu0 }
 0x471   : > { %v3928_v60 = vadd.f32 %v7309_v44, %v3818_v0 }
 0x472   : > { %v3916_v40 = vpop.f32.mrf.mxu0 }
 0x473   : > { %v3927_v14 = vadd.f32 %v3916_v40, %v3817_v32  ;;  %v4038_v37 = vadd.f32 %v7347_v46, %v3928_v60 }
 0x475   : > { %v4037_v12 = vadd.f32 %v4026_v48, %v3927_v14 }
 0x48a   : > { %v7420_v49 = vpop.f32.mrf.mxu1 }
 0x48c   : > { %v4236_v61 = vpop.f32.mrf.mxu1 }
 0x48e   : > { %v7382_v47 = vpop.f32.mrf.mxu0 }
 0x48f   : > { %v4146_v8 = vadd.f32 %v7382_v47, %v4036_v7 }
 0x490   : > { %v4126_v35 = vpop.f32.mrf.mxu0  ;;  %v7423_v2 = vpop.f32.mrf.mxu1 }
 0x491   : > { %v4145_v19 = vadd.f32 %v4126_v35, %v4035_v9  ;;  %v4256_v21 = vadd.f32 %v7420_v49, %v4146_v8 }
 0x492   : > { %v4246_v1 = vpop.f32.mrf.mxu1 }
 0x493   : > { %v4255_v23 = vadd.f32 %v4236_v61, %v4145_v19 }
 0x494   : > { %v7385_v53 = vpop.f32.mrf.mxu0 }
 0x495   : > { %v4148_v15 = vadd.f32 %v7385_v53, %v4038_v37 }
 0x496   : > { %v4136_v63 = vpop.f32.mrf.mxu0 }
 0x497   : > { %v4147_v22 = vadd.f32 %v4136_v63, %v4037_v12  ;;  %v4258_v59 = vadd.f32 %v7423_v2, %v4148_v15 }
 0x499   : > { %v4257_v56 = vadd.f32 %v4246_v1, %v4147_v22 }
 0x4ae   : > { %v7496_v6 = vpop.f32.mrf.mxu1 }
 0x4b0   : > { %v4456_v18 = vpop.f32.mrf.mxu1 }
 0x4b1   : > { %v7458_v5 = vpop.f32.mrf.mxu0 }
 0x4b2   : > { %v4366_v55 = vadd.f32 %v7458_v5, %v4256_v21 }
 0x4b3   : > { %v4346_v62 = vpop.f32.mrf.mxu0 }
 0x4b4   : > { %v4365_v36 = vadd.f32 %v4346_v62, %v4255_v23  ;;  %v4476_v3 = vadd.f32 %v7496_v6, %v4366_v55 }
 0x4b5   : > { %v7461_v28 = vpop.f32.mrf.mxu0 }
 0x4b6   : > { %v4368_v25 = vadd.f32 %v7461_v28, %v4258_v59  ;;  %v4475_v39 = vadd.f32 %v4456_v18, %v4365_v36 }
 0x4b7   : > { %v4356_v20 = vpop.f32.mrf.mxu0 }
 0x4b8   : > { %v4367_v11 = vadd.f32 %v4356_v20, %v4257_v56 }
 0x4b9   : > { %v7499_v24 = vpop.f32.mrf.mxu1 }
 0x4ba   : > { %v4478_v44 = vadd.f32 %v7499_v24, %v4368_v25 }
 0x4bb   : > { %v4466_v26 = vpop.f32.mrf.mxu1 }
 0x4bc   : > { %v4477_v35 = vadd.f32 %v4466_v26, %v4367_v11 }
 0x4d3   : > { %v7534_v33 = vpop.f32.mrf.mxu0 }
 0x4d4   : > { %v4586_v34 = vadd.f32 %v7534_v33, %v4476_v3  ;;  %v7572_v38 = vpop.f32.mrf.mxu1 }
 0x4d5   : > { %v4716_v42 = vmul.f32 %v7572_v38, %v5342_v13  ;;  %v4566_v31 = vpop.f32.mrf.mxu0 }
 0x4d6   : > { %v4594_v45 = vmul.f32 %v5340_v30, %v4586_v34  ;;  %v4585_v40 = vadd.f32 %v4566_v31, %v4475_v39  ;;  %v4691_v46 = vpop.f32.mrf.mxu1 }
 0x4d7   : > { %v4725_v47 = vadd.f32 %v5343_v57, %v4716_v42  ;;  %v4715_v43 = vmul.f32 %v5342_v13, %v4691_v46  ;;  %v7537_v48 = vpop.f32.mrf.mxu0 }
 0x4d8   : > { %v4602_v51 = vadd.f32 %v5341_v41, %v4594_v45  ;;  %v4593_v27 = vmul.f32 %v5340_v30, %v4585_v40  ;;  %v4588_v49 = vadd.f32 %v7537_v48, %v4478_v44  ;;  %v7575_v17 = vpop.f32.mrf.mxu1 }
 0x4d9   : > { %v4724_v52 = vadd.f32 %v5343_v57, %v4715_v43  ;;  %v4718_v53 = vmul.f32 %v7575_v17, %v5342_v13  ;;  %v4576_v54 = vpop.f32.mrf.mxu0 }
 0x4da   : > { %v4729_v16 = vadd.f32 %v4725_v47, %v4602_v51  ;;  %v4601_v10 = vadd.f32 %v5341_v41, %v4593_v27  ;;  %v4596_v61 = vmul.f32 %v5340_v30, %v4588_v49  ;;  %v4587_v29 = vadd.f32 %v4576_v54, %v4477_v35  ;;  %v4701_v58 = vpop.f32.mrf.mxu1 }
 0x4db   : > { %v4727_v50 = vadd.f32 %v5343_v57, %v4718_v53  ;;  %v4717_v2 = vmul.f32 %v5342_v13, %v4701_v58 }
 0x4dc   : > { %v4733_v63 = vmax.f32 %v4729_v16, 0.0  ;;  %v4728_v0 = vadd.f32 %v4724_v52, %v4601_v10  ;;  %v4604_v4 = vadd.f32 %v5341_v41, %v4596_v61  ;;  %v4595_v5 = vmul.f32 %v5340_v30, %v4587_v29 }
 0x4dd   : > { %v4726_v1 = vadd.f32 %v5343_v57, %v4717_v2 }
 0x4de   : > { %4737 = vst [vmem:[%s386_s11 + $0x8] sm:$0xff] %v4733_v63  ;;  %v4732_v32 = vmax.f32 %v4728_v0, 0.0  ;;  %v4731_v60 = vadd.f32 %v4727_v50, %v4604_v4  ;;  %v4603_v7 = vadd.f32 %v5341_v41, %v4595_v5 }
 0x4e0   : > { %4736 = vst [vmem:[%s386_s11] sm:$0xff] %v4732_v32  ;;  %v4735_v14 = vmax.f32 %v4731_v60, 0.0  ;;  %v4730_v8 = vadd.f32 %v4726_v1, %v4603_v7 }
 0x4e2   : > { %4739 = vst [vmem:[%s386_s11 + $0x18] sm:$0xff] %v4735_v14  ;;  %v4734_v9 = vmax.f32 %v4730_v8, 0.0 }
 0x4e4   : > { %4738 = vst [vmem:[%s386_s11 + $0x10] sm:$0xff] %v4734_v9 }
 0x4e5 PF: > { %s18_s29 = sadd.s32 1, %s7635_s29   ;;  %s9914_s27 = smov %s7631_s28 }
 0x4e6   : > { %p15_p5 = scmp.ge.s32.totalorder %s18_s29, 4   ;;  %s9915_s28 = smov %s9917_s30 }
 0x4e8   :  { %17 = sbr.rel (!%p15_p5) target bundleno = 2 (0x2), region = 123 }

</bundles_post_ra>
